<compile_context>
chip_gen: v5e
topology: v5e:2x2
jax: 0.10.0
libtpu: 0.0.40
codegen_flags: <defaults>
</compile_context>

<pallas_src>
import jax
import jax.numpy as jnp
from jax.experimental import pallas as pl
from jax.experimental.pallas import tpu as pltpu

MAX_BATCH_TILE = 1024  # batch rows per grid step for large batches
OUT_PAD = 128          # lane-dense padded width of the final (10-wide) layer
_DIMS = [784, 512, 256, 128, 64, 10]


def _round_up(n, m):
    return ((n + m - 1) // m) * m


def _mlp_kernel(x_ref,
                w1_ref, b1_ref,
                w2_ref, b2_ref,
                w3_ref, b3_ref,
                w4_ref, b4_ref,
                w5_ref, b5_ref,
                o_ref):
    # x_ref is bf16; weights are bf16; MXU accumulates in f32. Bias add / ReLU
    # run in f32 on the VPU. Activations are cast back to bf16 only to feed
    # the next MXU matmul.
    def layer(h_bf16, w_ref, b_ref, relu):
        acc = jnp.dot(h_bf16, w_ref[...], preferred_element_type=jnp.float32)
        acc = acc + b_ref[...]
        if relu:
            acc = jnp.maximum(acc, 0.0)
        return acc

    h = layer(x_ref[...], w1_ref, b1_ref, True)
    h = layer(h.astype(jnp.bfloat16), w2_ref, b2_ref, True)
    h = layer(h.astype(jnp.bfloat16), w3_ref, b3_ref, True)
    h = layer(h.astype(jnp.bfloat16), w4_ref, b4_ref, True)
    h = layer(h.astype(jnp.bfloat16), w5_ref, b5_ref, False)  # (tile, OUT_PAD); cols >= 10 are exactly 0
    o_ref[...] = h.astype(o_ref.dtype)


def init_params(key):
    """PyTorch-Linear-style init: W ~ U(-k, k), b ~ U(-k, k), k = 1/sqrt(fan_in).
    Weights are stored (in, out) so the kernel does x @ W (== torch x @ W.T)."""
    params = []
    for i in range(5):
        fan_in, fan_out = _DIMS[i], _DIMS[i + 1]
        key, kw, kb = jax.random.split(key, 3)
        bound = 1.0 / (fan_in ** 0.5)
        w = jax.random.uniform(kw, (fan_in, fan_out), jnp.float32, -bound, bound)
        b = jax.random.uniform(kb, (1, fan_out), jnp.float32, -bound, bound)
        params.append((w, b))
    return params


def pack_params(params):
    """Cast weights to bf16 (keep biases f32) and zero-pad the final layer to
    OUT_PAD columns for a lane-dense output."""
    packed = []
    last = len(params) - 1
    for i, (w, b) in enumerate(params):
        if i == last:
            w = jnp.pad(w, ((0, 0), (0, OUT_PAD - w.shape[1])))
            b = jnp.pad(b, ((0, 0), (0, OUT_PAD - b.shape[1])))
        packed.append((w.astype(jnp.bfloat16), b.astype(jnp.float32)))
    return packed


def _pallas_forward(x_pad, flat_params, tile, single_buffer_weights):
    """x_pad: (B_pad, 784) bf16 with B_pad % tile == 0."""
    B_pad = x_pad.shape[0]
    # Grid-invariant weight/bias blocks: index_map == (0, 0); optionally drop
    # the default double-buffering (the DMA is only issued once anyway).
    wb_kwargs = {"pipeline_mode": pl.Buffered(1)} if single_buffer_weights else {}

    in_specs = [pl.BlockSpec((tile, 784), lambda i: (i, 0))]
    for p in flat_params:
        in_specs.append(pl.BlockSpec(p.shape, lambda i: (0, 0), **wb_kwargs))

    return pl.pallas_call(
        _mlp_kernel,
        out_shape=jax.ShapeDtypeStruct((B_pad, OUT_PAD), jnp.float32),
        grid_spec=pltpu.PrefetchScalarGridSpec(
            num_scalar_prefetch=0,
            grid=(B_pad // tile,),
            in_specs=in_specs,
            out_specs=pl.BlockSpec((tile, OUT_PAD), lambda i: (i, 0)),
        ),
        compiler_params=pltpu.CompilerParams(
            dimension_semantics=("parallel",),     # batch axis shards across TCs (v7x)
            vmem_limit_bytes=32 * 1024 * 1024,     # ample; footprint is ~10 MB at tile=1024
        ),
    )(x_pad, *flat_params)


def net_forward(x_nchw, packed_params, max_batch_tile=MAX_BATCH_TILE):
    """x_nchw: (B, 1, 28, 28) float32 (NCHW). Returns (B, 10) f32 logits."""
    # == torch x.view(-1, 784); fed to the kernel in bf16 to halve input DMA.
    x = x_nchw.reshape(-1, 784).astype(jnp.bfloat16)
    B = x.shape[0]

    # Batch tile: multiple of 16 (bf16 sublane packing), capped at
    # max_batch_tile, and sized to give >= 2 grid steps whenever the batch
    # allows so both v7x TensorCores get work. Arbitrary batch sizes are
    # handled by zero-padding to a tile multiple.
    half = -(-B // 2)
    tile = min(max_batch_tile, max(16, _round_up(half, 16)))
    B_pad = _round_up(B, tile)
    if B_pad != B:
        x = jnp.pad(x, ((0, B_pad - B), (0, 0)))

    flat_params = []
    for (w, b) in packed_params:
        flat_params.extend([w, b])

    try:
        out = _pallas_forward(x, flat_params, tile, single_buffer_weights=True)
        out = jax.block_until_ready(out)
    except Exception:
        # Fallback: default double-buffered weight specs (always supported).
        out = _pallas_forward(x, flat_params, tile, single_buffer_weights=False)
    return out[:B, :10]


def net_forward_ref(x_nchw, packed_params):
    """Pure-JAX reference with the same bf16-weight / bf16-activation /
    f32-accumulation numerics as the kernel."""
    h = x_nchw.reshape(-1, 784).astype(jnp.bfloat16)
    n = len(packed_params)
    for i, (w, b) in enumerate(packed_params):
        acc = jnp.dot(h, w, preferred_element_type=jnp.float32) + b
        if i < n - 1:
            acc = jnp.maximum(acc, 0.0)
            h = acc.astype(jnp.bfloat16)
        else:
            h = acc
    return h[:, :10]


if __name__ == "__main__":
    key = jax.random.PRNGKey(0)
    key, kp, kx = jax.random.split(key, 3)

    params = init_params(kp)
    packed = pack_params(params)

    # small deterministic NCHW MNIST-shaped batch
    x = jax.random.normal(kx, (8, 1, 28, 28), jnp.float32)

    logits = jax.block_until_ready(net_forward(x, packed))
    ref = net_forward_ref(x, packed)

    assert logits.shape == (8, 10)
    assert jnp.allclose(logits, ref, atol=2e-2, rtol=2e-2), \
        float(jnp.max(jnp.abs(logits - ref)))

    print("KERNEL_OK")
</pallas_src>

<mosaic_0001>
module attributes {stable_mosaic.version = 11 : i64} {
  func.func @_mlp_kernel(%arg0: i32, %arg1: memref<16x784xbf16, #tpu.memory_space<vmem>>, %arg2: memref<784x512xbf16, #tpu.memory_space<vmem>>, %arg3: memref<1x512xf32, #tpu.memory_space<vmem>>, %arg4: memref<512x256xbf16, #tpu.memory_space<vmem>>, %arg5: memref<1x256xf32, #tpu.memory_space<vmem>>, %arg6: memref<256x128xbf16, #tpu.memory_space<vmem>>, %arg7: memref<1x128xf32, #tpu.memory_space<vmem>>, %arg8: memref<128x64xbf16, #tpu.memory_space<vmem>>, %arg9: memref<1x64xf32, #tpu.memory_space<vmem>>, %arg10: memref<64x128xbf16, #tpu.memory_space<vmem>>, %arg11: memref<1x128xf32, #tpu.memory_space<vmem>>, %arg12: memref<16x128xf32, #tpu.memory_space<vmem>>) attributes {dimension_semantics = [#tpu.dimension_semantics<parallel>], iteration_bounds = array<i64: 1>, scalar_prefetch = 0 : i64, scratch_operands = 0 : i64, tpu.core_type = #tpu.core_type<tc>, window_params = [{transform_indices = @transform_0, window_bounds = array<i64: 16, 784>}, {pipeline_mode = #tpu.pipeline_mode<synchronous>, transform_indices = @transform_1, window_bounds = array<i64: 784, 512>}, {pipeline_mode = #tpu.pipeline_mode<synchronous>, transform_indices = @transform_2, window_bounds = array<i64: 1, 512>}, {pipeline_mode = #tpu.pipeline_mode<synchronous>, transform_indices = @transform_3, window_bounds = array<i64: 512, 256>}, {pipeline_mode = #tpu.pipeline_mode<synchronous>, transform_indices = @transform_4, window_bounds = array<i64: 1, 256>}, {pipeline_mode = #tpu.pipeline_mode<synchronous>, transform_indices = @transform_5, window_bounds = array<i64: 256, 128>}, {pipeline_mode = #tpu.pipeline_mode<synchronous>, transform_indices = @transform_6, window_bounds = array<i64: 1, 128>}, {pipeline_mode = #tpu.pipeline_mode<synchronous>, transform_indices = @transform_7, window_bounds = array<i64: 128, 64>}, {pipeline_mode = #tpu.pipeline_mode<synchronous>, transform_indices = @transform_8, window_bounds = array<i64: 1, 64>}, {pipeline_mode = #tpu.pipeline_mode<synchronous>, transform_indices = @transform_9, window_bounds = array<i64: 64, 128>}, {pipeline_mode = #tpu.pipeline_mode<synchronous>, transform_indices = @transform_10, window_bounds = array<i64: 1, 128>}, {transform_indices = @transform_11, window_bounds = array<i64: 16, 128>}]} {
    %c0 = arith.constant 0 : index
    %c0_0 = arith.constant 0 : index
    %0 = vector.load %arg1[%c0, %c0_0] : memref<16x784xbf16, #tpu.memory_space<vmem>>, vector<16x784xbf16>
    %c0_1 = arith.constant 0 : index
    %c0_2 = arith.constant 0 : index
    %1 = vector.load %arg2[%c0_1, %c0_2] : memref<784x512xbf16, #tpu.memory_space<vmem>>, vector<784x512xbf16>
    %cst = arith.constant dense<0.000000e+00> : vector<16x512xf32>
    %2 = tpu.matmul %0, %1, %cst {dimension_numbers = #tpu.dot_dimension_numbers<[1], [0], [0], [1], [0, 0, 1, 1], [], []>} : vector<16x784xbf16>, vector<784x512xbf16>, vector<16x512xf32> -> vector<16x512xf32>
    %c0_3 = arith.constant 0 : index
    %c0_4 = arith.constant 0 : index
    %3 = vector.load %arg3[%c0_3, %c0_4] : memref<1x512xf32, #tpu.memory_space<vmem>>, vector<1x512xf32>
    %4 = vector.broadcast %3 : vector<1x512xf32> to vector<16x512xf32>
    %5 = arith.addf %2, %4 : vector<16x512xf32>
    %cst_5 = arith.constant 0.000000e+00 : f32
    %6 = vector.broadcast %cst_5 : f32 to vector<16x512xf32>
    %7 = arith.maximumf %5, %6 : vector<16x512xf32>
    %8 = arith.truncf %7 : vector<16x512xf32> to vector<16x512xbf16>
    %c0_6 = arith.constant 0 : index
    %c0_7 = arith.constant 0 : index
    %9 = vector.load %arg4[%c0_6, %c0_7] : memref<512x256xbf16, #tpu.memory_space<vmem>>, vector<512x256xbf16>
    %cst_8 = arith.constant dense<0.000000e+00> : vector<16x256xf32>
    %10 = tpu.matmul %8, %9, %cst_8 {dimension_numbers = #tpu.dot_dimension_numbers<[1], [0], [0], [1], [0, 0, 1, 1], [], []>} : vector<16x512xbf16>, vector<512x256xbf16>, vector<16x256xf32> -> vector<16x256xf32>
    %c0_9 = arith.constant 0 : index
    %c0_10 = arith.constant 0 : index
    %11 = vector.load %arg5[%c0_9, %c0_10] : memref<1x256xf32, #tpu.memory_space<vmem>>, vector<1x256xf32>
    %12 = vector.broadcast %11 : vector<1x256xf32> to vector<16x256xf32>
    %13 = arith.addf %10, %12 : vector<16x256xf32>
    %cst_11 = arith.constant 0.000000e+00 : f32
    %14 = vector.broadcast %cst_11 : f32 to vector<16x256xf32>
    %15 = arith.maximumf %13, %14 : vector<16x256xf32>
    %16 = arith.truncf %15 : vector<16x256xf32> to vector<16x256xbf16>
    %c0_12 = arith.constant 0 : index
    %c0_13 = arith.constant 0 : index
    %17 = vector.load %arg6[%c0_12, %c0_13] : memref<256x128xbf16, #tpu.memory_space<vmem>>, vector<256x128xbf16>
    %cst_14 = arith.constant dense<0.000000e+00> : vector<16x128xf32>
    %18 = tpu.matmul %16, %17, %cst_14 {dimension_numbers = #tpu.dot_dimension_numbers<[1], [0], [0], [1], [0, 0, 1, 1], [], []>} : vector<16x256xbf16>, vector<256x128xbf16>, vector<16x128xf32> -> vector<16x128xf32>
    %c0_15 = arith.constant 0 : index
    %c0_16 = arith.constant 0 : index
    %19 = vector.load %arg7[%c0_15, %c0_16] : memref<1x128xf32, #tpu.memory_space<vmem>>, vector<1x128xf32>
    %20 = vector.broadcast %19 : vector<1x128xf32> to vector<16x128xf32>
    %21 = arith.addf %18, %20 : vector<16x128xf32>
    %cst_17 = arith.constant 0.000000e+00 : f32
    %22 = vector.broadcast %cst_17 : f32 to vector<16x128xf32>
    %23 = arith.maximumf %21, %22 : vector<16x128xf32>
    %24 = arith.truncf %23 : vector<16x128xf32> to vector<16x128xbf16>
    %c0_18 = arith.constant 0 : index
    %c0_19 = arith.constant 0 : index
    %25 = vector.load %arg8[%c0_18, %c0_19] : memref<128x64xbf16, #tpu.memory_space<vmem>>, vector<128x64xbf16>
    %cst_20 = arith.constant dense<0.000000e+00> : vector<16x64xf32>
    %26 = tpu.matmul %24, %25, %cst_20 {dimension_numbers = #tpu.dot_dimension_numbers<[1], [0], [0], [1], [0, 0, 1, 1], [], []>} : vector<16x128xbf16>, vector<128x64xbf16>, vector<16x64xf32> -> vector<16x64xf32>
    %c0_21 = arith.constant 0 : index
    %c0_22 = arith.constant 0 : index
    %27 = vector.load %arg9[%c0_21, %c0_22] : memref<1x64xf32, #tpu.memory_space<vmem>>, vector<1x64xf32>
    %28 = vector.broadcast %27 : vector<1x64xf32> to vector<16x64xf32>
    %29 = arith.addf %26, %28 : vector<16x64xf32>
    %cst_23 = arith.constant 0.000000e+00 : f32
    %30 = vector.broadcast %cst_23 : f32 to vector<16x64xf32>
    %31 = arith.maximumf %29, %30 : vector<16x64xf32>
    %32 = arith.truncf %31 : vector<16x64xf32> to vector<16x64xbf16>
    %c0_24 = arith.constant 0 : index
    %c0_25 = arith.constant 0 : index
    %33 = vector.load %arg10[%c0_24, %c0_25] : memref<64x128xbf16, #tpu.memory_space<vmem>>, vector<64x128xbf16>
    %cst_26 = arith.constant dense<0.000000e+00> : vector<16x128xf32>
    %34 = tpu.matmul %32, %33, %cst_26 {dimension_numbers = #tpu.dot_dimension_numbers<[1], [0], [0], [1], [0, 0, 1, 1], [], []>} : vector<16x64xbf16>, vector<64x128xbf16>, vector<16x128xf32> -> vector<16x128xf32>
    %c0_27 = arith.constant 0 : index
    %c0_28 = arith.constant 0 : index
    %35 = vector.load %arg11[%c0_27, %c0_28] : memref<1x128xf32, #tpu.memory_space<vmem>>, vector<1x128xf32>
    %36 = vector.broadcast %35 : vector<1x128xf32> to vector<16x128xf32>
    %37 = arith.addf %34, %36 : vector<16x128xf32>
    %c0_29 = arith.constant 0 : index
    %c0_30 = arith.constant 0 : index
    %38 = vector.load %arg12[%c0_29, %c0_30] : memref<16x128xf32, #tpu.memory_space<vmem>>, vector<16x128xf32>
    tpu.vector_store %arg12[%c0_29, %c0_30], %37 {strides = array<i32>} : memref<16x128xf32, #tpu.memory_space<vmem>>, vector<16x128xf32>,
    return
  }
  func.func @transform_0(%arg0: i32) -> (i32, i32) {
    %c0_i32 = arith.constant 0 : i32
    %c0_i32_0 = arith.constant 0 : i32
    return %arg0, %c0_i32 : i32, i32
  }
  func.func @transform_1(%arg0: i32) -> (i32, i32) {
    %c0_i32 = arith.constant 0 : i32
    %c0_i32_0 = arith.constant 0 : i32
    %c0_i32_1 = arith.constant 0 : i32
    return %c0_i32, %c0_i32_0 : i32, i32
  }
  func.func @transform_2(%arg0: i32) -> (i32, i32) {
    %c0_i32 = arith.constant 0 : i32
    %c0_i32_0 = arith.constant 0 : i32
    %c0_i32_1 = arith.constant 0 : i32
    return %c0_i32, %c0_i32_0 : i32, i32
  }
  func.func @transform_3(%arg0: i32) -> (i32, i32) {
    %c0_i32 = arith.constant 0 : i32
    %c0_i32_0 = arith.constant 0 : i32
    %c0_i32_1 = arith.constant 0 : i32
    return %c0_i32, %c0_i32_0 : i32, i32
  }
  func.func @transform_4(%arg0: i32) -> (i32, i32) {
    %c0_i32 = arith.constant 0 : i32
    %c0_i32_0 = arith.constant 0 : i32
    %c0_i32_1 = arith.constant 0 : i32
    return %c0_i32, %c0_i32_0 : i32, i32
  }
  func.func @transform_5(%arg0: i32) -> (i32, i32) {
    %c0_i32 = arith.constant 0 : i32
    %c0_i32_0 = arith.constant 0 : i32
    %c0_i32_1 = arith.constant 0 : i32
    return %c0_i32, %c0_i32_0 : i32, i32
  }
  func.func @transform_6(%arg0: i32) -> (i32, i32) {
    %c0_i32 = arith.constant 0 : i32
    %c0_i32_0 = arith.constant 0 : i32
    %c0_i32_1 = arith.constant 0 : i32
    return %c0_i32, %c0_i32_0 : i32, i32
  }
  func.func @transform_7(%arg0: i32) -> (i32, i32) {
    %c0_i32 = arith.constant 0 : i32
    %c0_i32_0 = arith.constant 0 : i32
    %c0_i32_1 = arith.constant 0 : i32
    return %c0_i32, %c0_i32_0 : i32, i32
  }
  func.func @transform_8(%arg0: i32) -> (i32, i32) {
    %c0_i32 = arith.constant 0 : i32
    %c0_i32_0 = arith.constant 0 : i32
    %c0_i32_1 = arith.constant 0 : i32
    return %c0_i32, %c0_i32_0 : i32, i32
  }
  func.func @transform_9(%arg0: i32) -> (i32, i32) {
    %c0_i32 = arith.constant 0 : i32
    %c0_i32_0 = arith.constant 0 : i32
    %c0_i32_1 = arith.constant 0 : i32
    return %c0_i32, %c0_i32_0 : i32, i32
  }
  func.func @transform_10(%arg0: i32) -> (i32, i32) {
    %c0_i32 = arith.constant 0 : i32
    %c0_i32_0 = arith.constant 0 : i32
    %c0_i32_1 = arith.constant 0 : i32
    return %c0_i32, %c0_i32_0 : i32, i32
  }
  func.func @transform_11(%arg0: i32) -> (i32, i32) {
    %c0_i32 = arith.constant 0 : i32
    %c0_i32_0 = arith.constant 0 : i32
    return %arg0, %c0_i32 : i32, i32
  }
}

module attributes {stable_mosaic.version = 11 : i64} {
  func.func @_mlp_kernel(%arg0: i32, %arg1: memref<16x784xbf16, #tpu.memory_space<vmem>>, %arg2: memref<784x512xbf16, #tpu.memory_space<vmem>>, %arg3: memref<1x512xf32, #tpu.memory_space<vmem>>, %arg4: memref<512x256xbf16, #tpu.memory_space<vmem>>, %arg5: memref<1x256xf32, #tpu.memory_space<vmem>>, %arg6: memref<256x128xbf16, #tpu.memory_space<vmem>>, %arg7: memref<1x128xf32, #tpu.memory_space<vmem>>, %arg8: memref<128x64xbf16, #tpu.memory_space<vmem>>, %arg9: memref<1x64xf32, #tpu.memory_space<vmem>>, %arg10: memref<64x128xbf16, #tpu.memory_space<vmem>>, %arg11: memref<1x128xf32, #tpu.memory_space<vmem>>, %arg12: memref<16x128xf32, #tpu.memory_space<vmem>>) attributes {dimension_semantics = [#tpu.dimension_semantics<parallel>], iteration_bounds = array<i64: 1>, scalar_prefetch = 0 : i64, scratch_operands = 0 : i64, tpu.core_type = #tpu.core_type<tc>, window_params = [{transform_indices = @transform_0, window_bounds = array<i64: 16, 784>}, {pipeline_mode = #tpu.pipeline_mode<synchronous>, transform_indices = @transform_1, window_bounds = array<i64: 784, 512>}, {pipeline_mode = #tpu.pipeline_mode<synchronous>, transform_indices = @transform_2, window_bounds = array<i64: 1, 512>}, {pipeline_mode = #tpu.pipeline_mode<synchronous>, transform_indices = @transform_3, window_bounds = array<i64: 512, 256>}, {pipeline_mode = #tpu.pipeline_mode<synchronous>, transform_indices = @transform_4, window_bounds = array<i64: 1, 256>}, {pipeline_mode = #tpu.pipeline_mode<synchronous>, transform_indices = @transform_5, window_bounds = array<i64: 256, 128>}, {pipeline_mode = #tpu.pipeline_mode<synchronous>, transform_indices = @transform_6, window_bounds = array<i64: 1, 128>}, {pipeline_mode = #tpu.pipeline_mode<synchronous>, transform_indices = @transform_7, window_bounds = array<i64: 128, 64>}, {pipeline_mode = #tpu.pipeline_mode<synchronous>, transform_indices = @transform_8, window_bounds = array<i64: 1, 64>}, {pipeline_mode = #tpu.pipeline_mode<synchronous>, transform_indices = @transform_9, window_bounds = array<i64: 64, 128>}, {pipeline_mode = #tpu.pipeline_mode<synchronous>, transform_indices = @transform_10, window_bounds = array<i64: 1, 128>}, {transform_indices = @transform_11, window_bounds = array<i64: 16, 128>}]} {
    %c0 = arith.constant 0 : index
    %c0_0 = arith.constant 0 : index
    %0 = vector.load %arg1[%c0, %c0_0] : memref<16x784xbf16, #tpu.memory_space<vmem>>, vector<16x784xbf16>
    %c0_1 = arith.constant 0 : index
    %c0_2 = arith.constant 0 : index
    %1 = vector.load %arg2[%c0_1, %c0_2] : memref<784x512xbf16, #tpu.memory_space<vmem>>, vector<784x512xbf16>
    %cst = arith.constant dense<0.000000e+00> : vector<16x512xf32>
    %2 = tpu.matmul %0, %1, %cst {dimension_numbers = #tpu.dot_dimension_numbers<[1], [0], [0], [1], [0, 0, 1, 1], [], []>} : vector<16x784xbf16>, vector<784x512xbf16>, vector<16x512xf32> -> vector<16x512xf32>
    %c0_3 = arith.constant 0 : index
    %c0_4 = arith.constant 0 : index
    %3 = vector.load %arg3[%c0_3, %c0_4] : memref<1x512xf32, #tpu.memory_space<vmem>>, vector<1x512xf32>
    %4 = vector.broadcast %3 : vector<1x512xf32> to vector<16x512xf32>
    %5 = arith.addf %2, %4 : vector<16x512xf32>
    %cst_5 = arith.constant 0.000000e+00 : f32
    %6 = vector.broadcast %cst_5 : f32 to vector<16x512xf32>
    %7 = arith.maximumf %5, %6 : vector<16x512xf32>
    %8 = arith.truncf %7 : vector<16x512xf32> to vector<16x512xbf16>
    %c0_6 = arith.constant 0 : index
    %c0_7 = arith.constant 0 : index
    %9 = vector.load %arg4[%c0_6, %c0_7] : memref<512x256xbf16, #tpu.memory_space<vmem>>, vector<512x256xbf16>
    %cst_8 = arith.constant dense<0.000000e+00> : vector<16x256xf32>
    %10 = tpu.matmul %8, %9, %cst_8 {dimension_numbers = #tpu.dot_dimension_numbers<[1], [0], [0], [1], [0, 0, 1, 1], [], []>} : vector<16x512xbf16>, vector<512x256xbf16>, vector<16x256xf32> -> vector<16x256xf32>
    %c0_9 = arith.constant 0 : index
    %c0_10 = arith.constant 0 : index
    %11 = vector.load %arg5[%c0_9, %c0_10] : memref<1x256xf32, #tpu.memory_space<vmem>>, vector<1x256xf32>
    %12 = vector.broadcast %11 : vector<1x256xf32> to vector<16x256xf32>
    %13 = arith.addf %10, %12 : vector<16x256xf32>
    %cst_11 = arith.constant 0.000000e+00 : f32
    %14 = vector.broadcast %cst_11 : f32 to vector<16x256xf32>
    %15 = arith.maximumf %13, %14 : vector<16x256xf32>
    %16 = arith.truncf %15 : vector<16x256xf32> to vector<16x256xbf16>
    %c0_12 = arith.constant 0 : index
    %c0_13 = arith.constant 0 : index
    %17 = vector.load %arg6[%c0_12, %c0_13] : memref<256x128xbf16, #tpu.memory_space<vmem>>, vector<256x128xbf16>
    %cst_14 = arith.constant dense<0.000000e+00> : vector<16x128xf32>
    %18 = tpu.matmul %16, %17, %cst_14 {dimension_numbers = #tpu.dot_dimension_numbers<[1], [0], [0], [1], [0, 0, 1, 1], [], []>} : vector<16x256xbf16>, vector<256x128xbf16>, vector<16x128xf32> -> vector<16x128xf32>
    %c0_15 = arith.constant 0 : index
    %c0_16 = arith.constant 0 : index
    %19 = vector.load %arg7[%c0_15, %c0_16] : memref<1x128xf32, #tpu.memory_space<vmem>>, vector<1x128xf32>
    %20 = vector.broadcast %19 : vector<1x128xf32> to vector<16x128xf32>
    %21 = arith.addf %18, %20 : vector<16x128xf32>
    %cst_17 = arith.constant 0.000000e+00 : f32
    %22 = vector.broadcast %cst_17 : f32 to vector<16x128xf32>
    %23 = arith.maximumf %21, %22 : vector<16x128xf32>
    %24 = arith.truncf %23 : vector<16x128xf32> to vector<16x128xbf16>
    %c0_18 = arith.constant 0 : index
    %c0_19 = arith.constant 0 : index
    %25 = vector.load %arg8[%c0_18, %c0_19] : memref<128x64xbf16, #tpu.memory_space<vmem>>, vector<128x64xbf16>
    %cst_20 = arith.constant dense<0.000000e+00> : vector<16x64xf32>
    %26 = tpu.matmul %24, %25, %cst_20 {dimension_numbers = #tpu.dot_dimension_numbers<[1], [0], [0], [1], [0, 0, 1, 1], [], []>} : vector<16x128xbf16>, vector<128x64xbf16>, vector<16x64xf32> -> vector<16x64xf32>
    %c0_21 = arith.constant 0 : index
    %c0_22 = arith.constant 0 : index
    %27 = vector.load %arg9[%c0_21, %c0_22] : memref<1x64xf32, #tpu.memory_space<vmem>>, vector<1x64xf32>
    %28 = vector.broadcast %27 : vector<1x64xf32> to vector<16x64xf32>
    %29 = arith.addf %26, %28 : vector<16x64xf32>
    %cst_23 = arith.constant 0.000000e+00 : f32
    %30 = vector.broadcast %cst_23 : f32 to vector<16x64xf32>
    %31 = arith.maximumf %29, %30 : vector<16x64xf32>
    %32 = arith.truncf %31 : vector<16x64xf32> to vector<16x64xbf16>
    %c0_24 = arith.constant 0 : index
    %c0_25 = arith.constant 0 : index
    %33 = vector.load %arg10[%c0_24, %c0_25] : memref<64x128xbf16, #tpu.memory_space<vmem>>, vector<64x128xbf16>
    %cst_26 = arith.constant dense<0.000000e+00> : vector<16x128xf32>
    %34 = tpu.matmul %32, %33, %cst_26 {dimension_numbers = #tpu.dot_dimension_numbers<[1], [0], [0], [1], [0, 0, 1, 1], [], []>} : vector<16x64xbf16>, vector<64x128xbf16>, vector<16x128xf32> -> vector<16x128xf32>
    %c0_27 = arith.constant 0 : index
    %c0_28 = arith.constant 0 : index
    %35 = vector.load %arg11[%c0_27, %c0_28] : memref<1x128xf32, #tpu.memory_space<vmem>>, vector<1x128xf32>
    %36 = vector.broadcast %35 : vector<1x128xf32> to vector<16x128xf32>
    %37 = arith.addf %34, %36 : vector<16x128xf32>
    %c0_29 = arith.constant 0 : index
    %c0_30 = arith.constant 0 : index
    %38 = vector.load %arg12[%c0_29, %c0_30] : memref<16x128xf32, #tpu.memory_space<vmem>>, vector<16x128xf32>
    tpu.vector_store %arg12[%c0_29, %c0_30], %37 {strides = array<i32>} : memref<16x128xf32, #tpu.memory_space<vmem>>, vector<16x128xf32>,
    return
  }
  func.func @transform_0(%arg0: i32) -> (i32, i32) {
    %c0_i32 = arith.constant 0 : i32
    %c0_i32_0 = arith.constant 0 : i32
    return %arg0, %c0_i32 : i32, i32
  }
  func.func @transform_1(%arg0: i32) -> (i32, i32) {
    %c0_i32 = arith.constant 0 : i32
    %c0_i32_0 = arith.constant 0 : i32
    %c0_i32_1 = arith.constant 0 : i32
    return %c0_i32, %c0_i32_0 : i32, i32
  }
  func.func @transform_2(%arg0: i32) -> (i32, i32) {
    %c0_i32 = arith.constant 0 : i32
    %c0_i32_0 = arith.constant 0 : i32
    %c0_i32_1 = arith.constant 0 : i32
    return %c0_i32, %c0_i32_0 : i32, i32
  }
  func.func @transform_3(%arg0: i32) -> (i32, i32) {
    %c0_i32 = arith.constant 0 : i32
    %c0_i32_0 = arith.constant 0 : i32
    %c0_i32_1 = arith.constant 0 : i32
    return %c0_i32, %c0_i32_0 : i32, i32
  }
  func.func @transform_4(%arg0: i32) -> (i32, i32) {
    %c0_i32 = arith.constant 0 : i32
    %c0_i32_0 = arith.constant 0 : i32
    %c0_i32_1 = arith.constant 0 : i32
    return %c0_i32, %c0_i32_0 : i32, i32
  }
  func.func @transform_5(%arg0: i32) -> (i32, i32) {
    %c0_i32 = arith.constant 0 : i32
    %c0_i32_0 = arith.constant 0 : i32
    %c0_i32_1 = arith.constant 0 : i32
    return %c0_i32, %c0_i32_0 : i32, i32
  }
  func.func @transform_6(%arg0: i32) -> (i32, i32) {
    %c0_i32 = arith.constant 0 : i32
    %c0_i32_0 = arith.constant 0 : i32
    %c0_i32_1 = arith.constant 0 : i32
    return %c0_i32, %c0_i32_0 : i32, i32
  }
  func.func @transform_7(%arg0: i32) -> (i32, i32) {
    %c0_i32 = arith.constant 0 : i32
    %c0_i32_0 = arith.constant 0 : i32
    %c0_i32_1 = arith.constant 0 : i32
    return %c0_i32, %c0_i32_0 : i32, i32
  }
  func.func @transform_8(%arg0: i32) -> (i32, i32) {
    %c0_i32 = arith.constant 0 : i32
    %c0_i32_0 = arith.constant 0 : i32
    %c0_i32_1 = arith.constant 0 : i32
    return %c0_i32, %c0_i32_0 : i32, i32
  }
  func.func @transform_9(%arg0: i32) -> (i32, i32) {
    %c0_i32 = arith.constant 0 : i32
    %c0_i32_0 = arith.constant 0 : i32
    %c0_i32_1 = arith.constant 0 : i32
    return %c0_i32, %c0_i32_0 : i32, i32
  }
  func.func @transform_10(%arg0: i32) -> (i32, i32) {
    %c0_i32 = arith.constant 0 : i32
    %c0_i32_0 = arith.constant 0 : i32
    %c0_i32_1 = arith.constant 0 : i32
    return %c0_i32, %c0_i32_0 : i32, i32
  }
  func.func @transform_11(%arg0: i32) -> (i32, i32) {
    %c0_i32 = arith.constant 0 : i32
    %c0_i32_0 = arith.constant 0 : i32
    return %arg0, %c0_i32 : i32, i32
  }
}

</mosaic_0001>

<bundles_post_ra>
// kernel: tpu_custom_call.1
= control target key start
LH: loop header
LB: loop body
LE: loop exit
PB: predicated region body
PF: predicated region fallthrough
CT: control target
= control target key end

     0   :  { %16 = vsyncpa [#allocation3], 0  ;;  %s4388_s0 = inlined_call_operand.vmem [shape: bf16[16,784], index: 0, kind: input, shape index: {}]   ;;  %s4389_s1 = inlined_call_operand.hbm [shape: bf16[784,512], index: 1, kind: input, shape index: {}]   ;;  %s4390_s2 = inlined_call_operand.vmem [shape: f32[1,512], index: 2, kind: input, shape index: {}]   ;;  %s4391_s3 = inlined_call_operand.hbm [shape: bf16[512,256], index: 3, kind: input, shape index: {}]   ;;  %s4392_s4 = inlined_call_operand.vmem [shape: f32[1,256], index: 4, kind: input, shape index: {}]   ;;  %s4393_s5 = inlined_call_operand.hbm [shape: bf16[256,128], index: 5, kind: input, shape index: {}]   ;;  %s4394_s6 = inlined_call_operand.vmem [shape: f32[1,128], index: 6, kind: input, shape index: {}]   ;;  %s4395_s7 = inlined_call_operand.vmem [shape: bf16[128,64], index: 7, kind: input, shape index: {}]   ;;  %s4396_s8 = inlined_call_operand.vmem [shape: f32[1,64], index: 8, kind: input, shape index: {}]   ;;  %s4397_s9 = inlined_call_operand.vmem [shape: bf16[64,128], index: 9, kind: input, shape index: {}]   ;;  %s4398_s10 = inlined_call_operand.vmem [shape: f32[1,128], index: 10, kind: input, shape index: {}]   ;;  %s4399_s11 = inlined_call_operand.hbm [shape: f32[16,128], index: 11, kind: output, shape index: {}]  }
   0x1   :  { %17 = vsyncpa [#allocation6], 0  ;;  %s40_s19 = sshll.u32 %s4391_s3, 4  ;;  %s41_s19 = int_to_ptr.hbm [resolvable:$true] %s40_s19 }
   0x2   :  { %18 = vsyncpa [#allocation4], 0  ;;  %s4151_s20 = smov [#allocation5]   ;;  %s25_s24 = sshll.u32 %s4389_s1, 4  ;;  %s26_s24 = int_to_ptr.hbm [resolvable:$true] %s25_s24 }
   0x3   :  { %s42_s21 = sshll.u32 %s4151_s20, 4  ;;  %s4152_s25 = smov 128   ;;  %s43_s21 = int_to_ptr.vmem [resolvable:$true] %s42_s21 }
   0x4   :  { %s4153_s26 = smov 8   ;;  %s4154_s27 = smov [#allocation2]  }
   0x5   :  { %48 = dma.hbm_to_vmem [thread:$0]  %s41_s19, 8192, %s43_s21, [#allocation6], %s4152_s25, %s4152_s25, %s4153_s26  }
   0x6   :  { %s27_s28 = sshll.u32 %s4154_s27, 4  ;;  %s4155_s3 = smov 256   ;;  %s28_s28 = int_to_ptr.vmem [resolvable:$true] %s27_s28 }
   0x7   :  { %s4156_s29 = smov 16   ;;  %s55_s13 = sshll.u32 %s4393_s5, 4  ;;  %s56_s13 = int_to_ptr.hbm [resolvable:$true] %s55_s13 }
   0x8   :  { %33 = dma.hbm_to_vmem [thread:$0]  %s26_s24, 25088, %s28_s28, [#allocation3], %s4155_s3, %s4155_s3, %s4156_s29  }
   0x9   :  { %s4157_s14 = smov [#allocation7]   ;;  %s4158_s15 = smov 64  }
   0xa   :  { %s57_s1 = sshll.u32 %s4157_s14, 4  ;;  %s4159_s16 = smov 4   ;;  %s58_s1 = int_to_ptr.vmem [resolvable:$true] %s57_s1 }
   0xb   :  { %63 = dma.hbm_to_vmem [thread:$0]  %s56_s13, 2048, %s58_s1, [#allocation6], %s4158_s15, %s4158_s15, %s4159_s16  }
   0xc   :  { %4145 = dma.done.wait [#allocation3], 25088  }
   0xd   :  { %4146 = vsyncadd [#allocation3], 4294942208 }
   0xe   :  { %4147 = dma.done.wait [#allocation6], 10240  }
   0xf   :  { %4148 = vsyncadd [#allocation6], 4294957056  ;;  %v2698_v0 = vld [vmem:[#allocation2 + $0xe0] sm:$0xf]  ;;  %v3778_v1 = vld [vmem:[#allocation2 + $0xec] sm:$0xf0] }
  0x10   :  { %v2826_v2 = vld [vmem:[#allocation2 + $0x1e0] sm:$0xf]  ;;  %v2699_v3 = vor.u32 %v3778_v1, %v2698_v0  ;;  %v3810_v4 = vld [vmem:[#allocation2 + $0x1ec] sm:$0xf0]  ;;  %vm1316_vm0 = vcmask 130048   ;;  %vm2516_vm1 = vcmask 523264  }
  0x11   :  { %v2954_v5 = vld [vmem:[#allocation2 + $0x2e0] sm:$0xf]  ;;  %v3842_v6 = vld [vmem:[#allocation2 + $0x2ec] sm:$0xf0]  ;;  %v2827_v7 = vor.u32 %v3810_v4, %v2826_v2 }
  0x12   :  { %v2955_v8 = vor.u32 %v3842_v6, %v2954_v5  ;;  %v3082_v9 = vld [vmem:[#allocation2 + $0x3e0] sm:$0xf]  ;;  %v3874_v10 = vld [vmem:[#allocation2 + $0x3ec] sm:$0xf0]  ;;  %1320 = vmatpush.bf16.msra.mxu0 %v2699_v3 }
  0x13   :  { %v2682_v11 = vld [vmem:[#allocation2 + $0xc0] sm:$0xf]  ;;  %v3083_v12 = vor.u32 %v3874_v10, %v3082_v9  ;;  %v3774_v13 = vld [vmem:[#allocation2 + $0xcc] sm:$0xf0]  ;;  %1334 = vmatpush.bf16.msra.mxu1 %v2827_v7 }
  0x14   :  { %v2810_v14 = vld [vmem:[#allocation2 + $0x1c0] sm:$0xf]  ;;  %v3806_v15 = vld [vmem:[#allocation2 + $0x1cc] sm:$0xf0]  ;;  %1348 = vmatpush.bf16.msra.mxu2 %v2955_v8  ;;  %v2683_v16 = vor.u32 %v3774_v13, %v2682_v11 }
  0x15   :  { %v2811_v17 = vor.u32 %v3806_v15, %v2810_v14  ;;  %v2938_v18 = vld [vmem:[#allocation2 + $0x2c0] sm:$0xf]  ;;  %v3838_v19 = vld [vmem:[#allocation2 + $0x2cc] sm:$0xf0]  ;;  %1362 = vmatpush.bf16.msra.mxu3 %v3083_v12 }
  0x16   :  { %v3066_v20 = vld [vmem:[#allocation2 + $0x3c0] sm:$0xf]  ;;  %v2939_v21 = vor.u32 %v3838_v19, %v2938_v18  ;;  %v3870_v22 = vld [vmem:[#allocation2 + $0x3cc] sm:$0xf0]  ;;  %1321 = vmatpush.bf16.msra.mxu0 %v2683_v16 }
  0x17   :  { %v2666_v23 = vld [vmem:[#allocation2 + $0xa0] sm:$0xf]  ;;  %v3770_v24 = vld [vmem:[#allocation2 + $0xac] sm:$0xf0]  ;;  %v3067_v25 = vor.u32 %v3870_v22, %v3066_v20  ;;  %1335 = vmatpush.bf16.msra.mxu1 %v2811_v17 }
  0x18   :  { %v2794_v26 = vld [vmem:[#allocation2 + $0x1a0] sm:$0xf]  ;;  %v3802_v27 = vld [vmem:[#allocation2 + $0x1ac] sm:$0xf0]  ;;  %v2667_v29 = vor.u32 %v3770_v24, %v2666_v23  ;;  %1349 = vmatpush.bf16.msra.mxu2 %v2939_v21 }
  0x19   :  { %v2922_v28 = vld [vmem:[#allocation2 + $0x2a0] sm:$0xf]  ;;  %v3834_v30 = vld [vmem:[#allocation2 + $0x2ac] sm:$0xf0]  ;;  %v2795_v33 = vor.u32 %v3802_v27, %v2794_v26  ;;  %1363 = vmatpush.bf16.msra.mxu3 %v3067_v25 }
  0x1a   :  { %v3050_v31 = vld [vmem:[#allocation2 + $0x3a0] sm:$0xf]  ;;  %v3866_v32 = vld [vmem:[#allocation2 + $0x3ac] sm:$0xf0]  ;;  %v2923_v34 = vor.u32 %v3834_v30, %v2922_v28  ;;  %1322 = vmatpush.bf16.msra.mxu0 %v2667_v29 }
  0x1b   :  { %v2650_v35 = vld [vmem:[#allocation2 + $0x80] sm:$0xf]  ;;  %v3766_v36 = vld [vmem:[#allocation2 + $0x8c] sm:$0xf0]  ;;  %v3051_v38 = vor.u32 %v3866_v32, %v3050_v31  ;;  %1336 = vmatpush.bf16.msra.mxu1 %v2795_v33  ;;  %v3776_v32 = vld [vmem:[#allocation2 + $0xe4] sm:$0xf] }
  0x1c   :  { %v2778_v37 = vld [vmem:[#allocation2 + $0x180] sm:$0xf]  ;;  %v3798_v39 = vld [vmem:[#allocation2 + $0x18c] sm:$0xf0]  ;;  %v2651_v44 = vor.u32 %v3766_v36, %v2650_v35  ;;  %1350 = vmatpush.bf16.msra.mxu2 %v2923_v34  ;;  %v2700_v33 = vld [vmem:[#allocation2 + $0xf0] sm:$0xf0] }
  0x1d   :  { %v2906_v40 = vld [vmem:[#allocation2 + $0x280] sm:$0xf]  ;;  %v3830_v41 = vld [vmem:[#allocation2 + $0x28c] sm:$0xf0]  ;;  %v2779_v45 = vor.u32 %v3798_v39, %v2778_v37  ;;  %1364 = vmatpush.bf16.msra.mxu3 %v3051_v38  ;;  %v2566_v34 = vld [vmem:[%s4388_s0 + $0x8] sm:$0xf] }
  0x1e   :  { %v3034_v42 = vld [vmem:[#allocation2 + $0x380] sm:$0xf]  ;;  %v3862_v43 = vld [vmem:[#allocation2 + $0x38c] sm:$0xf0]  ;;  %v2907_v46 = vor.u32 %v3830_v41, %v2906_v40  ;;  %1323 = vmatpush.bf16.msra.mxu0 %v2651_v44  ;;  %v3745_v36 = vld [vmem:[%s4388_s0 + $0x20] sm:$0xf0] }
  0x1f   :  { %v2634_v47 = vld [vmem:[#allocation2 + $0x60] sm:$0xf]  ;;  %v3762_v48 = vld [vmem:[#allocation2 + $0x6c] sm:$0xf0]  ;;  %v3035_v50 = vor.u32 %v3862_v43, %v3034_v42  ;;  %1337 = vmatpush.bf16.msra.mxu1 %v2779_v45  ;;  %v3808_v41 = vld [vmem:[#allocation2 + $0x1e4] sm:$0xf] }
  0x20   :  { %v2762_v49 = vld [vmem:[#allocation2 + $0x160] sm:$0xf]  ;;  %v3794_v51 = vld [vmem:[#allocation2 + $0x16c] sm:$0xf0]  ;;  %v2635_v56 = vor.u32 %v3762_v48, %v2634_v47  ;;  %1351 = vmatpush.bf16.msra.mxu2 %v2907_v46  ;;  %v3744_v43 = vld [vmem:[%s4388_s0 + $0x18] sm:$0xf0] }
  0x21   :  { %v2890_v52 = vld [vmem:[#allocation2 + $0x260] sm:$0xf]  ;;  %v3826_v53 = vld [vmem:[#allocation2 + $0x26c] sm:$0xf0]  ;;  %v2763_v57 = vor.u32 %v3794_v51, %v2762_v49  ;;  %1365 = vmatpush.bf16.msra.mxu3 %v3035_v50  ;;  %v2828_v46 = vld [vmem:[#allocation2 + $0x1f0] sm:$0xf0]  ;;  %v2703_v50 = vor.u32 %v3776_v32, %v2700_v33 }
  0x22   :  { %v3018_v54 = vld [vmem:[#allocation2 + $0x360] sm:$0xf]  ;;  %v3858_v55 = vld [vmem:[#allocation2 + $0x36c] sm:$0xf0]  ;;  %v2891_v58 = vor.u32 %v3826_v53, %v2890_v52  ;;  %1324 = vmatpush.bf16.msra.mxu0 %v2635_v56  ;;  %v3742_v47 = vld [vmem:[%s4388_s0 + $0xc] sm:$0xf] }
  0x23   :  { %v2618_v59 = vld [vmem:[#allocation2 + $0x40] sm:$0xf]  ;;  %v3758_v60 = vld [vmem:[#allocation2 + $0x4c] sm:$0xf0]  ;;  %v3019_v62 = vor.u32 %v3858_v55, %v3018_v54  ;;  %1338 = vmatpush.bf16.msra.mxu1 %v2763_v57  ;;  %v2568_v48 = vld [vmem:[%s4388_s0 + $0x24] sm:$0xf0]  ;;  %v4251_v54 = vor.u32 %v3745_v36, %v2566_v34 }
  0x24   :  { %v2746_v61 = vld [vmem:[#allocation2 + $0x140] sm:$0xf]  ;;  %v3790_v63 = vld [vmem:[#allocation2 + $0x14c] sm:$0xf0]  ;;  %v2619_v4 = vor.u32 %v3758_v60, %v2618_v59  ;;  %1352 = vmatpush.bf16.msra.mxu2 %v2891_v58  ;;  %v3772_v57 = vld [vmem:[#allocation2 + $0xc4] sm:$0xf]  ;;  %v4255_v60 = vor.u32 %v3742_v47, %v2568_v48 }
  0x25   :  { %v2874_v0 = vld [vmem:[#allocation2 + $0x240] sm:$0xf]  ;;  %v3822_v1 = vld [vmem:[#allocation2 + $0x24c] sm:$0xf0]  ;;  %v2747_v6 = vor.u32 %v3790_v63, %v2746_v61  ;;  %1366 = vmatpush.bf16.msra.mxu3 %v3019_v62  ;;  %v2684_v58 = vld [vmem:[#allocation2 + $0xd0] sm:$0xf0]  ;;  %v2831_v63 = vor.u32 %v3808_v41, %v2828_v46 }
  0x26   :  { %v3002_v2 = vld [vmem:[#allocation2 + $0x340] sm:$0xf]  ;;  %v3854_v3 = vld [vmem:[#allocation2 + $0x34c] sm:$0xf0]  ;;  %v2875_v7 = vor.u32 %v3822_v1, %v2874_v0  ;;  %1325 = vmatpush.bf16.msra.mxu0 %v2619_v4  ;;  %v3741_v61 = vld [vmem:[%s4388_s0 + $0x4] sm:$0xf]  ;;  %v2687_v4 = vor.u32 %v3772_v57, %v2684_v58 }
  0x27   :  { %v2602_v5 = vld [vmem:[#allocation2 + $0x20] sm:$0xf]  ;;  %v3754_v8 = vld [vmem:[#allocation2 + $0x2c] sm:$0xf0]  ;;  %v3003_v11 = vor.u32 %v3854_v3, %v3002_v2  ;;  %1339 = vmatpush.bf16.msra.mxu1 %v2747_v6  ;;  %v3804_v1 = vld [vmem:[#allocation2 + $0x1c4] sm:$0xf] }
  0x28   :  { %v2730_v9 = vld [vmem:[#allocation2 + $0x120] sm:$0xf]  ;;  %v3786_v10 = vld [vmem:[#allocation2 + $0x12c] sm:$0xf0]  ;;  %v2603_v18 = vor.u32 %v3754_v8, %v2602_v5  ;;  %1353 = vmatpush.bf16.msra.mxu2 %v2875_v7  ;;  %v2812_v2 = vld [vmem:[#allocation2 + $0x1d0] sm:$0xf0] }
  0x29   :  { %v2858_v12 = vld [vmem:[#allocation2 + $0x220] sm:$0xf]  ;;  %v3818_v13 = vld [vmem:[#allocation2 + $0x22c] sm:$0xf0]  ;;  %v2731_v23 = vor.u32 %v3786_v10, %v2730_v9  ;;  %1367 = vmatpush.bf16.msra.mxu3 %v3003_v11  ;;  %v3768_v10 = vld [vmem:[#allocation2 + $0xa4] sm:$0xf] }
  0x2a   :  { %v2986_v14 = vld [vmem:[#allocation2 + $0x320] sm:$0xf]  ;;  %v3850_v15 = vld [vmem:[#allocation2 + $0x32c] sm:$0xf0]  ;;  %v2859_v24 = vor.u32 %v3818_v13, %v2858_v12  ;;  %1326 = vmatpush.bf16.msra.mxu0 %v2603_v18  ;;  %v2668_v11 = vld [vmem:[#allocation2 + $0xb0] sm:$0xf0]  ;;  %v2815_v12 = vor.u32 %v3804_v1, %v2812_v2 }
  0x2b   :  { %v2586_v16 = vld [vmem:[#allocation2] sm:$0xf]  ;;  %v3750_v17 = vld [vmem:[#allocation2 + $0xc] sm:$0xf0]  ;;  %v2987_v28 = vor.u32 %v3850_v15, %v2986_v14  ;;  %1340 = vmatpush.bf16.msra.mxu1 %v2731_v23  ;;  %v3800_v14 = vld [vmem:[#allocation2 + $0x1a4] sm:$0xf] }
  0x2c   :  { %v2714_v19 = vld [vmem:[#allocation2 + $0x100] sm:$0xf]  ;;  %v3782_v20 = vld [vmem:[#allocation2 + $0x10c] sm:$0xf0]  ;;  %v2587_v35 = vor.u32 %v3750_v17, %v2586_v16  ;;  %1354 = vmatpush.bf16.msra.mxu2 %v2859_v24  ;;  %v2796_v15 = vld [vmem:[#allocation2 + $0x1b0] sm:$0xf0]  ;;  %v2671_v17 = vor.u32 %v3768_v10, %v2668_v11 }
  0x2d   :  { %v2842_v21 = vld [vmem:[#allocation2 + $0x200] sm:$0xf]  ;;  %v3814_v22 = vld [vmem:[#allocation2 + $0x20c] sm:$0xf0]  ;;  %v2715_v39 = vor.u32 %v3782_v20, %v2714_v19  ;;  %1368 = vmatpush.bf16.msra.mxu3 %v2987_v28  ;;  %v2652_v23 = vld [vmem:[#allocation2 + $0x90] sm:$0xf0]  ;;  %v2799_v24 = vor.u32 %v3800_v14, %v2796_v15 }
  0x2e   :  { %v2970_v25 = vld [vmem:[#allocation2 + $0x300] sm:$0xf]  ;;  %v3846_v26 = vld [vmem:[#allocation2 + $0x30c] sm:$0xf0]  ;;  %v2843_v40 = vor.u32 %v3814_v22, %v2842_v21  ;;  %1327 = vmatpush.bf16.msra.mxu0 %v2587_v35  ;;  %v3764_v22 = vld [vmem:[#allocation2 + $0x84] sm:$0xf] }
  0x2f   :  { %v3210_v27 = vld [vmem:[#allocation2 + $0x4e0] sm:$0xf]  ;;  %v3906_v29 = vld [vmem:[#allocation2 + $0x4ec] sm:$0xf0]  ;;  %v2971_v44 = vor.u32 %v3846_v26, %v2970_v25  ;;  %1341 = vmatpush.bf16.msra.mxu1 %v2715_v39  ;;  %v3796_v26 = vld [vmem:[#allocation2 + $0x184] sm:$0xf] }
  0x30   :  { %v3338_v30 = vld [vmem:[#allocation2 + $0x5e0] sm:$0xf]  ;;  %v3938_v31 = vld [vmem:[#allocation2 + $0x5ec] sm:$0xf0]  ;;  %v3211_v45 = vor.u32 %v3906_v29, %v3210_v27  ;;  %1355 = vmatpush.bf16.msra.mxu2 %v2843_v40  ;;  %v2780_v27 = vld [vmem:[#allocation2 + $0x190] sm:$0xf0]  ;;  %v2655_v29 = vor.u32 %v3764_v22, %v2652_v23 }
  0x31   :  { %v3354_v37 = vld [vmem:[#allocation2 + $0x600] sm:$0xf]  ;;  %v3942_v38 = vld [vmem:[#allocation2 + $0x60c] sm:$0xf0]  ;;  %v3339_v49 = vor.u32 %v3938_v31, %v3338_v30  ;;  %1369 = vmatpush.bf16.msra.mxu3 %v2971_v44  ;;  %v3760_v34 = vld [vmem:[#allocation2 + $0x64] sm:$0xf] }
  0x32   :  { %v2558_v42 = vld [vmem:[%s4388_s0] sm:$0xf]  ;;  %v3902_v52 = vld [vmem:[#allocation2 + $0x4cc] sm:$0xf0]  ;;  %v3355_v59 = vor.u32 %v3942_v38, %v3354_v37  ;;  %1376 = vmatpush.bf16.msrb.mxu0 %v3211_v45  ;;  %v2636_v35 = vld [vmem:[#allocation2 + $0x70] sm:$0xf0]  ;;  %v2783_v38 = vor.u32 %v3796_v26, %v2780_v27 }
  0x33   :  { %v3194_v51 = vld [vmem:[#allocation2 + $0x4c0] sm:$0xf]  ;;  %v4253_v55 = vor.u32 %v3744_v43, %v2558_v42  ;;  %v3934_v56 = vld [vmem:[#allocation2 + $0x5cc] sm:$0xf0]  ;;  %1390 = vmatpush.bf16.msrb.mxu1 %v3339_v49  ;;  %1356 = vmatmul.bf16.vlgmr.msra.gmra.mxu2 %v4251_v54  ;;  %v2582_v36 = vld [vmem:[%s4388_s0 + $0x18] sm:$0xf]  ;;  %v2639_v43 = vor.u32 %v3760_v34, %v2636_v35 }
  0x34   :  { %v3322_v53 = vld [vmem:[#allocation2 + $0x5c0] sm:$0xf]  ;;  %v3195_v0 = vor.u32 %v3902_v52, %v3194_v51  ;;  %v3898_v6 = vld [vmem:[#allocation2 + $0x4ac] sm:$0xf0]  ;;  %1411 = vmatpush.bf16.msrb.mxu2 %v3355_v59  ;;  %1370 = vmatmul.bf16.vlgmr.msra.gmra.mxu3 %v4255_v60  ;;  %v3747_v37 = vld [vmem:[%s4388_s0 + $0x30] sm:$0xf0] }
  0x35   :  { %v2560_v62 = vld [vmem:[%s4388_s0 + $0x1c] sm:$0xf0]  ;;  %1418 = vmatpush.bf16.msrb.mxu3 %v2703_v50  ;;  %v3323_v3 = vor.u32 %v3934_v56, %v3322_v53  ;;  %1328 = vmatmul.bf16.vlgmr.msra.gmra.mxu0 %v4253_v55  ;;  %v3930_v9 = vld [vmem:[#allocation2 + $0x5ac] sm:$0xf0]  ;;  %v3792_v40 = vld [vmem:[#allocation2 + $0x164] sm:$0xf]  ;;  %v4275_v50 = vor.u32 %v3747_v37, %v2582_v36 }
  0x36   :  { %v3178_v5 = vld [vmem:[#allocation2 + $0x4a0] sm:$0xf]  ;;  %v4265_v8 = vor.u32 %v3741_v61, %v2560_v62  ;;  %1377 = vmatpush.bf16.msrb.mxu0 %v3195_v0  ;;  %v3894_v19 = vld [vmem:[#allocation2 + $0x48c] sm:$0xf0]  ;;  %v2764_v41 = vld [vmem:[#allocation2 + $0x170] sm:$0xf0] }
  0x37   :  { %v3306_v7 = vld [vmem:[#allocation2 + $0x5a0] sm:$0xf]  ;;  %v3179_v13 = vor.u32 %v3898_v6, %v3178_v5  ;;  %1391 = vmatpush.bf16.msrb.mxu1 %v3323_v3  ;;  %v3926_v21 = vld [vmem:[#allocation2 + $0x58c] sm:$0xf0]  ;;  %v3756_v48 = vld [vmem:[#allocation2 + $0x44] sm:$0xf]  ;;  %v2767_v51 = vor.u32 %v3792_v40, %v2764_v41 }
  0x38   :  { %1432 = vmatpush.bf16.msra.mxu2 %v2831_v63  ;;  %v3307_v16 = vor.u32 %v3930_v9, %v3306_v7  ;;  %v3162_v18 = vld [vmem:[#allocation2 + $0x480] sm:$0xf]  ;;  %1342 = vmatmul.bf16.vlgmr.msra.gmra.mxu1 %v4265_v8  ;;  %v3890_v31 = vld [vmem:[#allocation2 + $0x46c] sm:$0xf0]  ;;  %v2620_v49 = vld [vmem:[#allocation2 + $0x50] sm:$0xf0] }
  0x39   :  { %1419 = vmatpush.bf16.msrb.mxu3 %v2687_v4  ;;  %v3290_v20 = vld [vmem:[#allocation2 + $0x580] sm:$0xf]  ;;  %v3163_v25 = vor.u32 %v3894_v19, %v3162_v18  ;;  %v3922_v33 = vld [vmem:[#allocation2 + $0x56c] sm:$0xf0]  ;;  %v3788_v53 = vld [vmem:[#allocation2 + $0x144] sm:$0xf]  ;;  %v2623_v58 = vor.u32 %v3756_v48, %v2620_v49 }
  0x3a   :  { %1378 = vmatpush.bf16.msrb.mxu0 %v3179_v13  ;;  %v3291_v28 = vor.u32 %v3926_v21, %v3290_v20  ;;  %v3146_v30 = vld [vmem:[#allocation2 + $0x460] sm:$0xf]  ;;  %v3886_v45 = vld [vmem:[#allocation2 + $0x44c] sm:$0xf0]  ;;  %v2748_v56 = vld [vmem:[#allocation2 + $0x150] sm:$0xf0] }
  0x3b   :  { %1392 = vmatpush.bf16.msrb.mxu1 %v3307_v16  ;;  %v3274_v32 = vld [vmem:[#allocation2 + $0x560] sm:$0xf]  ;;  %v3147_v39 = vor.u32 %v3890_v31, %v3146_v30  ;;  %v3918_v47 = vld [vmem:[#allocation2 + $0x54c] sm:$0xf0]  ;;  %v3752_v0 = vld [vmem:[#allocation2 + $0x24] sm:$0xf]  ;;  %v2751_v4 = vor.u32 %v3788_v53, %v2748_v56 }
  0x3c   :  { %1433 = vmatpush.bf16.msra.mxu2 %v2815_v12  ;;  %v3275_v42 = vor.u32 %v3922_v33, %v3274_v32  ;;  %v3130_v44 = vld [vmem:[#allocation2 + $0x440] sm:$0xf]  ;;  %v3882_v61 = vld [vmem:[#allocation2 + $0x42c] sm:$0xf0]  ;;  %v2604_v1 = vld [vmem:[#allocation2 + $0x30] sm:$0xf0] }
  0x3d   :  { %1420 = vmatpush.bf16.msrb.mxu3 %v2671_v17  ;;  %v3258_v46 = vld [vmem:[#allocation2 + $0x540] sm:$0xf]  ;;  %v3131_v52 = vor.u32 %v3886_v45, %v3130_v44  ;;  %v3914_v63 = vld [vmem:[#allocation2 + $0x52c] sm:$0xf0]  ;;  %v3784_v2 = vld [vmem:[#allocation2 + $0x124] sm:$0xf]  ;;  %v2607_v11 = vor.u32 %v3752_v0, %v2604_v1 }
  0x3e   :  { %1379 = vmatpush.bf16.msrb.mxu0 %v3163_v25  ;;  %v3259_v57 = vor.u32 %v3918_v47, %v3258_v46  ;;  %v3114_v59 = vld [vmem:[#allocation2 + $0x420] sm:$0xf]  ;;  %v2732_v3 = vld [vmem:[#allocation2 + $0x130] sm:$0xf0]  ;;  %v3878_v7 = vld [vmem:[#allocation2 + $0x40c] sm:$0xf0] }
  0x3f   :  { %1393 = vmatpush.bf16.msrb.mxu1 %v3291_v28  ;;  %v3242_v62 = vld [vmem:[#allocation2 + $0x520] sm:$0xf]  ;;  %v3115_v5 = vor.u32 %v3882_v61, %v3114_v59  ;;  %v3910_v12 = vld [vmem:[#allocation2 + $0x50c] sm:$0xf0]  ;;  %v3748_v13 = vld [vmem:[#allocation2 + $0x4] sm:$0xf]  ;;  %v2735_v21 = vor.u32 %v3784_v2, %v2732_v3 }
  0x40   :  { %1434 = vmatpush.bf16.msra.mxu2 %v2799_v24  ;;  %v3098_v6 = vld [vmem:[#allocation2 + $0x400] sm:$0xf]  ;;  %v3243_v10 = vor.u32 %v3914_v63, %v3242_v62  ;;  %v2588_v14 = vld [vmem:[#allocation2 + $0x10] sm:$0xf0]  ;;  %v3840_v15 = vld [vmem:[#allocation2 + $0x2e4] sm:$0xf] }
  0x41   :  { %1421 = vmatpush.bf16.msrb.mxu3 %v2655_v29  ;;  %v3226_v9 = vld [vmem:[#allocation2 + $0x500] sm:$0xf]  ;;  %v2956_v16 = vld [vmem:[#allocation2 + $0x2f0] sm:$0xf0]  ;;  %v3872_v17 = vld [vmem:[#allocation2 + $0x3e4] sm:$0xf]  ;;  %v3099_v22 = vor.u32 %v3878_v7, %v3098_v6  ;;  %v2591_v27 = vor.u32 %v3748_v13, %v2588_v14 }
  0x42   :  { %1380 = vmatpush.bf16.msrb.mxu0 %v3147_v39  ;;  %v3084_v18 = vld [vmem:[#allocation2 + $0x3f0] sm:$0xf0]  ;;  %v3904_v19 = vld [vmem:[#allocation2 + $0x4e4] sm:$0xf]  ;;  %v2574_v23 = vld [vmem:[%s4388_s0 + $0x10] sm:$0xf]  ;;  %v3227_v26 = vor.u32 %v3910_v12, %v3226_v9  ;;  %v2959_v31 = vor.u32 %v3840_v15, %v2956_v16 }
  0x43   :  { %1394 = vmatpush.bf16.msrb.mxu1 %v3275_v42  ;;  %3368 = vmatmul.msk.bf16.vlgmr.msrb.gmra.mxu2 %vm1316_vm0, %v4275_v50  ;;  %v3212_v20 = vld [vmem:[#allocation2 + $0x4f0] sm:$0xf0]  ;;  %v3746_v24 = vld [vmem:[%s4388_s0 + $0x28] sm:$0xf0]  ;;  %v3780_v25 = vld [vmem:[#allocation2 + $0x104] sm:$0xf]  ;;  %v3087_v32 = vor.u32 %v3872_v17, %v3084_v18 }
  0x44   :  { %1435 = vmatpush.bf16.msra.mxu2 %v2783_v38  ;;  %v2716_v28 = vld [vmem:[#allocation2 + $0x110] sm:$0xf0]  ;;  %v2576_v30 = vld [vmem:[%s4388_s0 + $0x2c] sm:$0xf0]  ;;  %v3936_v33 = vld [vmem:[#allocation2 + $0x5e4] sm:$0xf]  ;;  %v3215_v36 = vor.u32 %v3904_v19, %v3212_v20  ;;  %v4291_v37 = vor.u32 %v3746_v24, %v2574_v23 }
  0x45   :  { %1422 = vmatpush.bf16.msrb.mxu3 %v2639_v43  ;;  %v3743_v29 = vld [vmem:[%s4388_s0 + $0x14] sm:$0xf]  ;;  %v3836_v35 = vld [vmem:[#allocation2 + $0x2c4] sm:$0xf]  ;;  %v2719_v41 = vor.u32 %v3780_v25, %v2716_v28 }
  0x46   :  { %1381 = vmatpush.bf16.msrb.mxu0 %v3131_v52  ;;  %v3340_v34 = vld [vmem:[#allocation2 + $0x5f0] sm:$0xf0]  ;;  %v3868_v39 = vld [vmem:[#allocation2 + $0x3c4] sm:$0xf]  ;;  %v4293_v42 = vor.u32 %v3743_v29, %v2576_v30 }
  0x47   :  { %1395 = vmatpush.bf16.msrb.mxu1 %v3259_v57  ;;  %v2940_v38 = vld [vmem:[#allocation2 + $0x2d0] sm:$0xf0]  ;;  %v3900_v43 = vld [vmem:[#allocation2 + $0x4c4] sm:$0xf]  ;;  %v3343_v45 = vor.u32 %v3936_v33, %v3340_v34 }
  0x48   :  { %1436 = vmatpush.bf16.msra.mxu2 %v2767_v51  ;;  %v3068_v40 = vld [vmem:[#allocation2 + $0x3d0] sm:$0xf0]  ;;  %v2943_v46 = vor.u32 %v3836_v35, %v2940_v38  ;;  %v3932_v48 = vld [vmem:[#allocation2 + $0x5c4] sm:$0xf] }
  0x49   :  { %1423 = vmatpush.bf16.msrb.mxu3 %v2623_v58  ;;  %v3196_v44 = vld [vmem:[#allocation2 + $0x4d0] sm:$0xf0]  ;;  %v3071_v47 = vor.u32 %v3868_v39, %v3068_v40  ;;  %v3832_v51 = vld [vmem:[#allocation2 + $0x2a4] sm:$0xf] }
  0x4a   :  { %1382 = vmatpush.bf16.msrb.mxu0 %v3115_v5  ;;  %v3324_v49 = vld [vmem:[#allocation2 + $0x5d0] sm:$0xf0]  ;;  %v3199_v52 = vor.u32 %v3900_v43, %v3196_v44  ;;  %v3864_v56 = vld [vmem:[#allocation2 + $0x3a4] sm:$0xf] }
  0x4b   :  { %1396 = vmatpush.bf16.msrb.mxu1 %v3243_v10  ;;  %v2924_v53 = vld [vmem:[#allocation2 + $0x2b0] sm:$0xf0]  ;;  %v3896_v58 = vld [vmem:[#allocation2 + $0x4a4] sm:$0xf]  ;;  %v3327_v61 = vor.u32 %v3932_v48, %v3324_v49 }
  0x4c   :  { %1437 = vmatpush.bf16.msra.mxu2 %v2751_v4  ;;  %v3052_v57 = vld [vmem:[#allocation2 + $0x3b0] sm:$0xf0]  ;;  %v2927_v62 = vor.u32 %v3832_v51, %v2924_v53  ;;  %v3928_v0 = vld [vmem:[#allocation2 + $0x5a4] sm:$0xf] }
  0x4d   :  { %1424 = vmatpush.bf16.msrb.mxu3 %v2607_v11  ;;  %v3180_v59 = vld [vmem:[#allocation2 + $0x4b0] sm:$0xf0]  ;;  %v3055_v63 = vor.u32 %v3864_v56, %v3052_v57  ;;  %v3828_v2 = vld [vmem:[#allocation2 + $0x284] sm:$0xf] }
  0x4e   :  { %1383 = vmatpush.bf16.msrb.mxu0 %v3099_v22  ;;  %v3308_v1 = vld [vmem:[#allocation2 + $0x5b0] sm:$0xf0]  ;;  %v3183_v3 = vor.u32 %v3896_v58, %v3180_v59  ;;  %v3860_v5 = vld [vmem:[#allocation2 + $0x384] sm:$0xf] }
  0x4f   :  { %1397 = vmatpush.bf16.msrb.mxu1 %v3227_v26  ;;  %v2908_v4 = vld [vmem:[#allocation2 + $0x290] sm:$0xf0]  ;;  %v3892_v7 = vld [vmem:[#allocation2 + $0x484] sm:$0xf]  ;;  %v3311_v10 = vor.u32 %v3928_v0, %v3308_v1  ;;  %v2706_v0 = vld [vmem:[#allocation2 + $0xe8] sm:$0xf] }
  0x50   :  { %1438 = vmatpush.bf16.msra.mxu2 %v2735_v21  ;;  %v3036_v6 = vld [vmem:[#allocation2 + $0x390] sm:$0xf0]  ;;  %v2911_v11 = vor.u32 %v3828_v2, %v2908_v4  ;;  %v3924_v13 = vld [vmem:[#allocation2 + $0x584] sm:$0xf]  ;;  %v3779_v1 = vld [vmem:[#allocation2 + $0xf4] sm:$0xf0] }
  0x51   :  { %1425 = vmatpush.bf16.msrb.mxu3 %v2591_v27  ;;  %1384 = vmatmul.bf16.vlgmr.msrb.gmra.mxu0 %v4291_v37  ;;  %v3164_v9 = vld [vmem:[#allocation2 + $0x490] sm:$0xf0]  ;;  %v3039_v12 = vor.u32 %v3860_v5, %v3036_v6  ;;  %v3824_v15 = vld [vmem:[#allocation2 + $0x264] sm:$0xf]  ;;  %v2834_v2 = vld [vmem:[#allocation2 + $0x1e8] sm:$0xf] }
  0x52   :  { %1446 = vmatpush.bf16.msra.mxu0 %v2959_v31  ;;  %1398 = vmatmul.bf16.vlgmr.msrb.gmra.mxu1 %v4293_v42  ;;  %v3292_v14 = vld [vmem:[#allocation2 + $0x590] sm:$0xf0]  ;;  %v3167_v16 = vor.u32 %v3892_v7, %v3164_v9  ;;  %v3856_v18 = vld [vmem:[#allocation2 + $0x364] sm:$0xf]  ;;  %v3811_v4 = vld [vmem:[#allocation2 + $0x1f4] sm:$0xf0] }
  0x53   :  { %1460 = vmatpush.bf16.msra.mxu1 %v3087_v32  ;;  %v2892_v17 = vld [vmem:[#allocation2 + $0x270] sm:$0xf0]  ;;  %v3888_v20 = vld [vmem:[#allocation2 + $0x464] sm:$0xf]  ;;  %v3295_v22 = vor.u32 %v3924_v13, %v3292_v14  ;;  %v2707_v13 = vor.u32 %v3779_v1, %v2706_v0  ;;  %v2962_v14 = vld [vmem:[#allocation2 + $0x2e8] sm:$0xf] }
  0x54   :  { %1439 = vmatpush.bf16.msra.mxu2 %v2719_v41  ;;  %1426 = vmatmul.bf16.vlgmr.msrb.gmra.mxu3 %v4253_v55  ;;  %v3020_v19 = vld [vmem:[#allocation2 + $0x370] sm:$0xf0]  ;;  %v2895_v23 = vor.u32 %v3824_v15, %v2892_v17  ;;  %v3920_v25 = vld [vmem:[#allocation2 + $0x564] sm:$0xf]  ;;  %v3843_v15 = vld [vmem:[#allocation2 + $0x2f4] sm:$0xf0]  ;;  %v2835_v17 = vor.u32 %v3811_v4, %v2834_v2 }
  0x55   :  { %1474 = vmatpush.bf16.msra.mxu3 %v3215_v36  ;;  %v3148_v21 = vld [vmem:[#allocation2 + $0x470] sm:$0xf0]  ;;  %v3023_v24 = vor.u32 %v3856_v18, %v3020_v19  ;;  %v3820_v27 = vld [vmem:[#allocation2 + $0x244] sm:$0xf]  ;;  %v3875_v19 = vld [vmem:[#allocation2 + $0x3f4] sm:$0xf0] }
  0x56   :  { %1447 = vmatpush.bf16.msra.mxu0 %v2943_v46  ;;  %v3276_v26 = vld [vmem:[#allocation2 + $0x570] sm:$0xf0]  ;;  %v3151_v28 = vor.u32 %v3888_v20, %v3148_v21  ;;  %v3852_v30 = vld [vmem:[#allocation2 + $0x344] sm:$0xf]  ;;  %v2690_v20 = vld [vmem:[#allocation2 + $0xc8] sm:$0xf] }
  0x57   :  { %1461 = vmatpush.bf16.msra.mxu1 %v3071_v47  ;;  %1440 = vmatmul.bf16.vlgmr.msra.gmra.mxu2 %v4265_v8  ;;  %v2876_v29 = vld [vmem:[#allocation2 + $0x250] sm:$0xf0]  ;;  %v3884_v32 = vld [vmem:[#allocation2 + $0x444] sm:$0xf]  ;;  %v3279_v34 = vor.u32 %v3920_v25, %v3276_v26  ;;  %v3775_v21 = vld [vmem:[#allocation2 + $0xd4] sm:$0xf0]  ;;  %v2963_v25 = vor.u32 %v3843_v15, %v2962_v14 }
  0x58   :  { %1488 = vmatpush.bf16.msrb.mxu2 %v3343_v45  ;;  %v3004_v31 = vld [vmem:[#allocation2 + $0x350] sm:$0xf0]  ;;  %v2879_v35 = vor.u32 %v3820_v27, %v2876_v29  ;;  %v3916_v38 = vld [vmem:[#allocation2 + $0x544] sm:$0xf]  ;;  %v2691_v27 = vor.u32 %v3775_v21, %v2690_v20  ;;  %v3839_v29 = vld [vmem:[#allocation2 + $0x2d4] sm:$0xf0] }
  0x59   :  { %1475 = vmatpush.bf16.msra.mxu3 %v3199_v52  ;;  %v3132_v33 = vld [vmem:[#allocation2 + $0x450] sm:$0xf0]  ;;  %v3007_v36 = vor.u32 %v3852_v30, %v3004_v31  ;;  %v3816_v40 = vld [vmem:[#allocation2 + $0x224] sm:$0xf]  ;;  %v3074_v30 = vld [vmem:[#allocation2 + $0x3c8] sm:$0xf] }
  0x5a   :  { %1448 = vmatpush.bf16.msra.mxu0 %v2927_v62  ;;  %v3260_v39 = vld [vmem:[#allocation2 + $0x550] sm:$0xf0]  ;;  %v3135_v41 = vor.u32 %v3884_v32, %v3132_v33  ;;  %v3848_v44 = vld [vmem:[#allocation2 + $0x324] sm:$0xf]  ;;  %v3871_v32 = vld [vmem:[#allocation2 + $0x3d4] sm:$0xf0] }
  0x5b   :  { %1462 = vmatpush.bf16.msra.mxu1 %v3055_v63  ;;  %v2860_v43 = vld [vmem:[#allocation2 + $0x230] sm:$0xf0]  ;;  %v3880_v46 = vld [vmem:[#allocation2 + $0x424] sm:$0xf]  ;;  %v3263_v48 = vor.u32 %v3916_v38, %v3260_v39  ;;  %v2674_v33 = vld [vmem:[#allocation2 + $0xa8] sm:$0xf]  ;;  %v3075_v39 = vor.u32 %v3871_v32, %v3074_v30 }
  0x5c   :  { %1489 = vmatpush.bf16.msrb.mxu2 %v3327_v61  ;;  %v2988_v45 = vld [vmem:[#allocation2 + $0x330] sm:$0xf0]  ;;  %v3912_v49 = vld [vmem:[#allocation2 + $0x524] sm:$0xf]  ;;  %v2863_v52 = vor.u32 %v3816_v40, %v2860_v43  ;;  %v3835_v43 = vld [vmem:[#allocation2 + $0x2b4] sm:$0xf0] }
  0x5d   :  { %1476 = vmatpush.bf16.msra.mxu3 %v3183_v3  ;;  %v3116_v47 = vld [vmem:[#allocation2 + $0x430] sm:$0xf0]  ;;  %v2991_v53 = vor.u32 %v3848_v44, %v2988_v45  ;;  %v3812_v56 = vld [vmem:[#allocation2 + $0x204] sm:$0xf]  ;;  %v3058_v44 = vld [vmem:[#allocation2 + $0x3a8] sm:$0xf] }
  0x5e   :  { %1449 = vmatpush.bf16.msra.mxu0 %v2911_v11  ;;  %v3244_v51 = vld [vmem:[#allocation2 + $0x530] sm:$0xf0]  ;;  %v3844_v58 = vld [vmem:[#allocation2 + $0x304] sm:$0xf]  ;;  %v3119_v59 = vor.u32 %v3880_v46, %v3116_v47  ;;  %v3867_v46 = vld [vmem:[#allocation2 + $0x3b4] sm:$0xf0] }
  0x5f   :  { %1463 = vmatpush.bf16.msra.mxu1 %v3039_v12  ;;  %v2844_v57 = vld [vmem:[#allocation2 + $0x210] sm:$0xf0]  ;;  %v3876_v62 = vld [vmem:[#allocation2 + $0x404] sm:$0xf]  ;;  %v3247_v3 = vor.u32 %v3912_v49, %v3244_v51  ;;  %v2658_v47 = vld [vmem:[#allocation2 + $0x88] sm:$0xf] }
  0x60   :  { %1490 = vmatpush.bf16.msrb.mxu2 %v3311_v10  ;;  %v2972_v61 = vld [vmem:[#allocation2 + $0x310] sm:$0xf0]  ;;  %v3940_v5 = vld [vmem:[#allocation2 + $0x604] sm:$0xf]  ;;  %v2847_v7 = vor.u32 %v3812_v56, %v2844_v57  ;;  %v2786_v49 = vld [vmem:[#allocation2 + $0x188] sm:$0xf]  ;;  %v3059_v56 = vor.u32 %v3867_v46, %v3058_v44 }
  0x61   :  { %1477 = vmatpush.bf16.msra.mxu3 %v3167_v16  ;;  %v3100_v63 = vld [vmem:[#allocation2 + $0x410] sm:$0xf0]  ;;  %v2975_v9 = vor.u32 %v3844_v58, %v2972_v61  ;;  %v3908_v10 = vld [vmem:[#allocation2 + $0x504] sm:$0xf]  ;;  %v3090_v16 = vld [vmem:[#allocation2 + $0x3e8] sm:$0xf] }
  0x62   :  { %1450 = vmatpush.bf16.msra.mxu0 %v2895_v23  ;;  %v3356_v6 = vld [vmem:[#allocation2 + $0x610] sm:$0xf0]  ;;  %v3103_v12 = vor.u32 %v3876_v62, %v3100_v63  ;;  %v2818_v23 = vld [vmem:[#allocation2 + $0x1c8] sm:$0xf]  ;;  %v3091_v26 = vor.u32 %v3875_v19, %v3090_v16  ;;  %v3799_v51 = vld [vmem:[#allocation2 + $0x194] sm:$0xf0] }
  0x63   :  { %1464 = vmatpush.bf16.msra.mxu1 %v3023_v24  ;;  %v3228_v11 = vld [vmem:[#allocation2 + $0x510] sm:$0xf0]  ;;  %v3359_v18 = vor.u32 %v3940_v5, %v3356_v6  ;;  %v3807_v24 = vld [vmem:[#allocation2 + $0x1d4] sm:$0xf0]  ;;  %v2787_v62 = vor.u32 %v3799_v51, %v2786_v49  ;;  %v2642_v63 = vld [vmem:[#allocation2 + $0x68] sm:$0xf] }
  0x64   :  { %1491 = vmatpush.bf16.msrb.mxu2 %v3295_v22  ;;  %v3231_v22 = vor.u32 %v3908_v10, %v3228_v11  ;;  %v2819_v31 = vor.u32 %v3807_v24, %v2818_v23  ;;  %v3831_v58 = vld [vmem:[#allocation2 + $0x294] sm:$0xf0]  ;;  %v2770_v1 = vld [vmem:[#allocation2 + $0x168] sm:$0xf] }
  0x65   :  { %1478 = vmatpush.bf16.msra.mxu3 %v3151_v28  ;;  %v2946_v28 = vld [vmem:[#allocation2 + $0x2c8] sm:$0xf]  ;;  %v3863_v61 = vld [vmem:[#allocation2 + $0x394] sm:$0xf0] }
  0x66   :  { %1451 = vmatpush.bf16.msra.mxu0 %v2879_v35  ;;  %v2802_v35 = vld [vmem:[#allocation2 + $0x1a8] sm:$0xf]  ;;  %v2947_v38 = vor.u32 %v3839_v29, %v2946_v28  ;;  %v3763_v0 = vld [vmem:[#allocation2 + $0x74] sm:$0xf0] }
  0x67   :  { %1465 = vmatpush.bf16.msra.mxu1 %v3007_v36  ;;  %v3803_v36 = vld [vmem:[#allocation2 + $0x1b4] sm:$0xf0]  ;;  %v2898_v4 = vld [vmem:[#allocation2 + $0x268] sm:$0xf]  ;;  %v2643_v6 = vor.u32 %v3763_v0, %v2642_v63 }
  0x68   :  { %1492 = vmatpush.bf16.msrb.mxu2 %v3279_v34  ;;  %v3771_v34 = vld [vmem:[#allocation2 + $0xb4] sm:$0xf0]  ;;  %v2803_v45 = vor.u32 %v3803_v36, %v2802_v35  ;;  %v2754_v14 = vld [vmem:[#allocation2 + $0x148] sm:$0xf] }
  0x69   :  { %1479 = vmatpush.bf16.msra.mxu3 %v3135_v41  ;;  %v2675_v40 = vor.u32 %v3771_v34, %v2674_v33  ;;  %v2930_v41 = vld [vmem:[#allocation2 + $0x2a8] sm:$0xf]  ;;  %v3795_v2 = vld [vmem:[#allocation2 + $0x174] sm:$0xf0] }
  0x6a   :  { %1452 = vmatpush.bf16.msra.mxu0 %v2863_v52  ;;  %v2931_v52 = vor.u32 %v3835_v43, %v2930_v41  ;;  %v2771_v10 = vor.u32 %v3795_v2, %v2770_v1  ;;  %v3859_v11 = vld [vmem:[#allocation2 + $0x374] sm:$0xf0]  ;;  %v2882_v19 = vld [vmem:[#allocation2 + $0x248] sm:$0xf] }
  0x6b   :  { %1466 = vmatpush.bf16.msra.mxu1 %v2991_v53  ;;  %v2914_v53 = vld [vmem:[#allocation2 + $0x288] sm:$0xf]  ;;  %v3791_v15 = vld [vmem:[#allocation2 + $0x154] sm:$0xf0] }
  0x6c   :  { %1493 = vmatpush.bf16.msrb.mxu2 %v3263_v48  ;;  %v3767_v48 = vld [vmem:[#allocation2 + $0x94] sm:$0xf0]  ;;  %v3010_v21 = vld [vmem:[#allocation2 + $0x348] sm:$0xf] }
  0x6d   :  { %1480 = vmatpush.bf16.msra.mxu3 %v3119_v59  ;;  %v2659_v57 = vor.u32 %v3767_v48, %v2658_v47  ;;  %v3042_v59 = vld [vmem:[#allocation2 + $0x388] sm:$0xf]  ;;  %v3823_v20 = vld [vmem:[#allocation2 + $0x254] sm:$0xf0] }
  0x6e   :  { %1453 = vmatpush.bf16.msra.mxu0 %v2847_v7  ;;  %v3043_v5 = vor.u32 %v3863_v61, %v3042_v59  ;;  %v3827_v7 = vld [vmem:[#allocation2 + $0x274] sm:$0xf0]  ;;  %v2610_v24 = vld [vmem:[#allocation2 + $0x28] sm:$0xf]  ;;  %v2883_v28 = vor.u32 %v3823_v20, %v2882_v19  ;;  %v2708_v59 = vld [vmem:[#allocation2 + $0xf8] sm:$0xf0] }
  0x6f   :  { %1467 = vmatpush.bf16.msra.mxu1 %v2975_v9  ;;  %v3026_v9 = vld [vmem:[#allocation2 + $0x368] sm:$0xf]  ;;  %v2899_v16 = vor.u32 %v3827_v7, %v2898_v4  ;;  %v3855_v23 = vld [vmem:[#allocation2 + $0x354] sm:$0xf0] }
  0x70   :  { %1494 = vmatpush.bf16.msrb.mxu2 %v3247_v3  ;;  %v2915_v3 = vor.u32 %v3831_v58, %v2914_v53  ;;  %v2866_v29 = vld [vmem:[#allocation2 + $0x228] sm:$0xf]  ;;  %v3011_v30 = vor.u32 %v3855_v23, %v3010_v21  ;;  %v3819_v32 = vld [vmem:[#allocation2 + $0x234] sm:$0xf0]  ;;  %v3777_v58 = vld [vmem:[#allocation2 + $0xec] sm:$0xf] }
  0x71   :  { %1481 = vmatpush.bf16.msra.mxu3 %v3103_v12  ;;  %1454 = vmatmul.bf16.vlgmr.msra.gmra.mxu0 %v4251_v54  ;;  %v2626_v12 = vld [vmem:[#allocation2 + $0x48] sm:$0xf]  ;;  %v3851_v34 = vld [vmem:[#allocation2 + $0x334] sm:$0xf0]  ;;  %v2867_v44 = vor.u32 %v3819_v32, %v2866_v29  ;;  %v2820_v23 = vld [vmem:[#allocation2 + $0x1d8] sm:$0xf0] }
  0x72   :  { %1509 = vmatpush.bf16.msrb.mxu0 %v3359_v18  ;;  %1468 = vmatmul.bf16.vlgmr.msra.gmra.mxu1 %v4255_v60  ;;  %v2994_v33 = vld [vmem:[#allocation2 + $0x328] sm:$0xf]  ;;  %v3907_v43 = vld [vmem:[#allocation2 + $0x4f4] sm:$0xf0] }
  0x73   :  { %1516 = vmatpush.bf16.msrb.mxu1 %v2707_v13  ;;  %v3759_v13 = vld [vmem:[#allocation2 + $0x54] sm:$0xf0]  ;;  %v2594_v36 = vld [vmem:[#allocation2 + $0x8] sm:$0xf]  ;;  %v2995_v47 = vor.u32 %v3851_v34, %v2994_v33  ;;  %v3801_v34 = vld [vmem:[#allocation2 + $0x1ac] sm:$0xf] }
  0x74   :  { %1495 = vmatpush.bf16.msrb.mxu2 %v3231_v22  ;;  %1482 = vmatmul.bf16.vlgmr.msra.gmra.mxu3 %v4291_v37  ;;  %v2627_v18 = vor.u32 %v3759_v13, %v2626_v12  ;;  %v2755_v22 = vor.u32 %v3791_v15, %v2754_v14  ;;  %v3218_v41 = vld [vmem:[#allocation2 + $0x4e8] sm:$0xf]  ;;  %v3939_v46 = vld [vmem:[#allocation2 + $0x5f4] sm:$0xf0]  ;;  %v2692_v14 = vld [vmem:[#allocation2 + $0xd8] sm:$0xf0] }
  0x75   :  { %1530 = vmatpush.bf16.msrb.mxu3 %v2835_v17  ;;  %v3027_v17 = vor.u32 %v3859_v11, %v3026_v9  ;;  %v2850_v49 = vld [vmem:[#allocation2 + $0x208] sm:$0xf]  ;;  %v3815_v51 = vld [vmem:[#allocation2 + $0x214] sm:$0xf0]  ;;  %v3809_v9 = vld [vmem:[#allocation2 + $0x1ec] sm:$0xf] }
  0x76   :  { %1544 = vmatpush.bf16.msra.mxu0 %v2963_v25  ;;  %v3755_v25 = vld [vmem:[#allocation2 + $0x34] sm:$0xf0]  ;;  %v3330_v0 = vld [vmem:[#allocation2 + $0x5c8] sm:$0xf]  ;;  %v2851_v1 = vor.u32 %v3815_v51, %v2850_v49  ;;  %v3773_v11 = vld [vmem:[#allocation2 + $0xcc] sm:$0xf] }
  0x77   :  { %1517 = vmatpush.bf16.msrb.mxu1 %v2691_v27  ;;  %1496 = vmatmul.bf16.vlgmr.msrb.gmra.mxu2 %v4293_v42  ;;  %v3787_v27 = vld [vmem:[#allocation2 + $0x134] sm:$0xf0]  ;;  %v3186_v15 = vld [vmem:[#allocation2 + $0x4a8] sm:$0xf]  ;;  %v2695_v20 = vor.u32 %v3773_v11, %v2692_v14  ;;  %v2788_v49 = vld [vmem:[#allocation2 + $0x198] sm:$0xf0] }
  0x78   :  { %1558 = vmatpush.bf16.msra.mxu2 %v3091_v26  ;;  %v2738_v26 = vld [vmem:[#allocation2 + $0x128] sm:$0xf]  ;;  %v3903_v63 = vld [vmem:[#allocation2 + $0x4d4] sm:$0xf0]  ;;  %v3761_v51 = vld [vmem:[#allocation2 + $0x6c] sm:$0xf] }
  0x79   :  { %1531 = vmatpush.bf16.msrb.mxu3 %v2819_v31  ;;  %v2611_v31 = vor.u32 %v3755_v25, %v2610_v24  ;;  %v2739_v35 = vor.u32 %v3787_v27, %v2738_v26  ;;  %v3935_v2 = vld [vmem:[#allocation2 + $0x5d4] sm:$0xf0]  ;;  %v3769_v24 = vld [vmem:[#allocation2 + $0xac] sm:$0xf]  ;;  %v2676_v26 = vld [vmem:[#allocation2 + $0xb8] sm:$0xf0] }
  0x7a   :  { %1545 = vmatpush.bf16.msra.mxu0 %v2947_v38  ;;  %v3751_v38 = vld [vmem:[#allocation2 + $0x14] sm:$0xf0]  ;;  %v3331_v12 = vor.u32 %v3935_v2, %v3330_v0  ;;  %v3170_v27 = vld [vmem:[#allocation2 + $0x488] sm:$0xf]  ;;  %v2679_v32 = vor.u32 %v3769_v24, %v2676_v26  ;;  %v3793_v0 = vld [vmem:[#allocation2 + $0x16c] sm:$0xf] }
  0x7b   :  { %1518 = vmatpush.bf16.msrb.mxu1 %v2675_v40  ;;  %v3783_v40 = vld [vmem:[#allocation2 + $0x114] sm:$0xf0]  ;;  %v2595_v48 = vor.u32 %v3751_v38, %v2594_v36  ;;  %v3298_v29 = vld [vmem:[#allocation2 + $0x588] sm:$0xf]  ;;  %v3765_v36 = vld [vmem:[#allocation2 + $0x8c] sm:$0xf] }
  0x7c   :  { %1559 = vmatpush.bf16.msra.mxu2 %v3075_v39  ;;  %v2722_v39 = vld [vmem:[#allocation2 + $0x108] sm:$0xf]  ;;  %v3943_v4 = vld [vmem:[#allocation2 + $0x614] sm:$0xf0]  ;;  %v3757_v2 = vld [vmem:[#allocation2 + $0x4c] sm:$0xf] }
  0x7d   :  { %1532 = vmatpush.bf16.msrb.mxu3 %v2803_v45  ;;  %v3346_v45 = vld [vmem:[#allocation2 + $0x5e8] sm:$0xf]  ;;  %v2723_v53 = vor.u32 %v3783_v40, %v2722_v39  ;;  %v2660_v39 = vld [vmem:[#allocation2 + $0x98] sm:$0xf0]  ;;  %v3789_v11 = vld [vmem:[#allocation2 + $0x14c] sm:$0xf] }
  0x7e   :  { %1546 = vmatpush.bf16.msra.mxu0 %v2931_v52  ;;  %v2978_v52 = vld [vmem:[#allocation2 + $0x308] sm:$0xf]  ;;  %v3347_v61 = vor.u32 %v3939_v46, %v3346_v45  ;;  %v2663_v46 = vor.u32 %v3765_v36, %v2660_v39  ;;  %v2756_v14 = vld [vmem:[#allocation2 + $0x158] sm:$0xf0]  ;;  %v3837_v39 = vld [vmem:[#allocation2 + $0x2cc] sm:$0xf] }
  0x7f   :  { %1519 = vmatpush.bf16.msrb.mxu1 %v2659_v57  ;;  %v3847_v57 = vld [vmem:[#allocation2 + $0x314] sm:$0xf0]  ;;  %v3154_v40 = vld [vmem:[#allocation2 + $0x468] sm:$0xf]  ;;  %v2759_v24 = vor.u32 %v3789_v11, %v2756_v14  ;;  %v3092_v26 = vld [vmem:[#allocation2 + $0x3f8] sm:$0xf0] }
  0x80   :  { %1560 = vmatpush.bf16.msra.mxu2 %v3059_v56  ;;  %v3219_v56 = vor.u32 %v3907_v43, %v3218_v41  ;;  %v3891_v41 = vld [vmem:[#allocation2 + $0x474] sm:$0xf0]  ;;  %v3282_v43 = vld [vmem:[#allocation2 + $0x568] sm:$0xf]  ;;  %v3861_v11 = vld [vmem:[#allocation2 + $0x38c] sm:$0xf] }
  0x81   :  { %1533 = vmatpush.bf16.msrb.mxu3 %v2787_v62  ;;  %3369 = vmatmul.msk.bf16.vlgmr.msrb.gmra.mxu0 %vm1316_vm0, %v4275_v50  ;;  %v3202_v62 = vld [vmem:[#allocation2 + $0x4c8] sm:$0xf] }
  0x82   :  { %1547 = vmatpush.bf16.msra.mxu0 %v2915_v3  ;;  %v3362_v3 = vld [vmem:[#allocation2 + $0x608] sm:$0xf]  ;;  %v3203_v7 = vor.u32 %v3903_v63, %v3202_v62 }
  0x83   :  { %1520 = vmatpush.bf16.msrb.mxu1 %v2643_v6  ;;  %v2711_v6 = vor.u32 %v3777_v58, %v2708_v59  ;;  %v3363_v13 = vor.u32 %v3943_v4, %v3362_v3  ;;  %v3266_v58 = vld [vmem:[#allocation2 + $0x548] sm:$0xf]  ;;  %v3919_v59 = vld [vmem:[#allocation2 + $0x554] sm:$0xf0]  ;;  %v2628_v4 = vld [vmem:[#allocation2 + $0x58] sm:$0xf0] }
  0x84   :  { %1561 = vmatpush.bf16.msra.mxu2 %v3043_v5  ;;  %v2979_v5 = vor.u32 %v3847_v57, %v2978_v52  ;;  %v3887_v57 = vld [vmem:[#allocation2 + $0x454] sm:$0xf0]  ;;  %v3267_v3 = vor.u32 %v3919_v59, %v3266_v58  ;;  %v3833_v58 = vld [vmem:[#allocation2 + $0x2ac] sm:$0xf]  ;;  %v2932_v59 = vld [vmem:[#allocation2 + $0x2b8] sm:$0xf0] }
  0x85   :  { %1534 = vmatpush.bf16.msrb.mxu3 %v2771_v10  ;;  %v2836_v10 = vld [vmem:[#allocation2 + $0x1f8] sm:$0xf0] }
  0x86   :  { %1548 = vmatpush.bf16.msra.mxu0 %v2899_v16  ;;  %v3899_v16 = vld [vmem:[#allocation2 + $0x4b4] sm:$0xf0]  ;;  %v2839_v19 = vor.u32 %v3809_v9, %v2836_v10 }
  0x87   :  { %1521 = vmatpush.bf16.msrb.mxu1 %v2627_v18  ;;  %v3931_v18 = vld [vmem:[#allocation2 + $0x5b4] sm:$0xf0]  ;;  %v3187_v21 = vor.u32 %v3899_v16, %v3186_v15  ;;  %v3753_v15 = vld [vmem:[#allocation2 + $0x2c] sm:$0xf]  ;;  %v2612_v16 = vld [vmem:[#allocation2 + $0x38] sm:$0xf0] }
  0x88   :  { %1562 = vmatpush.bf16.msra.mxu2 %v3027_v17  ;;  %v3314_v17 = vld [vmem:[#allocation2 + $0x5a8] sm:$0xf]  ;;  %v3915_v9 = vld [vmem:[#allocation2 + $0x534] sm:$0xf0] }
  0x89   :  { %1535 = vmatpush.bf16.msrb.mxu3 %v2755_v22  ;;  %v3805_v22 = vld [vmem:[#allocation2 + $0x1cc] sm:$0xf]  ;;  %v3315_v25 = vor.u32 %v3931_v18, %v3314_v17  ;;  %v3106_v18 = vld [vmem:[#allocation2 + $0x408] sm:$0xf] }
  0x8a   :  { %1549 = vmatpush.bf16.msra.mxu0 %v2883_v28  ;;  %v3895_v28 = vld [vmem:[#allocation2 + $0x494] sm:$0xf0] }
  0x8b   :  { %1522 = vmatpush.bf16.msrb.mxu1 %v2611_v31  ;;  %v2823_v31 = vor.u32 %v3805_v22, %v2820_v23  ;;  %v3171_v33 = vor.u32 %v3895_v28, %v3170_v27  ;;  %v3841_v22 = vld [vmem:[#allocation2 + $0x2ec] sm:$0xf]  ;;  %v2964_v23 = vld [vmem:[#allocation2 + $0x2f8] sm:$0xf0]  ;;  %v2615_v27 = vor.u32 %v3753_v15, %v2612_v16 }
  0x8c   :  { %1563 = vmatpush.bf16.msra.mxu2 %v3011_v30  ;;  %v3927_v30 = vld [vmem:[#allocation2 + $0x594] sm:$0xf0]  ;;  %v3929_v16 = vld [vmem:[#allocation2 + $0x5ac] sm:$0xf] }
  0x8d   :  { %1536 = vmatpush.bf16.msrb.mxu3 %v2739_v35  ;;  %v2804_v35 = vld [vmem:[#allocation2 + $0x1b8] sm:$0xf0]  ;;  %v3299_v38 = vor.u32 %v3927_v30, %v3298_v29  ;;  %v3785_v29 = vld [vmem:[#allocation2 + $0x12c] sm:$0xf] }
  0x8e   :  { %1550 = vmatpush.bf16.msra.mxu0 %v2867_v44  ;;  %v3923_v44 = vld [vmem:[#allocation2 + $0x574] sm:$0xf0]  ;;  %v2807_v45 = vor.u32 %v3801_v34, %v2804_v35  ;;  %v2740_v30 = vld [vmem:[#allocation2 + $0x138] sm:$0xf0]  ;;  %v3905_v35 = vld [vmem:[#allocation2 + $0x4ec] sm:$0xf] }
  0x8f   :  { %1523 = vmatpush.bf16.msrb.mxu1 %v2595_v48  ;;  %v3797_v48 = vld [vmem:[#allocation2 + $0x18c] sm:$0xf]  ;;  %v3283_v52 = vor.u32 %v3923_v44, %v3282_v43  ;;  %v2596_v34 = vld [vmem:[#allocation2 + $0x18] sm:$0xf0] }
  0x90   :  { %1564 = vmatpush.bf16.msra.mxu2 %v2995_v47  ;;  %v3155_v47 = vor.u32 %v3891_v41, %v3154_v40  ;;  %v2948_v40 = vld [vmem:[#allocation2 + $0x2d8] sm:$0xf0]  ;;  %v2743_v41 = vor.u32 %v3785_v29, %v2740_v30  ;;  %v3869_v43 = vld [vmem:[#allocation2 + $0x3cc] sm:$0xf] }
  0x91   :  { %1537 = vmatpush.bf16.msrb.mxu3 %v2723_v53  ;;  %v2644_v53 = vld [vmem:[#allocation2 + $0x78] sm:$0xf0]  ;;  %v3889_v29 = vld [vmem:[#allocation2 + $0x46c] sm:$0xf] }
  0x92   :  { %1551 = vmatpush.bf16.msra.mxu0 %v2851_v1  ;;  %1524 = vmatmul.bf16.vlgmr.msrb.gmra.mxu1 %v4253_v55  ;;  %v2647_v62 = vor.u32 %v3761_v51, %v2644_v53  ;;  %v2772_v1 = vld [vmem:[#allocation2 + $0x178] sm:$0xf0]  ;;  %v3937_v51 = vld [vmem:[#allocation2 + $0x5ec] sm:$0xf] }
  0x93   :  { %1572 = vmatpush.bf16.msra.mxu1 %v3219_v56  ;;  %v3138_v56 = vld [vmem:[#allocation2 + $0x448] sm:$0xf]  ;;  %v2775_v10 = vor.u32 %v3793_v0, %v2772_v1  ;;  %v3076_v44 = vld [vmem:[#allocation2 + $0x3d8] sm:$0xf0]  ;;  %v3901_v53 = vld [vmem:[#allocation2 + $0x4cc] sm:$0xf] }
  0x94   :  { %1538 = vmatmul.bf16.vlgmr.msrb.gmra.mxu3 %v4265_v8  ;;  %1565 = vmatpush.bf16.msra.mxu2 %v2979_v5  ;;  %v3139_v63 = vor.u32 %v3887_v57, %v3138_v56  ;;  %v3122_v5 = vld [vmem:[#allocation2 + $0x428] sm:$0xf]  ;;  %v3079_v56 = vor.u32 %v3869_v43, %v3076_v44  ;;  %v3204_v57 = vld [vmem:[#allocation2 + $0x4d8] sm:$0xf0] }
  0x95   :  { %1586 = vmatpush.bf16.msra.mxu3 %v3347_v61  ;;  %1552 = vmatmul.bf16.vlgmr.msra.gmra.mxu0 %v4251_v54  ;;  %v2791_v61 = vor.u32 %v3797_v48, %v2788_v49  ;;  %v2951_v49 = vor.u32 %v3837_v39, %v2948_v40  ;;  %v3207_v1 = vor.u32 %v3901_v53, %v3204_v57  ;;  %v3921_v39 = vld [vmem:[#allocation2 + $0x56c] sm:$0xf]  ;;  %v3284_v40 = vld [vmem:[#allocation2 + $0x578] sm:$0xf0] }
  0x96   :  { %1607 = vmatpush.bf16.msrb.mxu0 %v3363_v13  ;;  %v3140_v44 = vld [vmem:[#allocation2 + $0x458] sm:$0xf0] }
  0x97   :  { %1573 = vmatpush.bf16.msra.mxu1 %v3203_v7  ;;  %1566 = vmatmul.bf16.vlgmr.msra.gmra.mxu2 %v4255_v60  ;;  %v3250_v7 = vld [vmem:[#allocation2 + $0x528] sm:$0xf]  ;;  %v3268_v57 = vld [vmem:[#allocation2 + $0x558] sm:$0xf0] }
  0x98   :  { %1614 = vmatpush.bf16.msrb.mxu2 %v2711_v6  ;;  %v3883_v6 = vld [vmem:[#allocation2 + $0x434] sm:$0xf0]  ;;  %v3251_v17 = vor.u32 %v3915_v9, %v3250_v7  ;;  %v3188_v7 = vld [vmem:[#allocation2 + $0x4b8] sm:$0xf0]  ;;  %v3829_v9 = vld [vmem:[#allocation2 + $0x28c] sm:$0xf] }
  0x99   :  { %1587 = vmatpush.bf16.msra.mxu3 %v3331_v12  ;;  %v2631_v12 = vor.u32 %v3757_v2, %v2628_v4  ;;  %v3123_v13 = vor.u32 %v3883_v6, %v3122_v5  ;;  %v2935_v2 = vor.u32 %v3833_v58, %v2932_v59  ;;  %v3332_v4 = vld [vmem:[#allocation2 + $0x5d8] sm:$0xf0]  ;;  %v3897_v5 = vld [vmem:[#allocation2 + $0x4ac] sm:$0xf] }
  0x9a   :  { %1628 = vmatpush.bf16.msra.mxu0 %v2839_v19  ;;  %v3879_v19 = vld [vmem:[#allocation2 + $0x414] sm:$0xf0]  ;;  %v3191_v14 = vor.u32 %v3897_v5, %v3188_v7  ;;  %v3881_v58 = vld [vmem:[#allocation2 + $0x42c] sm:$0xf]  ;;  %v3124_v59 = vld [vmem:[#allocation2 + $0x438] sm:$0xf0] }
  0x9b   :  { %1574 = vmatpush.bf16.msra.mxu1 %v3187_v21  ;;  %v3911_v21 = vld [vmem:[#allocation2 + $0x514] sm:$0xf0]  ;;  %v3107_v28 = vor.u32 %v3879_v19, %v3106_v18  ;;  %v3893_v18 = vld [vmem:[#allocation2 + $0x48c] sm:$0xf]  ;;  %v3364_v5 = vld [vmem:[#allocation2 + $0x618] sm:$0xf0] }
  0x9c   :  { %1615 = vmatpush.bf16.msrb.mxu2 %v2695_v20  ;;  %v3234_v20 = vld [vmem:[#allocation2 + $0x508] sm:$0xf] }
  0x9d   :  { %1588 = vmatpush.bf16.msra.mxu3 %v3315_v25  ;;  %v3873_v25 = vld [vmem:[#allocation2 + $0x3ec] sm:$0xf] }
  0x9e   :  { %1629 = vmatpush.bf16.msra.mxu0 %v2823_v31  ;;  %v3235_v31 = vor.u32 %v3911_v21, %v3234_v20  ;;  %v3095_v36 = vor.u32 %v3873_v25, %v3092_v26  ;;  %v3172_v20 = vld [vmem:[#allocation2 + $0x498] sm:$0xf0]  ;;  %v3825_v21 = vld [vmem:[#allocation2 + $0x26c] sm:$0xf] }
  0x9f   :  { %1575 = vmatpush.bf16.msra.mxu1 %v3171_v33  ;;  %v3749_v33 = vld [vmem:[#allocation2 + $0xc] sm:$0xf]  ;;  %v3175_v25 = vor.u32 %v3893_v18, %v3172_v20  ;;  %v3108_v18 = vld [vmem:[#allocation2 + $0x418] sm:$0xf0] }
  0xa0   :  { %1616 = vmatpush.bf16.msrb.mxu2 %v2679_v32  ;;  %v2967_v32 = vor.u32 %v3841_v22, %v2964_v23  ;;  %v2900_v22 = vld [vmem:[#allocation2 + $0x278] sm:$0xf0]  ;;  %v3857_v23 = vld [vmem:[#allocation2 + $0x36c] sm:$0xf] }
  0xa1   :  { %1589 = vmatpush.bf16.msra.mxu3 %v3299_v38  ;;  %v3220_v38 = vld [vmem:[#allocation2 + $0x4f8] sm:$0xf0]  ;;  %v2903_v26 = vor.u32 %v3825_v21, %v2900_v22  ;;  %v3494_v21 = vld [vmem:[#allocation5 + $0xf0] sm:$0xf]  ;;  %v3975_v22 = vld [vmem:[#allocation5 + $0xf4] sm:$0xf0] }
  0xa2   :  { %1630 = vmatpush.bf16.msra.mxu0 %v2807_v45  ;;  %v2599_v45 = vor.u32 %v3749_v33, %v2596_v34  ;;  %v3223_v48 = vor.u32 %v3905_v35, %v3220_v38  ;;  %v2884_v33 = vld [vmem:[#allocation2 + $0x258] sm:$0xf0]  ;;  %v3853_v34 = vld [vmem:[#allocation2 + $0x34c] sm:$0xf] }
  0xa3   :  { %1576 = vmatpush.bf16.msra.mxu1 %v3155_v47  ;;  %v2724_v47 = vld [vmem:[#allocation2 + $0x118] sm:$0xf0] }
  0xa4   :  { %1617 = vmatpush.bf16.msrb.mxu2 %v2663_v46  ;;  %v3781_v46 = vld [vmem:[#allocation2 + $0x10c] sm:$0xf]  ;;  %v3012_v35 = vld [vmem:[#allocation2 + $0x358] sm:$0xf0] }
  0xa5   :  { %1590 = vmatpush.bf16.msra.mxu3 %v3283_v52  ;;  %3370 = vmatmul.msk.bf16.vlgmr.msrb.gmra.mxu0 %vm1316_vm0, %v4275_v50  ;;  %v3348_v52 = vld [vmem:[#allocation2 + $0x5f8] sm:$0xf0]  ;;  %v3015_v43 = vor.u32 %v3853_v34, %v3012_v35  ;;  %v3414_v35 = vld [vmem:[#allocation5 + $0x50] sm:$0xf] }
  0xa6   :  { %1631 = vmatpush.bf16.msra.mxu0 %v2791_v61  ;;  %v2727_v61 = vor.u32 %v3781_v46, %v2724_v47  ;;  %v3351_v0 = vor.u32 %v3937_v51, %v3348_v52  ;;  %v2868_v46 = vld [vmem:[#allocation2 + $0x238] sm:$0xf0]  ;;  %v3849_v47 = vld [vmem:[#allocation2 + $0x32c] sm:$0xf]  ;;  %v4318_v52 = vld [vmem:[%s4390_s2] sm:$0xf] }
  0xa7   :  { %1577 = vmatpush.bf16.msra.mxu1 %v3139_v63  ;;  %v3060_v63 = vld [vmem:[#allocation2 + $0x3b8] sm:$0xf0]  ;;  %v3917_v51 = vld [vmem:[#allocation2 + $0x54c] sm:$0xf] }
  0xa8   :  { %1618 = vmatpush.bf16.msrb.mxu2 %v2647_v62  ;;  %v3865_v62 = vld [vmem:[#allocation2 + $0x3ac] sm:$0xf]  ;;  %v3271_v7 = vor.u32 %v3917_v51, %v3268_v57 }
  0xa9   :  { %1591 = vmatpush.bf16.msra.mxu3 %v3267_v3  ;;  %v3933_v3 = vld [vmem:[#allocation2 + $0x5cc] sm:$0xf]  ;;  %v3063_v6 = vor.u32 %v3865_v62, %v3060_v63 }
  0xaa   :  { %1632 = vmatpush.bf16.msra.mxu0 %v2775_v10  ;;  %v2916_v10 = vld [vmem:[#allocation2 + $0x298] sm:$0xf0]  ;;  %v3813_v63 = vld [vmem:[#allocation2 + $0x20c] sm:$0xf] }
  0xab   :  { %1578 = vmatpush.bf16.msra.mxu1 %v3123_v13  ;;  %v3335_v13 = vor.u32 %v3933_v3, %v3332_v4  ;;  %v2919_v15 = vor.u32 %v3829_v9, %v2916_v10  ;;  %v2980_v3 = vld [vmem:[#allocation2 + $0x318] sm:$0xf0]  ;;  %v3941_v4 = vld [vmem:[#allocation2 + $0x60c] sm:$0xf]  ;;  %v3430_v9 = vld [vmem:[#allocation5 + $0x70] sm:$0xf] }
  0xac   :  { %1619 = vmatpush.bf16.msrb.mxu2 %v2631_v12  ;;  %v3044_v12 = vld [vmem:[#allocation2 + $0x398] sm:$0xf0]  ;;  %v3959_v10 = vld [vmem:[#allocation5 + $0x74] sm:$0xf0] }
  0xad   :  { %1592 = vmatpush.bf16.msra.mxu3 %v3251_v17  ;;  %v3316_v17 = vld [vmem:[#allocation2 + $0x5b8] sm:$0xf0]  ;;  %v3047_v19 = vor.u32 %v3861_v11, %v3044_v12  ;;  %v3127_v11 = vor.u32 %v3881_v58, %v3124_v59  ;;  %v3431_v20 = vor.u32 %v3959_v10, %v3430_v9  ;;  %v3398_v58 = vld [vmem:[#allocation5 + $0x30] sm:$0xf]  ;;  %v3951_v59 = vld [vmem:[#allocation5 + $0x34] sm:$0xf0] }
  0xae   :  { %1633 = vmatpush.bf16.msra.mxu0 %v2759_v24  ;;  %v3028_v24 = vld [vmem:[#allocation2 + $0x378] sm:$0xf0] }
  0xaf   :  { %1579 = vmatpush.bf16.msra.mxu1 %v3107_v28  ;;  %v3300_v28 = vld [vmem:[#allocation2 + $0x598] sm:$0xf0]  ;;  %v3031_v30 = vor.u32 %v3857_v23, %v3028_v24  ;;  %v3422_v24 = vld [vmem:[#allocation5 + $0x60] sm:$0xf] }
  0xb0   :  { %1620 = vmatpush.bf16.msrb.mxu2 %v2615_v27  ;;  %v3925_v27 = vld [vmem:[#allocation2 + $0x58c] sm:$0xf] }
  0xb1   :  { %1593 = vmatpush.bf16.msra.mxu3 %v3235_v31  ;;  %v3156_v31 = vld [vmem:[#allocation2 + $0x478] sm:$0xf0] }
  0xb2   :  { %1634 = vmatpush.bf16.msra.mxu0 %v2743_v41  ;;  %1580 = vmatmul.bf16.vlgmr.msra.gmra.mxu1 %v4291_v37  ;;  %v3885_v41 = vld [vmem:[#allocation2 + $0x44c] sm:$0xf] }
  0xb3   :  { %1642 = vmatpush.bf16.msrb.mxu1 %v2967_v32  ;;  %v3821_v32 = vld [vmem:[#allocation2 + $0x24c] sm:$0xf]  ;;  %v3143_v53 = vor.u32 %v3885_v41, %v3140_v44 }
  0xb4   :  { %1594 = vmatmul.bf16.vlgmr.msra.gmra.mxu3 %v4293_v42  ;;  %1621 = vmatpush.bf16.msrb.mxu2 %v2599_v45  ;;  %v2887_v38 = vor.u32 %v3821_v32, %v2884_v33  ;;  %v3817_v45 = vld [vmem:[#allocation2 + $0x22c] sm:$0xf]  ;;  %v3973_v32 = vld [vmem:[#allocation5 + $0xe4] sm:$0xf0] }
  0xb5   :  { %1656 = vmatpush.bf16.msrb.mxu3 %v3095_v36  ;;  %v3159_v36 = vor.u32 %v3889_v29, %v3156_v31  ;;  %v3495_v29 = vor.u32 %v3975_v22, %v3494_v21  ;;  %v3486_v31 = vld [vmem:[#allocation5 + $0xe0] sm:$0xf]  ;;  %v3446_v22 = vld [vmem:[#allocation5 + $0x90] sm:$0xf] }
  0xb6   :  { %1635 = vmatpush.bf16.msra.mxu0 %v2727_v61  ;;  %v1329_v61 = vpop.f32.mrf.mxu0  ;;  %v3487_v41 = vor.u32 %v3973_v32, %v3486_v31  ;;  %v3438_v32 = vld [vmem:[#allocation5 + $0x80] sm:$0xf] }
  0xb7   :  { %1643 = vmatpush.bf16.msrb.mxu1 %v2951_v49  ;;  %1622 = vmatmul.bf16.vlgmr.msrb.gmra.mxu2 %v4253_v55  ;;  %v3319_v55 = vor.u32 %v3929_v16, %v3316_v17  ;;  %v3287_v49 = vor.u32 %v3921_v39, %v3284_v40  ;;  %v3877_v17 = vld [vmem:[#allocation2 + $0x40c] sm:$0xf]  ;;  %v1371_v39 = vpop.f32.mrf.mxu3 }
  0xb8   :  { %1670 = vmatpush.bf16.msra.mxu2 %v3223_v48  ;;  %v2996_v48 = vld [vmem:[#allocation2 + $0x338] sm:$0xf0] }
  0xb9   :  { %1657 = vmatpush.bf16.msrb.mxu3 %v3079_v56  ;;  %1636 = vmatmul.bf16.vlgmr.msra.gmra.mxu0 %v4265_v8  ;;  %v3303_v8 = vor.u32 %v3925_v27, %v3300_v28  ;;  %v2871_v56 = vor.u32 %v3817_v45, %v2868_v46  ;;  %v2999_v62 = vor.u32 %v3849_v47, %v2996_v48  ;;  %v3236_v27 = vld [vmem:[#allocation2 + $0x518] sm:$0xf0]  ;;  %v3478_v45 = vld [vmem:[#allocation5 + $0xd0] sm:$0xf]  ;;  %v3971_v46 = vld [vmem:[#allocation5 + $0xd4] sm:$0xf0] }
  0xba   :  { %1684 = vmatpush.bf16.msrb.mxu0 %v3351_v0  ;;  %v2852_v0 = vld [vmem:[#allocation2 + $0x218] sm:$0xf0]  ;;  %v3953_v47 = vld [vmem:[#allocation5 + $0x44] sm:$0xf0] }
  0xbb   :  { %1644 = vmatpush.bf16.msrb.mxu1 %v2935_v2  ;;  %v1343_v2 = vpop.f32.mrf.mxu1  ;;  %v2855_v12 = vor.u32 %v3813_v63, %v2852_v0 }
  0xbc   :  { %1671 = vmatpush.bf16.msra.mxu2 %v3207_v1  ;;  %v3845_v1 = vld [vmem:[#allocation2 + $0x30c] sm:$0xf] }
  0xbd   :  { %1658 = vmatpush.bf16.msrb.mxu3 %v3063_v6  ;;  %v1357_v6 = vpop.f32.mrf.mxu2  ;;  %v2983_v16 = vor.u32 %v3845_v1, %v2980_v3  ;;  %v3399_v1 = vor.u32 %v3951_v59, %v3398_v58  ;;  %v3967_v3 = vld [vmem:[#allocation5 + $0xb4] sm:$0xf0]  ;;  %v3952_v58 = vld [vmem:[#allocation5 + $0x44] sm:$0xf]  ;;  %v3408_v59 = vld [vmem:[#allocation5 + $0x48] sm:$0xf0] }
  0xbe   :  { %1685 = vmatpush.bf16.msrb.mxu0 %v3335_v13  ;;  %v3913_v13 = vld [vmem:[#allocation2 + $0x52c] sm:$0xf]  ;;  %v1331_v33 = vpop.f32.mrf.mxu0 }
  0xbf   :  { %1645 = vmatpush.bf16.msrb.mxu1 %v2919_v15  ;;  %v293_v15 = vperm.slane %v4318_v52, 0 }
  0xc0   :  { %1672 = vmatpush.bf16.msra.mxu2 %v3191_v14  ;;  %v3252_v14 = vld [vmem:[#allocation2 + $0x538] sm:$0xf0] }
  0xc1   :  { %1659 = vmatpush.bf16.msrb.mxu3 %v3047_v19  ;;  %v3367_v19 = vor.u32 %v3941_v4, %v3364_v5  ;;  %v3255_v23 = vor.u32 %v3913_v13, %v3252_v14  ;;  %v1330_v28 = vadd.f32 %v1329_v61, %v293_v15  ;;  %v1373_v4 = vpop.f32.mrf.mxu3 }
  0xc2   :  { %1686 = vmatpush.bf16.msrb.mxu0 %v3319_v55  ;;  %v3957_v55 = vld [vmem:[#allocation5 + $0x64] sm:$0xf0] }
  0xc3   :  { %1646 = vmatpush.bf16.msrb.mxu1 %v2903_v26  ;;  %v3909_v26 = vld [vmem:[#allocation2 + $0x50c] sm:$0xf] }
  0xc4   :  { %1673 = vmatpush.bf16.msra.mxu2 %v3175_v25  ;;  %v3111_v25 = vor.u32 %v3877_v17, %v3108_v18  ;;  %v3239_v34 = vor.u32 %v3909_v26, %v3236_v27  ;;  %v3945_v26 = vld [vmem:[#allocation5 + $0x4] sm:$0xf0] }
  0xc5   :  { %1660 = vmatpush.bf16.msrb.mxu3 %v3031_v30  ;;  %v3423_v30 = vor.u32 %v3957_v55, %v3422_v24  ;;  %v1359_v40 = vpop.f32.mrf.mxu2 }
  0xc6   :  { %1687 = vmatpush.bf16.msrb.mxu0 %v3303_v8  ;;  %v3955_v8 = vld [vmem:[#allocation5 + $0x54] sm:$0xf0] }
  0xc7   :  { %1647 = vmatpush.bf16.msrb.mxu1 %v2887_v38  ;;  %v1344_v38 = vadd.f32 %v1343_v2, %v1330_v28  ;;  %v3415_v44 = vor.u32 %v3955_v8, %v3414_v35  ;;  %v3462_v2 = vld [vmem:[#allocation5 + $0xb0] sm:$0xf]  ;;  %v3958_v28 = vld [vmem:[#allocation5 + $0x74] sm:$0xf] }
  0xc8   :  { %1674 = vmatpush.bf16.msra.mxu2 %v3159_v36  ;;  %v1345_v36 = vpop.f32.mrf.mxu1  ;;  %v3974_v8 = vld [vmem:[#allocation5 + $0xf4] sm:$0xf] }
  0xc9   :  { %1661 = vmatpush.bf16.msrb.mxu3 %v3015_v43  ;;  %v1332_v43 = vadd.f32 %v1331_v33, %v293_v15  ;;  %v1358_v48 = vadd.f32 %v1357_v6, %v1344_v38  ;;  %v3949_v6 = vld [vmem:[#allocation5 + $0x24] sm:$0xf0]  ;;  %v3382_v15 = vld [vmem:[#allocation5 + $0x10] sm:$0xf] }
  0xca   :  { %1688 = vmatpush.bf16.msrb.mxu0 %v3287_v49  ;;  %v3479_v49 = vor.u32 %v3971_v46, %v3478_v45  ;;  %v3961_v33 = vld [vmem:[#allocation5 + $0x84] sm:$0xf0] }
  0xcb   :  { %1648 = vmatpush.bf16.msrb.mxu1 %v2871_v56  ;;  %v3969_v56 = vld [vmem:[#allocation5 + $0xc4] sm:$0xf0] }
  0xcc   :  { %1675 = vmatpush.bf16.msra.mxu2 %v3143_v53  ;;  %v3470_v53 = vld [vmem:[#allocation5 + $0xc0] sm:$0xf] }
  0xcd   :  { %1662 = vmatpush.bf16.msrb.mxu3 %v2999_v62  ;;  %v1372_v62 = vadd.f32 %v1371_v39, %v1358_v48  ;;  %v1413_v63 = vpop.f32.mrf.mxu2  ;;  %v3956_v39 = vld [vmem:[#allocation5 + $0x64] sm:$0xf]  ;;  %v3954_v48 = vld [vmem:[#allocation5 + $0x54] sm:$0xf] }
  0xce   :  { %1689 = vmatpush.bf16.msrb.mxu0 %v3271_v7  ;;  %v1385_v57 = vpop.f32.mrf.mxu0  ;;  %v3463_v7 = vor.u32 %v3967_v3, %v3462_v2  ;;  %v3950_v2 = vld [vmem:[#allocation5 + $0x34] sm:$0xf]  ;;  %v3400_v3 = vld [vmem:[#allocation5 + $0x38] sm:$0xf0] }
  0xcf   :  { %1649 = vmatpush.bf16.msrb.mxu1 %v2855_v12  ;;  %v1386_v5 = vadd.f32 %v1385_v57, %v1372_v62  ;;  %v3965_v12 = vld [vmem:[#allocation5 + $0xa4] sm:$0xf0]  ;;  %v294_v57 = vperm.slane %v4318_v52, 1 }
  0xd0   :  { %1676 = vmatpush.bf16.msra.mxu2 %v3127_v11  ;;  %v1399_v61 = vpop.f32.mrf.mxu1  ;;  %v3454_v11 = vld [vmem:[#allocation5 + $0xa0] sm:$0xf] }
  0xd1   :  { %1663 = vmatpush.bf16.msrb.mxu3 %v2983_v16  ;;  %v1400_v13 = vadd.f32 %v1399_v61, %v1386_v5  ;;  %v3947_v16 = vld [vmem:[#allocation5 + $0x14] sm:$0xf0] }
  0xd2   :  { %1690 = vmatpush.bf16.msrb.mxu0 %v3255_v23  ;;  %1650 = vmatmul.bf16.vlgmr.msrb.gmra.mxu1 %v4251_v54  ;;  %v3406_v54 = vld [vmem:[#allocation5 + $0x40] sm:$0xf]  ;;  %v3383_v21 = vor.u32 %v3947_v16, %v3382_v15  ;;  %v3963_v23 = vld [vmem:[#allocation5 + $0x94] sm:$0xf0]  ;;  %v3558_v15 = vld [vmem:[#allocation5 + $0x170] sm:$0xf] }
  0xd3   :  { %1705 = vmatpush.bf16.msra.mxu1 %v3367_v19  ;;  %v3407_v51 = vor.u32 %v3953_v47, %v3406_v54  ;;  %v3455_v19 = vor.u32 %v3965_v12, %v3454_v11  ;;  %v1414_v24 = vadd.f32 %v1413_v63, %v1400_v13  ;;  %v3972_v54 = vld [vmem:[#allocation5 + $0xe4] sm:$0xf]  ;;  %v3488_v47 = vld [vmem:[#allocation5 + $0xe8] sm:$0xf0]  ;;  %v3411_v63 = vor.u32 %v3952_v58, %v3408_v59  ;;  %v3991_v16 = vld [vmem:[#allocation5 + $0x174] sm:$0xf0] }
  0xd4   :  { %1664 = vmatmul.bf16.vlgmr.msrb.gmra.mxu3 %v4255_v60  ;;  %1677 = vmatpush.bf16.msra.mxu2 %v3111_v25  ;;  %v1346_v60 = vadd.f32 %v1345_v36, %v1332_v43  ;;  %v3374_v25 = vld [vmem:[#allocation5] sm:$0xf]  ;;  %v3496_v36 = vld [vmem:[#allocation5 + $0xf8] sm:$0xf0]  ;;  %v3439_v43 = vor.u32 %v3961_v33, %v3438_v32  ;;  %v3944_v32 = vld [vmem:[#allocation5 + $0x4] sm:$0xf] }
  0xd5   :  { %2114 = vmatpush.bf16.msra.mxu3 %v3431_v20  ;;  %v1415_v55 = vpop.f32.mrf.mxu2  ;;  %v3375_v31 = vor.u32 %v3945_v26, %v3374_v25  ;;  %v3384_v25 = vld [vmem:[#allocation5 + $0x18] sm:$0xf0]  ;;  %v3550_v26 = vld [vmem:[#allocation5 + $0x160] sm:$0xf]  ;;  %v3962_v33 = vld [vmem:[#allocation5 + $0x94] sm:$0xf] }
  0xd6   :  { %1691 = vmatpush.bf16.msrb.mxu0 %v3239_v34  ;;  %v1360_v0 = vadd.f32 %v1359_v40, %v1346_v60  ;;  %v1387_v14 = vpop.f32.mrf.mxu0  ;;  %v1712_v34 = vmax.f32 %v1414_v24, 0.0  ;;  %v3424_v40 = vld [vmem:[#allocation5 + $0x68] sm:$0xf0]  ;;  %v3491_v60 = vor.u32 %v3972_v54, %v3488_v47  ;;  %v3526_v58 = vld [vmem:[#allocation5 + $0x130] sm:$0xf] }
  0xd7   :  { %2128 = vmatpush.bf16.msrb.mxu1 %v3495_v29  ;;  %1678 = vmatmul.bf16.vlgmr.msra.gmra.mxu2 %v4291_v37  ;;  %v3471_v37 = vor.u32 %v3969_v56, %v3470_v53  ;;  %v3432_v29 = vld [vmem:[#allocation5 + $0x78] sm:$0xf0]  ;;  %v1427_v38 = vpop.f32.mrf.mxu3  ;;  %v3427_v46 = vor.u32 %v3956_v39, %v3424_v40  ;;  %v3970_v53 = vld [vmem:[#allocation5 + $0xd4] sm:$0xf]  ;;  %v3987_v39 = vld [vmem:[#allocation5 + $0x154] sm:$0xf0] }
  0xd8   :  { %v1374_v9 = vadd.f32 %v1373_v4, %v1360_v0  ;;  %v1401_v18 = vpop.f32.mrf.mxu1  ;;  %v3435_v35 = vor.u32 %v3958_v28, %v3432_v29  ;;  %v3480_v56 = vld [vmem:[#allocation5 + $0xd8] sm:$0xf0]  ;;  %v3472_v0 = vld [vmem:[#allocation5 + $0xc8] sm:$0xf0]  ;;  %v3983_v59 = vld [vmem:[#allocation5 + $0x134] sm:$0xf0] }
  0xd9   :  { %2115 = vmatpush.bf16.msra.mxu3 %v3423_v30  ;;  %1692 = vmatmul.bf16.vlgmr.msrb.gmra.mxu0 %v4293_v42  ;;  %v3390_v42 = vld [vmem:[#allocation5 + $0x20] sm:$0xf]  ;;  %v3483_v62 = vor.u32 %v3970_v53, %v3480_v56  ;;  %v3440_v54 = vld [vmem:[#allocation5 + $0x88] sm:$0xf0] }
  0xda   :  { %v3391_v10 = vor.u32 %v3949_v6, %v3390_v42  ;;  %v1388_v17 = vadd.f32 %v1387_v14, %v1374_v9  ;;  %v3403_v6 = vor.u32 %v3950_v2, %v3400_v3  ;;  %v3966_v9 = vld [vmem:[#allocation5 + $0xb4] sm:$0xf]  ;;  %v3392_v14 = vld [vmem:[#allocation5 + $0x28] sm:$0xf0] }
  0xdb   :  { %2129 = vmatpush.bf16.msrb.mxu1 %v3487_v41 }
  0xdc   :  { %v1402_v20 = vadd.f32 %v1401_v18, %v1388_v17  ;;  %v3559_v17 = vor.u32 %v3991_v16, %v3558_v15  ;;  %v3560_v16 = vld [vmem:[#allocation5 + $0x178] sm:$0xf0] }
  0xdd   :  { %2116 = vmatpush.bf16.msra.mxu3 %v3415_v44  ;;  %v3499_v44 = vor.u32 %v3974_v8, %v3496_v36  ;;  %v1441_v45 = vpop.f32.mrf.mxu2  ;;  %v3376_v36 = vld [vmem:[#allocation5 + $0x8] sm:$0xf0] }
  0xde   :  { %v1416_v27 = vadd.f32 %v1415_v55, %v1402_v20  ;;  %v3946_v20 = vld [vmem:[#allocation5 + $0x14] sm:$0xf]  ;;  %2142 = vmatpush.bf16.msrb.mxu2 %v3559_v17 }
  0xdf   :  { %2130 = vmatpush.bf16.msrb.mxu1 %v3479_v49  ;;  %v3416_v49 = vld [vmem:[#allocation5 + $0x58] sm:$0xf0]  ;;  %v1429_v61 = vpop.f32.mrf.mxu3 }
  0xe0   :  { %v1716_v30 = vmax.f32 %v1416_v27, 0.0  ;;  %v1430_v12 = vadd.f32 %v1429_v61, %v294_v57  ;;  %v3989_v27 = vld [vmem:[#allocation5 + $0x164] sm:$0xf0]  ;;  %v3527_v61 = vor.u32 %v3983_v59, %v3526_v58 }
  0xe1   :  { %2117 = vmatpush.bf16.msra.mxu3 %v3407_v51  ;;  %v3419_v51 = vor.u32 %v3954_v48, %v3416_v49  ;;  %v3551_v29 = vor.u32 %v3989_v27, %v3550_v26  ;;  %v3534_v49 = vld [vmem:[#allocation5 + $0x140] sm:$0xf]  ;;  %v3544_v26 = vld [vmem:[#allocation5 + $0x158] sm:$0xf0] }
  0xe2   :  { %3371 = vmatmul.msk.bf16.vlgmr.msra.gmra.mxu1 %vm1316_vm0, %v4275_v50  ;;  %v3447_v50 = vor.u32 %v3963_v23, %v3446_v22  ;;  %v4327_v41 = vpack.c.bf16 %v1716_v30, %v1712_v34  ;;  %v3456_v22 = vld [vmem:[#allocation5 + $0xa8] sm:$0xf0]  ;;  %v3448_v34 = vld [vmem:[#allocation5 + $0x98] sm:$0xf0] }
  0xe3   :  { %2131 = vmatpush.bf16.msrb.mxu1 %v3471_v37  ;;  %v3968_v37 = vld [vmem:[#allocation5 + $0xc4] sm:$0xf]  ;;  %2143 = vmatpush.bf16.msrb.mxu2 %v3551_v29  ;;  %v4005_v29 = vld [vmem:[#allocation5 + $0x1e4] sm:$0xf0] }
  0xe4   :  { %v3475_v42 = vor.u32 %v3968_v37, %v3472_v0  ;;  %v3518_v37 = vld [vmem:[#allocation5 + $0x120] sm:$0xf]  ;;  %v3981_v0 = vld [vmem:[#allocation5 + $0x124] sm:$0xf0] }
  0xe5   :  { %2118 = vmatpush.bf16.msra.mxu3 %v3399_v1  ;;  %v1428_v1 = vadd.f32 %v1427_v38, %v294_v57  ;;  %v1443_v5 = vpop.f32.mrf.mxu2  ;;  %v3542_v38 = vld [vmem:[#allocation5 + $0x150] sm:$0xf]  ;;  %v3519_v2 = vor.u32 %v3981_v0, %v3518_v37 }
  0xe6   :  { %v1444_v24 = vadd.f32 %v1443_v5, %v1430_v12 }
  0xe7   :  { %2132 = vmatpush.bf16.msrb.mxu1 %v3463_v7  ;;  %v3948_v7 = vld [vmem:[#allocation5 + $0x24] sm:$0xf]  ;;  %v1442_v11 = vadd.f32 %v1441_v45, %v1428_v1  ;;  %v3379_v45 = vor.u32 %v3944_v32, %v3376_v36 }
  0xe9   :  { %2119 = vmatpush.bf16.msra.mxu3 %v3391_v10  ;;  %v3464_v10 = vld [vmem:[#allocation5 + $0xb8] sm:$0xf0] }
  0xea   :  { %v3467_v18 = vor.u32 %v3966_v9, %v3464_v10  ;;  %v3510_v9 = vld [vmem:[#allocation5 + $0x110] sm:$0xf]  ;;  %v3979_v10 = vld [vmem:[#allocation5 + $0x114] sm:$0xf0] }
  0xeb   :  { %2133 = vmatpush.bf16.msrb.mxu1 %v3455_v19  ;;  %v3395_v19 = vor.u32 %v3948_v7, %v3392_v14  ;;  %v3977_v14 = vld [vmem:[#allocation5 + $0x104] sm:$0xf0] }
  0xed   :  { %2120 = vmatpush.bf16.msra.mxu3 %v3383_v21  ;;  %v3964_v21 = vld [vmem:[#allocation5 + $0xa4] sm:$0xf] }
  0xee   :  { %v1455_v4 = vpop.f32.mrf.mxu0 }
  0xef   :  { %2134 = vmatpush.bf16.msrb.mxu1 %v3447_v50  ;;  %v1469_v13 = vpop.f32.mrf.mxu1  ;;  %v1456_v23 = vadd.f32 %v1455_v4, %v1442_v11  ;;  %v3459_v50 = vor.u32 %v3964_v21, %v3456_v22  ;;  %v3511_v11 = vor.u32 %v3979_v10, %v3510_v9  ;;  %v3622_v21 = vld [vmem:[#allocation5 + $0x1f0] sm:$0xf]  ;;  %v4007_v22 = vld [vmem:[#allocation5 + $0x1f4] sm:$0xf0] }
  0xf0   :  { %v3574_v10 = vld [vmem:[#allocation5 + $0x190] sm:$0xf] }
  0xf1   :  { %2121 = vmatpush.bf16.msra.mxu3 %v3375_v31  ;;  %v3387_v31 = vor.u32 %v3946_v20, %v3384_v25  ;;  %v3623_v25 = vor.u32 %v4007_v22, %v3622_v21  ;;  %v4006_v22 = vld [vmem:[#allocation5 + $0x1f4] sm:$0xf] }
  0xf3   :  { %2135 = vmatpush.bf16.msrb.mxu1 %v3439_v43  ;;  %v3543_v43 = vor.u32 %v3987_v39, %v3542_v38  ;;  %2156 = vmatpush.bf16.msra.mxu0 %v3623_v25  ;;  %v3982_v38 = vld [vmem:[#allocation5 + $0x134] sm:$0xf]  ;;  %v3528_v39 = vld [vmem:[#allocation5 + $0x138] sm:$0xf0] }
  0xf4   :  { %2122 = vmatmul.bf16.vlgmr.msra.gmra.mxu3 %v4327_v41 }
  0xf5   :  { %2170 = vmatpush.bf16.msrb.mxu3 %v3435_v35  ;;  %v1470_v35 = vadd.f32 %v1469_v13, %v1456_v23  ;;  %2144 = vmatpush.bf16.msrb.mxu2 %v3543_v43  ;;  %v3502_v13 = vld [vmem:[#allocation5 + $0x100] sm:$0xf]  ;;  %v3986_v23 = vld [vmem:[#allocation5 + $0x154] sm:$0xf] }
  0xf6   :  { %v1457_v28 = vpop.f32.mrf.mxu0  ;;  %v3503_v15 = vor.u32 %v3977_v14, %v3502_v13  ;;  %v3547_v27 = vor.u32 %v3986_v23, %v3544_v26  ;;  %v3598_v43 = vld [vmem:[#allocation5 + $0x1c0] sm:$0xf]  ;;  %v3624_v23 = vld [vmem:[#allocation5 + $0x1f8] sm:$0xf0] }
  0xf7   :  { %2184 = vmatpush.bf16.msra.mxu1 %v3499_v44  ;;  %v1483_v55 = vpop.f32.mrf.mxu3  ;;  %v1458_v8 = vadd.f32 %v1457_v28, %v1444_v24  ;;  %v1471_v40 = vpop.f32.mrf.mxu1  ;;  %v3451_v44 = vor.u32 %v3962_v33, %v3448_v34  ;;  %v3614_v28 = vld [vmem:[#allocation5 + $0x1e0] sm:$0xf]  ;;  %v3606_v34 = vld [vmem:[#allocation5 + $0x1d0] sm:$0xf]  ;;  %v3627_v25 = vor.u32 %v4006_v22, %v3624_v23 }
  0xf8   :  { %v1484_v47 = vadd.f32 %v1483_v55, %v1470_v35  ;;  %v4003_v35 = vld [vmem:[#allocation5 + $0x1d4] sm:$0xf0] }
  0xf9   :  { %2171 = vmatpush.bf16.msrb.mxu3 %v3427_v46  ;;  %v3960_v46 = vld [vmem:[#allocation5 + $0x84] sm:$0xf]  ;;  %v1472_v48 = vadd.f32 %v1471_v40, %v1458_v8  ;;  %v295_v8 = vperm.slane %v4318_v52, 2  ;;  %v3607_v36 = vor.u32 %v4003_v35, %v3606_v34  ;;  %v3531_v40 = vor.u32 %v3982_v38, %v3528_v39  ;;  %v3608_v34 = vld [vmem:[#allocation5 + $0x1d8] sm:$0xf0] }
  0xfa   :  { %v1497_v30 = vpop.f32.mrf.mxu2  ;;  %v3443_v57 = vor.u32 %v3960_v46, %v3440_v54 }
  0xfb   :  { %2185 = vmatpush.bf16.msra.mxu1 %v3491_v60  ;;  %v3985_v60 = vld [vmem:[#allocation5 + $0x144] sm:$0xf0] }
  0xfc   :  { %v3535_v56 = vor.u32 %v3985_v60, %v3534_v49 }
  0xfd   :  { %2172 = vmatpush.bf16.msrb.mxu3 %v3419_v51 }
  0xfe   :  { %v1511_v53 = vpop.f32.mrf.mxu0  ;;  %2145 = vmatpush.bf16.msrb.mxu2 %v3535_v56  ;;  %v3978_v56 = vld [vmem:[#allocation5 + $0x114] sm:$0xf] }
  0xff   :  { %2186 = vmatpush.bf16.msra.mxu1 %v3483_v62  ;;  %v1485_v51 = vpop.f32.mrf.mxu3  ;;  %v1498_v62 = vadd.f32 %v1497_v30, %v1484_v47  ;;  %v3615_v30 = vor.u32 %v4005_v29, %v3614_v28  ;;  %v4004_v28 = vld [vmem:[#allocation5 + $0x1e4] sm:$0xf]  ;;  %v3616_v29 = vld [vmem:[#allocation5 + $0x1e8] sm:$0xf0] }
 0x101   :  { %2173 = vmatpush.bf16.msrb.mxu3 %v3411_v63  ;;  %v1486_v63 = vadd.f32 %v1485_v51, %v1472_v48  ;;  %v1512_v3 = vadd.f32 %v1511_v53, %v1498_v62  ;;  %2157 = vmatpush.bf16.msra.mxu0 %v3615_v30  ;;  %v3520_v48 = vld [vmem:[#allocation5 + $0x128] sm:$0xf0]  ;;  %v3590_v51 = vld [vmem:[#allocation5 + $0x1b0] sm:$0xf]  ;;  %v3999_v53 = vld [vmem:[#allocation5 + $0x1b4] sm:$0xf0] }
 0x102   :  { %v1499_v1 = vpop.f32.mrf.mxu2  ;;  %2146 = vmatpush.bf16.msrb.mxu2 %v3527_v61  ;;  %v3591_v59 = vor.u32 %v3999_v53, %v3590_v51  ;;  %v3512_v61 = vld [vmem:[#allocation5 + $0x118] sm:$0xf0]  ;;  %v3996_v53 = vld [vmem:[#allocation5 + $0x1a4] sm:$0xf] }
 0x103   :  { %2187 = vmatpush.bf16.msra.mxu1 %v3475_v42  ;;  %v1500_v4 = vadd.f32 %v1499_v1, %v1486_v63  ;;  %v3515_v37 = vor.u32 %v3978_v56, %v3512_v61  ;;  %v3584_v56 = vld [vmem:[#allocation5 + $0x1a8] sm:$0xf0]  ;;  %v3576_v61 = vld [vmem:[#allocation5 + $0x198] sm:$0xf0] }
 0x105   :  { %2174 = vmatpush.bf16.msrb.mxu3 %v3403_v6  ;;  %v1713_v6 = vmax.f32 %v1512_v3, 0.0  ;;  %2158 = vmatpush.bf16.msra.mxu0 %v3607_v36  ;;  %v3997_v3 = vld [vmem:[#allocation5 + $0x1a4] sm:$0xf0] }
 0x106   :  { %v1513_v5 = vpop.f32.mrf.mxu0  ;;  %2147 = vmatpush.bf16.msrb.mxu2 %v3519_v2  ;;  %v3582_v2 = vld [vmem:[#allocation5 + $0x1a0] sm:$0xf] }
 0x107   :  { %2188 = vmatpush.bf16.msra.mxu1 %v3467_v18  ;;  %v1514_v42 = vadd.f32 %v1513_v5, %v1500_v4  ;;  %v3988_v18 = vld [vmem:[#allocation5 + $0x164] sm:$0xf]  ;;  %v3583_v5 = vor.u32 %v3997_v3, %v3582_v2  ;;  %v3568_v3 = vld [vmem:[#allocation5 + $0x188] sm:$0xf0] }
 0x108   :  { %v3976_v4 = vld [vmem:[#allocation5 + $0x104] sm:$0xf] }
 0x109   :  { %2175 = vmatpush.bf16.msrb.mxu3 %v3395_v19  ;;  %v1717_v7 = vmax.f32 %v1514_v42, 0.0  ;;  %v3552_v19 = vld [vmem:[#allocation5 + $0x168] sm:$0xf0] }
 0x10a   :  { %2148 = vmatpush.bf16.msrb.mxu2 %v3511_v11  ;;  %v3555_v20 = vor.u32 %v3988_v18, %v3552_v19  ;;  %v3504_v42 = vld [vmem:[#allocation5 + $0x108] sm:$0xf0]  ;;  %v3995_v11 = vld [vmem:[#allocation5 + $0x194] sm:$0xf0]  ;;  %v3993_v18 = vld [vmem:[#allocation5 + $0x184] sm:$0xf0] }
 0x10b   :  { %2189 = vmatpush.bf16.msra.mxu1 %v3459_v50  ;;  %v1721_v12 = vpack.c.bf16 %v1717_v7, %v1713_v6  ;;  %v3984_v50 = vld [vmem:[#allocation5 + $0x144] sm:$0xf]  ;;  %v3507_v9 = vor.u32 %v3976_v4, %v3504_v42  ;;  %v3575_v13 = vor.u32 %v3995_v11, %v3574_v10 }
 0x10d   :  { %2176 = vmatpush.bf16.msrb.mxu3 %v3387_v31  ;;  %2136 = vmatmul.bf16.vlgmr.msrb.gmra.mxu1 %v1721_v12  ;;  %v3536_v31 = vld [vmem:[#allocation5 + $0x148] sm:$0xf0] }
 0x10e   :  { %2149 = vmatpush.bf16.msrb.mxu2 %v3503_v15  ;;  %v3539_v32 = vor.u32 %v3984_v50, %v3536_v31  ;;  %v3619_v31 = vor.u32 %v4004_v28, %v3616_v29  ;;  %v4023_v28 = vld [vmem:[#allocation7 + $0x78] sm:$0xff]  ;;  %v4010_v29 = vld [vmem:[#allocation7 + $0x10] sm:$0xff] }
 0x10f   :  { %2190 = vmatpush.bf16.msra.mxu1 %v3451_v44  ;;  %v1525_v24 = vpop.f32.mrf.mxu1  ;;  %v4001_v44 = vld [vmem:[#allocation5 + $0x1c4] sm:$0xf0] }
 0x110   :  { %v3599_v47 = vor.u32 %v4001_v44, %v3598_v43  ;;  %v1526_v60 = vadd.f32 %v1525_v24, %v295_v8  ;;  %v4000_v43 = vld [vmem:[#allocation5 + $0x1c4] sm:$0xf]  ;;  %v3600_v44 = vld [vmem:[#allocation5 + $0x1c8] sm:$0xf0] }
 0x111   :  { %2177 = vmatpush.bf16.msrb.mxu3 %v3379_v45  ;;  %v3980_v45 = vld [vmem:[#allocation5 + $0x124] sm:$0xf] }
 0x112   :  { %v1553_v55 = vpop.f32.mrf.mxu0  ;;  %v3523_v49 = vor.u32 %v3980_v45, %v3520_v48  ;;  %2159 = vmatpush.bf16.msra.mxu0 %v3599_v47  ;;  %v3603_v45 = vor.u32 %v4000_v43, %v3600_v44  ;;  %v296_v47 = vperm.slane %v4318_v52, 3  ;;  %v3992_v52 = vld [vmem:[#allocation5 + $0x184] sm:$0xf] }
 0x113   :  { %2191 = vmatpush.bf16.msra.mxu1 %v3443_v57  ;;  %v4016_v43 = vld [vmem:[#allocation7 + $0x40] sm:$0xff] }
 0x114   :  { %2178 = vmatmul.bf16.vlgmr.msrb.gmra.mxu3 %v4327_v41  ;;  %v3990_v41 = vld [vmem:[#allocation5 + $0x174] sm:$0xf] }
 0x115   :  { %v3563_v17 = vor.u32 %v3990_v41, %v3560_v16 }
 0x116   :  { %2160 = vmatpush.bf16.msra.mxu0 %v3591_v59  ;;  %v3994_v59 = vld [vmem:[#allocation5 + $0x194] sm:$0xf] }
 0x117   :  { %2198 = vmatpush.bf16.msra.mxu2 %v3563_v17  ;;  %v1539_v33 = vpop.f32.mrf.mxu3  ;;  %v1527_v46 = vpop.f32.mrf.mxu1  ;;  %v3566_v17 = vld [vmem:[#allocation5 + $0x180] sm:$0xf]  ;;  %2378 = vmatpush.bf16.msrb.mxu1 %v4023_v28 }
 0x118   :  { %v1540_v62 = vadd.f32 %v1539_v33, %v1526_v60  ;;  %v1528_v63 = vadd.f32 %v1527_v46, %v295_v8  ;;  %v3567_v21 = vor.u32 %v3993_v18, %v3566_v17  ;;  %v4002_v33 = vld [vmem:[#allocation5 + $0x1d4] sm:$0xf] }
 0x119   :  { %v3611_v36 = vor.u32 %v4002_v33, %v3608_v34  ;;  %v3998_v46 = vld [vmem:[#allocation5 + $0x1b4] sm:$0xf]  ;;  %v4020_v33 = vld [vmem:[#allocation7 + $0x60] sm:$0xff]  ;;  %v4019_v34 = vld [vmem:[#allocation7 + $0x58] sm:$0xff] }
 0x11a   :  { %v1555_v54 = vpop.f32.mrf.mxu0  ;;  %v1567_v57 = vpop.f32.mrf.mxu2  ;;  %v1554_v6 = vadd.f32 %v1553_v55, %v1540_v62  ;;  %2161 = vmatpush.bf16.msra.mxu0 %v3583_v5  ;;  %v3579_v62 = vor.u32 %v3994_v59, %v3576_v61  ;;  %v3571_v5 = vor.u32 %v3992_v52, %v3568_v3 }
 0x11b   :  { %2199 = vmatpush.bf16.msra.mxu2 %v3555_v20 }
 0x11c   :  { %v1568_v14 = vadd.f32 %v1567_v57, %v1554_v6 }
 0x11d   :  { %2192 = vmatmul.bf16.vlgmr.msra.gmra.mxu1 %v1721_v12 }
 0x11e   :  { %2162 = vmatpush.bf16.msra.mxu0 %v3575_v13 }
 0x11f   :  { %2200 = vmatpush.bf16.msra.mxu2 %v3547_v27  ;;  %v1541_v58 = vpop.f32.mrf.mxu3 }
 0x120   :  { %v1542_v7 = vadd.f32 %v1541_v58, %v1528_v63  ;;  %v3587_v58 = vor.u32 %v3996_v53, %v3584_v56 }
 0x122   :  { %v1609_v1 = vpop.f32.mrf.mxu0  ;;  %v1556_v15 = vadd.f32 %v1555_v54, %v1542_v7  ;;  %v1569_v41 = vpop.f32.mrf.mxu2  ;;  %2163 = vmatpush.bf16.msra.mxu0 %v3567_v21  ;;  %v3592_v54 = vld [vmem:[#allocation5 + $0x1b8] sm:$0xf0] }
 0x123   :  { %2201 = vmatpush.bf16.msra.mxu2 %v3539_v32  ;;  %v3595_v48 = vor.u32 %v3998_v46, %v3592_v54  ;;  %v4031_v54 = vld [vmem:[%s4395_s7 + $0x38] sm:$0xff] }
 0x124   :  { %v1570_v24 = vadd.f32 %v1569_v41, %v1556_v15 }
 0x126   :  { %2212 = vmatpush.bf16.msrb.mxu0 %v3627_v25  ;;  %v4013_v25 = vld [vmem:[#allocation7 + $0x28] sm:$0xff] }
 0x127   :  { %2202 = vmatpush.bf16.msra.mxu2 %v3531_v40 }
 0x12a   :  { %v1611_v20 = vpop.f32.mrf.mxu0  ;;  %2213 = vmatpush.bf16.msrb.mxu0 %v3619_v31  ;;  %v4021_v31 = vld [vmem:[#allocation7 + $0x68] sm:$0xff] }
 0x12b   :  { %2203 = vmatpush.bf16.msra.mxu2 %v3523_v49 }
 0x12e   :  { %2214 = vmatpush.bf16.msrb.mxu0 %v3611_v36 }
 0x12f   :  { %v1581_v0 = vpop.f32.mrf.mxu1  ;;  %2204 = vmatpush.bf16.msra.mxu2 %v3515_v37 }
 0x130   :  { %v1582_v16 = vadd.f32 %v1581_v0, %v1568_v14 }
 0x132   :  { %2215 = vmatpush.bf16.msrb.mxu0 %v3603_v45 }
 0x133   :  { %2205 = vmatpush.bf16.msra.mxu2 %v3507_v9 }
 0x136   :  { %v1637_v39 = vpop.f32.mrf.mxu0  ;;  %2216 = vmatpush.bf16.msrb.mxu0 %v3595_v48 }
 0x137   :  { %v1595_v12 = vpop.f32.mrf.mxu3  ;;  %v1583_v19 = vpop.f32.mrf.mxu1 }
 0x138   :  { %v1596_v55 = vadd.f32 %v1595_v12, %v1582_v16  ;;  %v1584_v26 = vadd.f32 %v1583_v19, %v1570_v24  ;;  %v4015_v24 = vld [vmem:[#allocation7 + $0x38] sm:$0xff] }
 0x139   :  { %2364 = vmatpush.bf16.msra.mxu3 %v4015_v24  ;;  %v4024_v24 = vld [vmem:[%s4395_s7] sm:$0xff] }
 0x13a   :  { %v1610_v50 = vadd.f32 %v1609_v1, %v1596_v55  ;;  %v1623_v38 = vpop.f32.mrf.mxu2  ;;  %2217 = vmatpush.bf16.msrb.mxu0 %v3587_v58  ;;  %v4014_v55 = vld [vmem:[#allocation7 + $0x30] sm:$0xff] }
 0x13b   :  { %v1624_v57 = vadd.f32 %v1623_v38, %v296_v47 }
 0x13c   :  { %v1714_v35 = vmax.f32 %v1610_v50, 0.0  ;;  %v4022_v50 = vld [vmem:[#allocation7 + $0x70] sm:$0xff] }
 0x13d   :  { %v1638_v63 = vadd.f32 %v1637_v39, %v1624_v57  ;;  %2365 = vmatpush.bf16.msra.mxu3 %v4014_v55  ;;  %2379 = vmatpush.bf16.msrb.mxu1 %v4022_v50  ;;  %v4017_v39 = vld [vmem:[#allocation7 + $0x48] sm:$0xff]  ;;  %v4035_v55 = vld [vmem:[%s4397_s9 + $0x18] sm:$0xff] }
 0x13e   :  { %v1639_v51 = vpop.f32.mrf.mxu0  ;;  %2218 = vmatpush.bf16.msrb.mxu0 %v3579_v62 }
 0x13f   :  { %v1597_v27 = vpop.f32.mrf.mxu3 }
 0x140   :  { %v1598_v30 = vadd.f32 %v1597_v27, %v1584_v26  ;;  %v4012_v26 = vld [vmem:[#allocation7 + $0x20] sm:$0xff]  ;;  %v4011_v27 = vld [vmem:[#allocation7 + $0x18] sm:$0xff] }
 0x141   :  { %2366 = vmatpush.bf16.msra.mxu3 %v4013_v25  ;;  %2380 = vmatpush.bf16.msrb.mxu1 %v4021_v31 }
 0x142   :  { %v1612_v32 = vadd.f32 %v1611_v20, %v1598_v30  ;;  %v1625_v60 = vpop.f32.mrf.mxu2  ;;  %2219 = vmatpush.bf16.msrb.mxu0 %v3571_v5  ;;  %v4009_v30 = vld [vmem:[#allocation7 + $0x8] sm:$0xff] }
 0x143   :  { %v1626_v0 = vadd.f32 %v1625_v60, %v296_v47  ;;  %v4030_v60 = vld [vmem:[%s4395_s7 + $0x30] sm:$0xff] }
 0x144   :  { %v1718_v8 = vmax.f32 %v1612_v32, 0.0  ;;  %v4008_v32 = vld [vmem:[#allocation7] sm:$0xff] }
 0x145   :  { %v1640_v42 = vadd.f32 %v1639_v51, %v1626_v0  ;;  %2367 = vmatpush.bf16.msra.mxu3 %v4012_v26  ;;  %2381 = vmatpush.bf16.msrb.mxu1 %v4020_v33 }
 0x146   :  { %v1722_v40 = vpack.c.bf16 %v1718_v8, %v1714_v35  ;;  %v4018_v35 = vld [vmem:[#allocation7 + $0x50] sm:$0xff] }
 0x148   :  { %2150 = vmatmul.bf16.vlgmr.msrb.gmra.mxu2 %v1722_v40 }
 0x149   :  { %2368 = vmatpush.bf16.msra.mxu3 %v4011_v27  ;;  %2382 = vmatpush.bf16.msrb.mxu1 %v4019_v34  ;;  %v4046_v27 = vld [vmem:[%s4394_s6] ss:$0 sm:$0xff] }
 0x14a   :  { %2463 = vmatpush.bf16.msrb.mxu2 %v4031_v54 }
 0x14d   :  { %2369 = vmatpush.bf16.msra.mxu3 %v4010_v29  ;;  %2383 = vmatpush.bf16.msrb.mxu1 %v4018_v35 }
 0x14e   :  { %2464 = vmatpush.bf16.msrb.mxu2 %v4030_v60 }
 0x14f   :  { %v1651_v49 = vpop.f32.mrf.mxu1 }
 0x150   :  { %v1652_v4 = vadd.f32 %v1651_v49, %v1638_v63 }
 0x151   :  { %2370 = vmatpush.bf16.msra.mxu3 %v4009_v30  ;;  %2384 = vmatpush.bf16.msrb.mxu1 %v4017_v39 }
 0x155   :  { %2371 = vmatpush.bf16.msra.mxu3 %v4008_v32  ;;  %2385 = vmatpush.bf16.msrb.mxu1 %v4016_v43 }
 0x156   :  { %v1693_v6 = vpop.f32.mrf.mxu0 }
 0x157   :  { %v1665_v37 = vpop.f32.mrf.mxu3  ;;  %v1653_v1 = vpop.f32.mrf.mxu1 }
 0x158   :  { %2206 = vmatmul.bf16.vlgmr.msra.gmra.mxu2 %v1722_v40  ;;  %v1666_v7 = vadd.f32 %v1665_v37, %v1652_v4  ;;  %v1654_v9 = vadd.f32 %v1653_v1, %v1640_v42  ;;  %v1788_v40 = vld [vmem:[%s4392_s4] sm:$0x3] }
 0x159   :  { %v1790_v44 = vperm.slane %v1788_v40, 0  ;;  %v1791_v52 = vperm.slane %v1788_v40, 1  ;;  %v4047_v40 = vld [vmem:[%s4396_s8] ss:$0 sm:$0xff]  ;;  %s2542_s8 = sshll.u32 %s4399_s11, 4  ;;  %s2543_s8 = int_to_ptr.hbm [resolvable:$true] %s2542_s8 }
 0x15a   :  { %v1679_v2 = vpop.f32.mrf.mxu2 }
 0x15b   :  { %v1680_v13 = vadd.f32 %v1679_v2, %v1666_v7 }
 0x15d   :  { %v1694_v41 = vadd.f32 %v1693_v6, %v1680_v13 }
 0x15e   :  { %v1695_v16 = vpop.f32.mrf.mxu0 }
 0x15f   :  { %v1667_v10 = vpop.f32.mrf.mxu3  ;;  %v1707_v12 = vpop.f32.mrf.mxu1 }
 0x160   :  { %v1668_v11 = vadd.f32 %v1667_v10, %v1654_v9  ;;  %v1708_v17 = vadd.f32 %v1707_v12, %v1694_v41 }
 0x162   :  { %v1681_v14 = vpop.f32.mrf.mxu2  ;;  %v1715_v21 = vmax.f32 %v1708_v17, 0.0 }
 0x163   :  { %v1682_v15 = vadd.f32 %v1681_v14, %v1668_v11 }
 0x165   :  { %v1696_v18 = vadd.f32 %v1695_v16, %v1682_v15 }
 0x167   :  { %v1709_v19 = vpop.f32.mrf.mxu1 }
 0x168   :  { %v1710_v20 = vadd.f32 %v1709_v19, %v1696_v18  ;;  %v4029_v19 = vld [vmem:[%s4395_s7 + $0x28] sm:$0xff] }
 0x169   :  { %2465 = vmatpush.bf16.msrb.mxu2 %v4029_v19 }
 0x16a   :  { %v1719_v22 = vmax.f32 %v1710_v20, 0.0  ;;  %v4028_v20 = vld [vmem:[%s4395_s7 + $0x20] sm:$0xff] }
 0x16c   :  { %v1723_v23 = vpack.c.bf16 %v1719_v22, %v1715_v21  ;;  %v4027_v21 = vld [vmem:[%s4395_s7 + $0x18] sm:$0xff]  ;;  %v4026_v22 = vld [vmem:[%s4395_s7 + $0x10] sm:$0xff] }
 0x16d   :  { %2466 = vmatpush.bf16.msrb.mxu2 %v4028_v20 }
 0x16e   :  { %2164 = vmatmul.bf16.vlgmr.msra.gmra.mxu0 %v1723_v23 }
 0x16f   :  { %2524 = vmatpush.bf16.msra.mxu0 %v4035_v55 }
 0x171   :  { %2467 = vmatpush.bf16.msrb.mxu2 %v4027_v21 }
 0x175   :  { %2468 = vmatpush.bf16.msrb.mxu2 %v4026_v22 }
 0x177   :  { %v2123_v8 = vpop.f32.mrf.mxu3 }
 0x178   :  { %v2124_v49 = vadd.f32 %v2123_v8, %v1790_v44  ;;  %v4034_v8 = vld [vmem:[%s4397_s9 + $0x10] sm:$0xff] }
 0x179   :  { %2525 = vmatpush.bf16.msra.mxu0 %v4034_v8 }
 0x17e   :  { %2220 = vmatmul.bf16.vlgmr.msrb.gmra.mxu0 %v1723_v23  ;;  %v4025_v23 = vld [vmem:[%s4395_s7 + $0x8] sm:$0xff] }
 0x17f   :  { %v2125_v45 = vpop.f32.mrf.mxu3  ;;  %2469 = vmatpush.bf16.msrb.mxu2 %v4025_v23 }
 0x180   :  { %v2126_v51 = vadd.f32 %v2125_v45, %v1790_v44 }
 0x183   :  { %2470 = vmatpush.bf16.msrb.mxu2 %v4024_v24 }
 0x18a   :  { %v2137_v36 = vpop.f32.mrf.mxu1 }
 0x18b   :  { %v2138_v53 = vadd.f32 %v2137_v36, %v2124_v49  ;;  %v4033_v36 = vld [vmem:[%s4397_s9 + $0x8] sm:$0xff] }
 0x18c   :  { %2526 = vmatpush.bf16.msra.mxu0 %v4033_v36 }
 0x192   :  { %v2139_v46 = vpop.f32.mrf.mxu1 }
 0x193   :  { %v2140_v56 = vadd.f32 %v2139_v46, %v2126_v51 }
 0x197   :  { %v2179_v58 = vpop.f32.mrf.mxu3 }
 0x198   :  { %v2180_v42 = vadd.f32 %v2179_v58, %v1791_v52 }
 0x19a   :  { %v2193_v62 = vpop.f32.mrf.mxu1 }
 0x19b   :  { %v2194_v9 = vadd.f32 %v2193_v62, %v2180_v42 }
 0x19f   :  { %v2181_v4 = vpop.f32.mrf.mxu3 }
 0x1a0   :  { %v2182_v7 = vadd.f32 %v2181_v4, %v1791_v52 }
 0x1a2   :  { %v2195_v6 = vpop.f32.mrf.mxu1 }
 0x1a3   :  { %v2196_v11 = vadd.f32 %v2195_v6, %v2182_v7 }
 0x1cb   :  { %v2151_v38 = vpop.f32.mrf.mxu2 }
 0x1cc   :  { %v2152_v57 = vadd.f32 %v2151_v38, %v2138_v53  ;;  %v4032_v38 = vld [vmem:[%s4397_s9] sm:$0xff]  ;;  %s4160_s9 = smov [#allocation8]  }
 0x1cd   :  { %2527 = vmatpush.bf16.msra.mxu0 %v4032_v38  ;;  %s2540_s12 = sshll.u32 %s4160_s9, 4  ;;  %s2541_s12 = int_to_ptr.vmem [resolvable:$true] %s2540_s12 }
 0x1d3   :  { %v2153_v47 = vpop.f32.mrf.mxu2 }
 0x1d4   :  { %v2154_v59 = vadd.f32 %v2153_v47, %v2140_v56 }
 0x1db   :  { %v2207_v0 = vpop.f32.mrf.mxu2 }
 0x1dc   :  { %v2208_v12 = vadd.f32 %v2207_v0, %v2194_v9 }
 0x1e3   :  { %v2209_v10 = vpop.f32.mrf.mxu2 }
 0x1e4   :  { %v2210_v13 = vadd.f32 %v2209_v10, %v2196_v11 }
 0x1eb   :  { %v2165_v48 = vpop.f32.mrf.mxu0 }
 0x1ec   :  { %v2166_v61 = vadd.f32 %v2165_v48, %v2152_v57  ;;  %v4048_v48 = vld [vmem:[%s4398_s10] ss:$0 sm:$0xff] }
 0x1ee   :  { %v2226_v1 = vmax.f32 %v2166_v61, 0.0 }
 0x1f3   :  { %v2167_v63 = vpop.f32.mrf.mxu0 }
 0x1f4   :  { %v2168_v37 = vadd.f32 %v2167_v63, %v2154_v59 }
 0x1f6   :  { %v2228_v2 = vmax.f32 %v2168_v37, 0.0 }
 0x1f8   :  { %v2230_v3 = vpack.c.bf16 %v2228_v2, %v2226_v1 }
 0x1fa   :  { %2372 = vmatmul.bf16.vlgmr.msra.gmra.mxu3 %v2230_v3 }
 0x1fb   :  { %v2221_v5 = vpop.f32.mrf.mxu0 }
 0x1fc   :  { %v2222_v14 = vadd.f32 %v2221_v5, %v2208_v12 }
 0x1fe   :  { %v2227_v16 = vmax.f32 %v2222_v14, 0.0 }
 0x203   :  { %v2223_v15 = vpop.f32.mrf.mxu0 }
 0x204   :  { %v2224_v41 = vadd.f32 %v2223_v15, %v2210_v13 }
 0x206   :  { %v2229_v17 = vmax.f32 %v2224_v41, 0.0 }
 0x208   :  { %v2231_v18 = vpack.c.bf16 %v2229_v17, %v2227_v16 }
 0x20a   :  { %2386 = vmatmul.bf16.vlgmr.msrb.gmra.mxu1 %v2231_v18 }
 0x27d   :  { %v2373_v25 = vpop.f32.mrf.mxu3 }
 0x27e   :  { %v2374_v29 = vadd.f32 %v4046_v27, %v2373_v25 }
 0x285   :  { %v2375_v28 = vpop.f32.mrf.mxu3 }
 0x286   :  { %v2376_v50 = vadd.f32 %v4046_v27, %v2375_v28 }
 0x287   :  { %v2387_v26 = vpop.f32.mrf.mxu1 }
 0x288   :  { %v2388_v30 = vadd.f32 %v2387_v26, %v2374_v29 }
 0x28a   :  { %v2392_v33 = vmax.f32 %v2388_v30, 0.0 }
 0x28f   :  { %v2389_v31 = vpop.f32.mrf.mxu1 }
 0x290   :  { %v2390_v32 = vadd.f32 %v2389_v31, %v2376_v50 }
 0x292   :  { %v2393_v34 = vmax.f32 %v2390_v32, 0.0 }
 0x294   :  { %v2394_v35 = vpack.c.bf16 %v2393_v34, %v2392_v33 }
 0x296   :  { %2471 = vmatmul.bf16.vlgmr.msrb.gmra.mxu2 %v2394_v35 }
 0x319   :  { %v2472_v39 = vpop.f32.mrf.mxu2 }
 0x31a   :  { %v2473_v43 = vadd.f32 %v4047_v40, %v2472_v39 }
 0x31c   :  { %v2477_v46 = vmax.f32 %v2473_v43, 0.0 }
 0x321   :  { %v2474_v44 = vpop.f32.mrf.mxu2 }
 0x322   :  { %v2475_v45 = vadd.f32 %v4047_v40, %v2474_v44 }
 0x324   :  { %v2478_v54 = vmax.f32 %v2475_v45, 0.0 }
 0x326   :  { %v2479_v47 = vpack.c.bf16 %v2478_v54, %v2477_v46 }
 0x328   :  { %3740 = vmatmul.msk.bf16.vlgmr.msra.gmra.mxu0 %vm2516_vm1, %v2479_v47 }
 0x3a5   :  { %v2529_v49 = vpop.f32.mrf.mxu0 }
 0x3a6   :  { %v2530_v60 = vadd.f32 %v4048_v48, %v2529_v49 }
 0x3a8   :  { %2534 = vst [vmem:[#allocation8] sm:$0xff] %v2530_v60 }
 0x3ad   :  { %v2531_v51 = vpop.f32.mrf.mxu0 }
 0x3ae   :  { %v2532_v53 = vadd.f32 %v4048_v48, %v2531_v51 }
 0x3b0   :  { %2535 = vst [vmem:[#allocation8 + $0x8] sm:$0xff] %v2532_v53 }
 0x3b1   :  { %2548 = dma.vmem_to_hbm [thread:$0]  %s2541_s12, 256, %s2543_s8, [#allocation4], %s4152_s25, %s4152_s25, %s4153_s26  }
 0x3b2   :  { %4149 = dma.done.wait [#allocation4], 256  }
 0x3b3   :  { %4150 = vsyncadd [#allocation4], 4294967040 }
 0x3b4   :  { %2553 = vsyncpa [#allocation3], 1 }
 0x3b5   :  { %2554 = vsyncpa [#allocation6], 1 }
 0x3b6   :  { %2555 = vsyncpa [#allocation4], 1 }

// kernel: tpu_custom_call.1
= control target key start
LH: loop header
LB: loop body
LE: loop exit
PB: predicated region body
PF: predicated region fallthrough
CT: control target
= control target key end

     0   :  { %16 = vsyncpa [#allocation3], 0  ;;  %s4388_s0 = inlined_call_operand.vmem [shape: bf16[16,784], index: 0, kind: input, shape index: {}]   ;;  %s4389_s1 = inlined_call_operand.hbm [shape: bf16[784,512], index: 1, kind: input, shape index: {}]   ;;  %s4390_s2 = inlined_call_operand.vmem [shape: f32[1,512], index: 2, kind: input, shape index: {}]   ;;  %s4391_s3 = inlined_call_operand.hbm [shape: bf16[512,256], index: 3, kind: input, shape index: {}]   ;;  %s4392_s4 = inlined_call_operand.vmem [shape: f32[1,256], index: 4, kind: input, shape index: {}]   ;;  %s4393_s5 = inlined_call_operand.hbm [shape: bf16[256,128], index: 5, kind: input, shape index: {}]   ;;  %s4394_s6 = inlined_call_operand.vmem [shape: f32[1,128], index: 6, kind: input, shape index: {}]   ;;  %s4395_s7 = inlined_call_operand.vmem [shape: bf16[128,64], index: 7, kind: input, shape index: {}]   ;;  %s4396_s8 = inlined_call_operand.vmem [shape: f32[1,64], index: 8, kind: input, shape index: {}]   ;;  %s4397_s9 = inlined_call_operand.vmem [shape: bf16[64,128], index: 9, kind: input, shape index: {}]   ;;  %s4398_s10 = inlined_call_operand.vmem [shape: f32[1,128], index: 10, kind: input, shape index: {}]   ;;  %s4399_s11 = inlined_call_operand.hbm [shape: f32[16,128], index: 11, kind: output, shape index: {}]  }
   0x1   :  { %17 = vsyncpa [#allocation6], 0  ;;  %s40_s19 = sshll.u32 %s4391_s3, 4  ;;  %s41_s19 = int_to_ptr.hbm [resolvable:$true] %s40_s19 }
   0x2   :  { %18 = vsyncpa [#allocation4], 0  ;;  %s4151_s20 = smov [#allocation5]   ;;  %s25_s24 = sshll.u32 %s4389_s1, 4  ;;  %s26_s24 = int_to_ptr.hbm [resolvable:$true] %s25_s24 }
   0x3   :  { %s42_s21 = sshll.u32 %s4151_s20, 4  ;;  %s4152_s25 = smov 128   ;;  %s43_s21 = int_to_ptr.vmem [resolvable:$true] %s42_s21 }
   0x4   :  { %s4153_s26 = smov 8   ;;  %s4154_s27 = smov [#allocation2]  }
   0x5   :  { %48 = dma.hbm_to_vmem [thread:$0]  %s41_s19, 8192, %s43_s21, [#allocation6], %s4152_s25, %s4152_s25, %s4153_s26  }
   0x6   :  { %s27_s28 = sshll.u32 %s4154_s27, 4  ;;  %s4155_s3 = smov 256   ;;  %s28_s28 = int_to_ptr.vmem [resolvable:$true] %s27_s28 }
   0x7   :  { %s4156_s29 = smov 16   ;;  %s55_s13 = sshll.u32 %s4393_s5, 4  ;;  %s56_s13 = int_to_ptr.hbm [resolvable:$true] %s55_s13 }
   0x8   :  { %33 = dma.hbm_to_vmem [thread:$0]  %s26_s24, 25088, %s28_s28, [#allocation3], %s4155_s3, %s4155_s3, %s4156_s29  }
   0x9   :  { %s4157_s14 = smov [#allocation7]   ;;  %s4158_s15 = smov 64  }
   0xa   :  { %s57_s1 = sshll.u32 %s4157_s14, 4  ;;  %s4159_s16 = smov 4   ;;  %s58_s1 = int_to_ptr.vmem [resolvable:$true] %s57_s1 }
   0xb   :  { %63 = dma.hbm_to_vmem [thread:$0]  %s56_s13, 2048, %s58_s1, [#allocation6], %s4158_s15, %s4158_s15, %s4159_s16  }
   0xc   :  { %4145 = dma.done.wait [#allocation3], 25088  }
   0xd   :  { %4146 = vsyncadd [#allocation3], 4294942208 }
   0xe   :  { %4147 = dma.done.wait [#allocation6], 10240  }
   0xf   :  { %4148 = vsyncadd [#allocation6], 4294957056  ;;  %v2698_v0 = vld [vmem:[#allocation2 + $0xe0] sm:$0xf]  ;;  %v3778_v1 = vld [vmem:[#allocation2 + $0xec] sm:$0xf0] }
  0x10   :  { %v2826_v2 = vld [vmem:[#allocation2 + $0x1e0] sm:$0xf]  ;;  %v2699_v3 = vor.u32 %v3778_v1, %v2698_v0  ;;  %v3810_v4 = vld [vmem:[#allocation2 + $0x1ec] sm:$0xf0]  ;;  %vm1316_vm0 = vcmask 130048   ;;  %vm2516_vm1 = vcmask 523264  }
  0x11   :  { %v2954_v5 = vld [vmem:[#allocation2 + $0x2e0] sm:$0xf]  ;;  %v3842_v6 = vld [vmem:[#allocation2 + $0x2ec] sm:$0xf0]  ;;  %v2827_v7 = vor.u32 %v3810_v4, %v2826_v2 }
  0x12   :  { %v2955_v8 = vor.u32 %v3842_v6, %v2954_v5  ;;  %v3082_v9 = vld [vmem:[#allocation2 + $0x3e0] sm:$0xf]  ;;  %v3874_v10 = vld [vmem:[#allocation2 + $0x3ec] sm:$0xf0]  ;;  %1320 = vmatpush.bf16.msra.mxu0 %v2699_v3 }
  0x13   :  { %v2682_v11 = vld [vmem:[#allocation2 + $0xc0] sm:$0xf]  ;;  %v3083_v12 = vor.u32 %v3874_v10, %v3082_v9  ;;  %v3774_v13 = vld [vmem:[#allocation2 + $0xcc] sm:$0xf0]  ;;  %1334 = vmatpush.bf16.msra.mxu1 %v2827_v7 }
  0x14   :  { %v2810_v14 = vld [vmem:[#allocation2 + $0x1c0] sm:$0xf]  ;;  %v3806_v15 = vld [vmem:[#allocation2 + $0x1cc] sm:$0xf0]  ;;  %1348 = vmatpush.bf16.msra.mxu2 %v2955_v8  ;;  %v2683_v16 = vor.u32 %v3774_v13, %v2682_v11 }
  0x15   :  { %v2811_v17 = vor.u32 %v3806_v15, %v2810_v14  ;;  %v2938_v18 = vld [vmem:[#allocation2 + $0x2c0] sm:$0xf]  ;;  %v3838_v19 = vld [vmem:[#allocation2 + $0x2cc] sm:$0xf0]  ;;  %1362 = vmatpush.bf16.msra.mxu3 %v3083_v12 }
  0x16   :  { %v3066_v20 = vld [vmem:[#allocation2 + $0x3c0] sm:$0xf]  ;;  %v2939_v21 = vor.u32 %v3838_v19, %v2938_v18  ;;  %v3870_v22 = vld [vmem:[#allocation2 + $0x3cc] sm:$0xf0]  ;;  %1321 = vmatpush.bf16.msra.mxu0 %v2683_v16 }
  0x17   :  { %v2666_v23 = vld [vmem:[#allocation2 + $0xa0] sm:$0xf]  ;;  %v3770_v24 = vld [vmem:[#allocation2 + $0xac] sm:$0xf0]  ;;  %v3067_v25 = vor.u32 %v3870_v22, %v3066_v20  ;;  %1335 = vmatpush.bf16.msra.mxu1 %v2811_v17 }
  0x18   :  { %v2794_v26 = vld [vmem:[#allocation2 + $0x1a0] sm:$0xf]  ;;  %v3802_v27 = vld [vmem:[#allocation2 + $0x1ac] sm:$0xf0]  ;;  %v2667_v29 = vor.u32 %v3770_v24, %v2666_v23  ;;  %1349 = vmatpush.bf16.msra.mxu2 %v2939_v21 }
  0x19   :  { %v2922_v28 = vld [vmem:[#allocation2 + $0x2a0] sm:$0xf]  ;;  %v3834_v30 = vld [vmem:[#allocation2 + $0x2ac] sm:$0xf0]  ;;  %v2795_v33 = vor.u32 %v3802_v27, %v2794_v26  ;;  %1363 = vmatpush.bf16.msra.mxu3 %v3067_v25 }
  0x1a   :  { %v3050_v31 = vld [vmem:[#allocation2 + $0x3a0] sm:$0xf]  ;;  %v3866_v32 = vld [vmem:[#allocation2 + $0x3ac] sm:$0xf0]  ;;  %v2923_v34 = vor.u32 %v3834_v30, %v2922_v28  ;;  %1322 = vmatpush.bf16.msra.mxu0 %v2667_v29 }
  0x1b   :  { %v2650_v35 = vld [vmem:[#allocation2 + $0x80] sm:$0xf]  ;;  %v3766_v36 = vld [vmem:[#allocation2 + $0x8c] sm:$0xf0]  ;;  %v3051_v38 = vor.u32 %v3866_v32, %v3050_v31  ;;  %1336 = vmatpush.bf16.msra.mxu1 %v2795_v33  ;;  %v3776_v32 = vld [vmem:[#allocation2 + $0xe4] sm:$0xf] }
  0x1c   :  { %v2778_v37 = vld [vmem:[#allocation2 + $0x180] sm:$0xf]  ;;  %v3798_v39 = vld [vmem:[#allocation2 + $0x18c] sm:$0xf0]  ;;  %v2651_v44 = vor.u32 %v3766_v36, %v2650_v35  ;;  %1350 = vmatpush.bf16.msra.mxu2 %v2923_v34  ;;  %v2700_v33 = vld [vmem:[#allocation2 + $0xf0] sm:$0xf0] }
  0x1d   :  { %v2906_v40 = vld [vmem:[#allocation2 + $0x280] sm:$0xf]  ;;  %v3830_v41 = vld [vmem:[#allocation2 + $0x28c] sm:$0xf0]  ;;  %v2779_v45 = vor.u32 %v3798_v39, %v2778_v37  ;;  %1364 = vmatpush.bf16.msra.mxu3 %v3051_v38  ;;  %v2566_v34 = vld [vmem:[%s4388_s0 + $0x8] sm:$0xf] }
  0x1e   :  { %v3034_v42 = vld [vmem:[#allocation2 + $0x380] sm:$0xf]  ;;  %v3862_v43 = vld [vmem:[#allocation2 + $0x38c] sm:$0xf0]  ;;  %v2907_v46 = vor.u32 %v3830_v41, %v2906_v40  ;;  %1323 = vmatpush.bf16.msra.mxu0 %v2651_v44  ;;  %v3745_v36 = vld [vmem:[%s4388_s0 + $0x20] sm:$0xf0] }
  0x1f   :  { %v2634_v47 = vld [vmem:[#allocation2 + $0x60] sm:$0xf]  ;;  %v3762_v48 = vld [vmem:[#allocation2 + $0x6c] sm:$0xf0]  ;;  %v3035_v50 = vor.u32 %v3862_v43, %v3034_v42  ;;  %1337 = vmatpush.bf16.msra.mxu1 %v2779_v45  ;;  %v3808_v41 = vld [vmem:[#allocation2 + $0x1e4] sm:$0xf] }
  0x20   :  { %v2762_v49 = vld [vmem:[#allocation2 + $0x160] sm:$0xf]  ;;  %v3794_v51 = vld [vmem:[#allocation2 + $0x16c] sm:$0xf0]  ;;  %v2635_v56 = vor.u32 %v3762_v48, %v2634_v47  ;;  %1351 = vmatpush.bf16.msra.mxu2 %v2907_v46  ;;  %v3744_v43 = vld [vmem:[%s4388_s0 + $0x18] sm:$0xf0] }
  0x21   :  { %v2890_v52 = vld [vmem:[#allocation2 + $0x260] sm:$0xf]  ;;  %v3826_v53 = vld [vmem:[#allocation2 + $0x26c] sm:$0xf0]  ;;  %v2763_v57 = vor.u32 %v3794_v51, %v2762_v49  ;;  %1365 = vmatpush.bf16.msra.mxu3 %v3035_v50  ;;  %v2828_v46 = vld [vmem:[#allocation2 + $0x1f0] sm:$0xf0]  ;;  %v2703_v50 = vor.u32 %v3776_v32, %v2700_v33 }
  0x22   :  { %v3018_v54 = vld [vmem:[#allocation2 + $0x360] sm:$0xf]  ;;  %v3858_v55 = vld [vmem:[#allocation2 + $0x36c] sm:$0xf0]  ;;  %v2891_v58 = vor.u32 %v3826_v53, %v2890_v52  ;;  %1324 = vmatpush.bf16.msra.mxu0 %v2635_v56  ;;  %v3742_v47 = vld [vmem:[%s4388_s0 + $0xc] sm:$0xf] }
  0x23   :  { %v2618_v59 = vld [vmem:[#allocation2 + $0x40] sm:$0xf]  ;;  %v3758_v60 = vld [vmem:[#allocation2 + $0x4c] sm:$0xf0]  ;;  %v3019_v62 = vor.u32 %v3858_v55, %v3018_v54  ;;  %1338 = vmatpush.bf16.msra.mxu1 %v2763_v57  ;;  %v2568_v48 = vld [vmem:[%s4388_s0 + $0x24] sm:$0xf0]  ;;  %v4251_v54 = vor.u32 %v3745_v36, %v2566_v34 }
  0x24   :  { %v2746_v61 = vld [vmem:[#allocation2 + $0x140] sm:$0xf]  ;;  %v3790_v63 = vld [vmem:[#allocation2 + $0x14c] sm:$0xf0]  ;;  %v2619_v4 = vor.u32 %v3758_v60, %v2618_v59  ;;  %1352 = vmatpush.bf16.msra.mxu2 %v2891_v58  ;;  %v3772_v57 = vld [vmem:[#allocation2 + $0xc4] sm:$0xf]  ;;  %v4255_v60 = vor.u32 %v3742_v47, %v2568_v48 }
  0x25   :  { %v2874_v0 = vld [vmem:[#allocation2 + $0x240] sm:$0xf]  ;;  %v3822_v1 = vld [vmem:[#allocation2 + $0x24c] sm:$0xf0]  ;;  %v2747_v6 = vor.u32 %v3790_v63, %v2746_v61  ;;  %1366 = vmatpush.bf16.msra.mxu3 %v3019_v62  ;;  %v2684_v58 = vld [vmem:[#allocation2 + $0xd0] sm:$0xf0]  ;;  %v2831_v63 = vor.u32 %v3808_v41, %v2828_v46 }
  0x26   :  { %v3002_v2 = vld [vmem:[#allocation2 + $0x340] sm:$0xf]  ;;  %v3854_v3 = vld [vmem:[#allocation2 + $0x34c] sm:$0xf0]  ;;  %v2875_v7 = vor.u32 %v3822_v1, %v2874_v0  ;;  %1325 = vmatpush.bf16.msra.mxu0 %v2619_v4  ;;  %v3741_v61 = vld [vmem:[%s4388_s0 + $0x4] sm:$0xf]  ;;  %v2687_v4 = vor.u32 %v3772_v57, %v2684_v58 }
  0x27   :  { %v2602_v5 = vld [vmem:[#allocation2 + $0x20] sm:$0xf]  ;;  %v3754_v8 = vld [vmem:[#allocation2 + $0x2c] sm:$0xf0]  ;;  %v3003_v11 = vor.u32 %v3854_v3, %v3002_v2  ;;  %1339 = vmatpush.bf16.msra.mxu1 %v2747_v6  ;;  %v3804_v1 = vld [vmem:[#allocation2 + $0x1c4] sm:$0xf] }
  0x28   :  { %v2730_v9 = vld [vmem:[#allocation2 + $0x120] sm:$0xf]  ;;  %v3786_v10 = vld [vmem:[#allocation2 + $0x12c] sm:$0xf0]  ;;  %v2603_v18 = vor.u32 %v3754_v8, %v2602_v5  ;;  %1353 = vmatpush.bf16.msra.mxu2 %v2875_v7  ;;  %v2812_v2 = vld [vmem:[#allocation2 + $0x1d0] sm:$0xf0] }
  0x29   :  { %v2858_v12 = vld [vmem:[#allocation2 + $0x220] sm:$0xf]  ;;  %v3818_v13 = vld [vmem:[#allocation2 + $0x22c] sm:$0xf0]  ;;  %v2731_v23 = vor.u32 %v3786_v10, %v2730_v9  ;;  %1367 = vmatpush.bf16.msra.mxu3 %v3003_v11  ;;  %v3768_v10 = vld [vmem:[#allocation2 + $0xa4] sm:$0xf] }
  0x2a   :  { %v2986_v14 = vld [vmem:[#allocation2 + $0x320] sm:$0xf]  ;;  %v3850_v15 = vld [vmem:[#allocation2 + $0x32c] sm:$0xf0]  ;;  %v2859_v24 = vor.u32 %v3818_v13, %v2858_v12  ;;  %1326 = vmatpush.bf16.msra.mxu0 %v2603_v18  ;;  %v2668_v11 = vld [vmem:[#allocation2 + $0xb0] sm:$0xf0]  ;;  %v2815_v12 = vor.u32 %v3804_v1, %v2812_v2 }
  0x2b   :  { %v2586_v16 = vld [vmem:[#allocation2] sm:$0xf]  ;;  %v3750_v17 = vld [vmem:[#allocation2 + $0xc] sm:$0xf0]  ;;  %v2987_v28 = vor.u32 %v3850_v15, %v2986_v14  ;;  %1340 = vmatpush.bf16.msra.mxu1 %v2731_v23  ;;  %v3800_v14 = vld [vmem:[#allocation2 + $0x1a4] sm:$0xf] }
  0x2c   :  { %v2714_v19 = vld [vmem:[#allocation2 + $0x100] sm:$0xf]  ;;  %v3782_v20 = vld [vmem:[#allocation2 + $0x10c] sm:$0xf0]  ;;  %v2587_v35 = vor.u32 %v3750_v17, %v2586_v16  ;;  %1354 = vmatpush.bf16.msra.mxu2 %v2859_v24  ;;  %v2796_v15 = vld [vmem:[#allocation2 + $0x1b0] sm:$0xf0]  ;;  %v2671_v17 = vor.u32 %v3768_v10, %v2668_v11 }
  0x2d   :  { %v2842_v21 = vld [vmem:[#allocation2 + $0x200] sm:$0xf]  ;;  %v3814_v22 = vld [vmem:[#allocation2 + $0x20c] sm:$0xf0]  ;;  %v2715_v39 = vor.u32 %v3782_v20, %v2714_v19  ;;  %1368 = vmatpush.bf16.msra.mxu3 %v2987_v28  ;;  %v2652_v23 = vld [vmem:[#allocation2 + $0x90] sm:$0xf0]  ;;  %v2799_v24 = vor.u32 %v3800_v14, %v2796_v15 }
  0x2e   :  { %v2970_v25 = vld [vmem:[#allocation2 + $0x300] sm:$0xf]  ;;  %v3846_v26 = vld [vmem:[#allocation2 + $0x30c] sm:$0xf0]  ;;  %v2843_v40 = vor.u32 %v3814_v22, %v2842_v21  ;;  %1327 = vmatpush.bf16.msra.mxu0 %v2587_v35  ;;  %v3764_v22 = vld [vmem:[#allocation2 + $0x84] sm:$0xf] }
  0x2f   :  { %v3210_v27 = vld [vmem:[#allocation2 + $0x4e0] sm:$0xf]  ;;  %v3906_v29 = vld [vmem:[#allocation2 + $0x4ec] sm:$0xf0]  ;;  %v2971_v44 = vor.u32 %v3846_v26, %v2970_v25  ;;  %1341 = vmatpush.bf16.msra.mxu1 %v2715_v39  ;;  %v3796_v26 = vld [vmem:[#allocation2 + $0x184] sm:$0xf] }
  0x30   :  { %v3338_v30 = vld [vmem:[#allocation2 + $0x5e0] sm:$0xf]  ;;  %v3938_v31 = vld [vmem:[#allocation2 + $0x5ec] sm:$0xf0]  ;;  %v3211_v45 = vor.u32 %v3906_v29, %v3210_v27  ;;  %1355 = vmatpush.bf16.msra.mxu2 %v2843_v40  ;;  %v2780_v27 = vld [vmem:[#allocation2 + $0x190] sm:$0xf0]  ;;  %v2655_v29 = vor.u32 %v3764_v22, %v2652_v23 }
  0x31   :  { %v3354_v37 = vld [vmem:[#allocation2 + $0x600] sm:$0xf]  ;;  %v3942_v38 = vld [vmem:[#allocation2 + $0x60c] sm:$0xf0]  ;;  %v3339_v49 = vor.u32 %v3938_v31, %v3338_v30  ;;  %1369 = vmatpush.bf16.msra.mxu3 %v2971_v44  ;;  %v3760_v34 = vld [vmem:[#allocation2 + $0x64] sm:$0xf] }
  0x32   :  { %v2558_v42 = vld [vmem:[%s4388_s0] sm:$0xf]  ;;  %v3902_v52 = vld [vmem:[#allocation2 + $0x4cc] sm:$0xf0]  ;;  %v3355_v59 = vor.u32 %v3942_v38, %v3354_v37  ;;  %1376 = vmatpush.bf16.msrb.mxu0 %v3211_v45  ;;  %v2636_v35 = vld [vmem:[#allocation2 + $0x70] sm:$0xf0]  ;;  %v2783_v38 = vor.u32 %v3796_v26, %v2780_v27 }
  0x33   :  { %v3194_v51 = vld [vmem:[#allocation2 + $0x4c0] sm:$0xf]  ;;  %v4253_v55 = vor.u32 %v3744_v43, %v2558_v42  ;;  %v3934_v56 = vld [vmem:[#allocation2 + $0x5cc] sm:$0xf0]  ;;  %1390 = vmatpush.bf16.msrb.mxu1 %v3339_v49  ;;  %1356 = vmatmul.bf16.vlgmr.msra.gmra.mxu2 %v4251_v54  ;;  %v2582_v36 = vld [vmem:[%s4388_s0 + $0x18] sm:$0xf]  ;;  %v2639_v43 = vor.u32 %v3760_v34, %v2636_v35 }
  0x34   :  { %v3322_v53 = vld [vmem:[#allocation2 + $0x5c0] sm:$0xf]  ;;  %v3195_v0 = vor.u32 %v3902_v52, %v3194_v51  ;;  %v3898_v6 = vld [vmem:[#allocation2 + $0x4ac] sm:$0xf0]  ;;  %1411 = vmatpush.bf16.msrb.mxu2 %v3355_v59  ;;  %1370 = vmatmul.bf16.vlgmr.msra.gmra.mxu3 %v4255_v60  ;;  %v3747_v37 = vld [vmem:[%s4388_s0 + $0x30] sm:$0xf0] }
  0x35   :  { %v2560_v62 = vld [vmem:[%s4388_s0 + $0x1c] sm:$0xf0]  ;;  %1418 = vmatpush.bf16.msrb.mxu3 %v2703_v50  ;;  %v3323_v3 = vor.u32 %v3934_v56, %v3322_v53  ;;  %1328 = vmatmul.bf16.vlgmr.msra.gmra.mxu0 %v4253_v55  ;;  %v3930_v9 = vld [vmem:[#allocation2 + $0x5ac] sm:$0xf0]  ;;  %v3792_v40 = vld [vmem:[#allocation2 + $0x164] sm:$0xf]  ;;  %v4275_v50 = vor.u32 %v3747_v37, %v2582_v36 }
  0x36   :  { %v3178_v5 = vld [vmem:[#allocation2 + $0x4a0] sm:$0xf]  ;;  %v4265_v8 = vor.u32 %v3741_v61, %v2560_v62  ;;  %1377 = vmatpush.bf16.msrb.mxu0 %v3195_v0  ;;  %v3894_v19 = vld [vmem:[#allocation2 + $0x48c] sm:$0xf0]  ;;  %v2764_v41 = vld [vmem:[#allocation2 + $0x170] sm:$0xf0] }
  0x37   :  { %v3306_v7 = vld [vmem:[#allocation2 + $0x5a0] sm:$0xf]  ;;  %v3179_v13 = vor.u32 %v3898_v6, %v3178_v5  ;;  %1391 = vmatpush.bf16.msrb.mxu1 %v3323_v3  ;;  %v3926_v21 = vld [vmem:[#allocation2 + $0x58c] sm:$0xf0]  ;;  %v3756_v48 = vld [vmem:[#allocation2 + $0x44] sm:$0xf]  ;;  %v2767_v51 = vor.u32 %v3792_v40, %v2764_v41 }
  0x38   :  { %1432 = vmatpush.bf16.msra.mxu2 %v2831_v63  ;;  %v3307_v16 = vor.u32 %v3930_v9, %v3306_v7  ;;  %v3162_v18 = vld [vmem:[#allocation2 + $0x480] sm:$0xf]  ;;  %1342 = vmatmul.bf16.vlgmr.msra.gmra.mxu1 %v4265_v8  ;;  %v3890_v31 = vld [vmem:[#allocation2 + $0x46c] sm:$0xf0]  ;;  %v2620_v49 = vld [vmem:[#allocation2 + $0x50] sm:$0xf0] }
  0x39   :  { %1419 = vmatpush.bf16.msrb.mxu3 %v2687_v4  ;;  %v3290_v20 = vld [vmem:[#allocation2 + $0x580] sm:$0xf]  ;;  %v3163_v25 = vor.u32 %v3894_v19, %v3162_v18  ;;  %v3922_v33 = vld [vmem:[#allocation2 + $0x56c] sm:$0xf0]  ;;  %v3788_v53 = vld [vmem:[#allocation2 + $0x144] sm:$0xf]  ;;  %v2623_v58 = vor.u32 %v3756_v48, %v2620_v49 }
  0x3a   :  { %1378 = vmatpush.bf16.msrb.mxu0 %v3179_v13  ;;  %v3291_v28 = vor.u32 %v3926_v21, %v3290_v20  ;;  %v3146_v30 = vld [vmem:[#allocation2 + $0x460] sm:$0xf]  ;;  %v3886_v45 = vld [vmem:[#allocation2 + $0x44c] sm:$0xf0]  ;;  %v2748_v56 = vld [vmem:[#allocation2 + $0x150] sm:$0xf0] }
  0x3b   :  { %1392 = vmatpush.bf16.msrb.mxu1 %v3307_v16  ;;  %v3274_v32 = vld [vmem:[#allocation2 + $0x560] sm:$0xf]  ;;  %v3147_v39 = vor.u32 %v3890_v31, %v3146_v30  ;;  %v3918_v47 = vld [vmem:[#allocation2 + $0x54c] sm:$0xf0]  ;;  %v3752_v0 = vld [vmem:[#allocation2 + $0x24] sm:$0xf]  ;;  %v2751_v4 = vor.u32 %v3788_v53, %v2748_v56 }
  0x3c   :  { %1433 = vmatpush.bf16.msra.mxu2 %v2815_v12  ;;  %v3275_v42 = vor.u32 %v3922_v33, %v3274_v32  ;;  %v3130_v44 = vld [vmem:[#allocation2 + $0x440] sm:$0xf]  ;;  %v3882_v61 = vld [vmem:[#allocation2 + $0x42c] sm:$0xf0]  ;;  %v2604_v1 = vld [vmem:[#allocation2 + $0x30] sm:$0xf0] }
  0x3d   :  { %1420 = vmatpush.bf16.msrb.mxu3 %v2671_v17  ;;  %v3258_v46 = vld [vmem:[#allocation2 + $0x540] sm:$0xf]  ;;  %v3131_v52 = vor.u32 %v3886_v45, %v3130_v44  ;;  %v3914_v63 = vld [vmem:[#allocation2 + $0x52c] sm:$0xf0]  ;;  %v3784_v2 = vld [vmem:[#allocation2 + $0x124] sm:$0xf]  ;;  %v2607_v11 = vor.u32 %v3752_v0, %v2604_v1 }
  0x3e   :  { %1379 = vmatpush.bf16.msrb.mxu0 %v3163_v25  ;;  %v3259_v57 = vor.u32 %v3918_v47, %v3258_v46  ;;  %v3114_v59 = vld [vmem:[#allocation2 + $0x420] sm:$0xf]  ;;  %v2732_v3 = vld [vmem:[#allocation2 + $0x130] sm:$0xf0]  ;;  %v3878_v7 = vld [vmem:[#allocation2 + $0x40c] sm:$0xf0] }
  0x3f   :  { %1393 = vmatpush.bf16.msrb.mxu1 %v3291_v28  ;;  %v3242_v62 = vld [vmem:[#allocation2 + $0x520] sm:$0xf]  ;;  %v3115_v5 = vor.u32 %v3882_v61, %v3114_v59  ;;  %v3910_v12 = vld [vmem:[#allocation2 + $0x50c] sm:$0xf0]  ;;  %v3748_v13 = vld [vmem:[#allocation2 + $0x4] sm:$0xf]  ;;  %v2735_v21 = vor.u32 %v3784_v2, %v2732_v3 }
  0x40   :  { %1434 = vmatpush.bf16.msra.mxu2 %v2799_v24  ;;  %v3098_v6 = vld [vmem:[#allocation2 + $0x400] sm:$0xf]  ;;  %v3243_v10 = vor.u32 %v3914_v63, %v3242_v62  ;;  %v2588_v14 = vld [vmem:[#allocation2 + $0x10] sm:$0xf0]  ;;  %v3840_v15 = vld [vmem:[#allocation2 + $0x2e4] sm:$0xf] }
  0x41   :  { %1421 = vmatpush.bf16.msrb.mxu3 %v2655_v29  ;;  %v3226_v9 = vld [vmem:[#allocation2 + $0x500] sm:$0xf]  ;;  %v2956_v16 = vld [vmem:[#allocation2 + $0x2f0] sm:$0xf0]  ;;  %v3872_v17 = vld [vmem:[#allocation2 + $0x3e4] sm:$0xf]  ;;  %v3099_v22 = vor.u32 %v3878_v7, %v3098_v6  ;;  %v2591_v27 = vor.u32 %v3748_v13, %v2588_v14 }
  0x42   :  { %1380 = vmatpush.bf16.msrb.mxu0 %v3147_v39  ;;  %v3084_v18 = vld [vmem:[#allocation2 + $0x3f0] sm:$0xf0]  ;;  %v3904_v19 = vld [vmem:[#allocation2 + $0x4e4] sm:$0xf]  ;;  %v2574_v23 = vld [vmem:[%s4388_s0 + $0x10] sm:$0xf]  ;;  %v3227_v26 = vor.u32 %v3910_v12, %v3226_v9  ;;  %v2959_v31 = vor.u32 %v3840_v15, %v2956_v16 }
  0x43   :  { %1394 = vmatpush.bf16.msrb.mxu1 %v3275_v42  ;;  %3368 = vmatmul.msk.bf16.vlgmr.msrb.gmra.mxu2 %vm1316_vm0, %v4275_v50  ;;  %v3212_v20 = vld [vmem:[#allocation2 + $0x4f0] sm:$0xf0]  ;;  %v3746_v24 = vld [vmem:[%s4388_s0 + $0x28] sm:$0xf0]  ;;  %v3780_v25 = vld [vmem:[#allocation2 + $0x104] sm:$0xf]  ;;  %v3087_v32 = vor.u32 %v3872_v17, %v3084_v18 }
  0x44   :  { %1435 = vmatpush.bf16.msra.mxu2 %v2783_v38  ;;  %v2716_v28 = vld [vmem:[#allocation2 + $0x110] sm:$0xf0]  ;;  %v2576_v30 = vld [vmem:[%s4388_s0 + $0x2c] sm:$0xf0]  ;;  %v3936_v33 = vld [vmem:[#allocation2 + $0x5e4] sm:$0xf]  ;;  %v3215_v36 = vor.u32 %v3904_v19, %v3212_v20  ;;  %v4291_v37 = vor.u32 %v3746_v24, %v2574_v23 }
  0x45   :  { %1422 = vmatpush.bf16.msrb.mxu3 %v2639_v43  ;;  %v3743_v29 = vld [vmem:[%s4388_s0 + $0x14] sm:$0xf]  ;;  %v3836_v35 = vld [vmem:[#allocation2 + $0x2c4] sm:$0xf]  ;;  %v2719_v41 = vor.u32 %v3780_v25, %v2716_v28 }
  0x46   :  { %1381 = vmatpush.bf16.msrb.mxu0 %v3131_v52  ;;  %v3340_v34 = vld [vmem:[#allocation2 + $0x5f0] sm:$0xf0]  ;;  %v3868_v39 = vld [vmem:[#allocation2 + $0x3c4] sm:$0xf]  ;;  %v4293_v42 = vor.u32 %v3743_v29, %v2576_v30 }
  0x47   :  { %1395 = vmatpush.bf16.msrb.mxu1 %v3259_v57  ;;  %v2940_v38 = vld [vmem:[#allocation2 + $0x2d0] sm:$0xf0]  ;;  %v3900_v43 = vld [vmem:[#allocation2 + $0x4c4] sm:$0xf]  ;;  %v3343_v45 = vor.u32 %v3936_v33, %v3340_v34 }
  0x48   :  { %1436 = vmatpush.bf16.msra.mxu2 %v2767_v51  ;;  %v3068_v40 = vld [vmem:[#allocation2 + $0x3d0] sm:$0xf0]  ;;  %v2943_v46 = vor.u32 %v3836_v35, %v2940_v38  ;;  %v3932_v48 = vld [vmem:[#allocation2 + $0x5c4] sm:$0xf] }
  0x49   :  { %1423 = vmatpush.bf16.msrb.mxu3 %v2623_v58  ;;  %v3196_v44 = vld [vmem:[#allocation2 + $0x4d0] sm:$0xf0]  ;;  %v3071_v47 = vor.u32 %v3868_v39, %v3068_v40  ;;  %v3832_v51 = vld [vmem:[#allocation2 + $0x2a4] sm:$0xf] }
  0x4a   :  { %1382 = vmatpush.bf16.msrb.mxu0 %v3115_v5  ;;  %v3324_v49 = vld [vmem:[#allocation2 + $0x5d0] sm:$0xf0]  ;;  %v3199_v52 = vor.u32 %v3900_v43, %v3196_v44  ;;  %v3864_v56 = vld [vmem:[#allocation2 + $0x3a4] sm:$0xf] }
  0x4b   :  { %1396 = vmatpush.bf16.msrb.mxu1 %v3243_v10  ;;  %v2924_v53 = vld [vmem:[#allocation2 + $0x2b0] sm:$0xf0]  ;;  %v3896_v58 = vld [vmem:[#allocation2 + $0x4a4] sm:$0xf]  ;;  %v3327_v61 = vor.u32 %v3932_v48, %v3324_v49 }
  0x4c   :  { %1437 = vmatpush.bf16.msra.mxu2 %v2751_v4  ;;  %v3052_v57 = vld [vmem:[#allocation2 + $0x3b0] sm:$0xf0]  ;;  %v2927_v62 = vor.u32 %v3832_v51, %v2924_v53  ;;  %v3928_v0 = vld [vmem:[#allocation2 + $0x5a4] sm:$0xf] }
  0x4d   :  { %1424 = vmatpush.bf16.msrb.mxu3 %v2607_v11  ;;  %v3180_v59 = vld [vmem:[#allocation2 + $0x4b0] sm:$0xf0]  ;;  %v3055_v63 = vor.u32 %v3864_v56, %v3052_v57  ;;  %v3828_v2 = vld [vmem:[#allocation2 + $0x284] sm:$0xf] }
  0x4e   :  { %1383 = vmatpush.bf16.msrb.mxu0 %v3099_v22  ;;  %v3308_v1 = vld [vmem:[#allocation2 + $0x5b0] sm:$0xf0]  ;;  %v3183_v3 = vor.u32 %v3896_v58, %v3180_v59  ;;  %v3860_v5 = vld [vmem:[#allocation2 + $0x384] sm:$0xf] }
  0x4f   :  { %1397 = vmatpush.bf16.msrb.mxu1 %v3227_v26  ;;  %v2908_v4 = vld [vmem:[#allocation2 + $0x290] sm:$0xf0]  ;;  %v3892_v7 = vld [vmem:[#allocation2 + $0x484] sm:$0xf]  ;;  %v3311_v10 = vor.u32 %v3928_v0, %v3308_v1  ;;  %v2706_v0 = vld [vmem:[#allocation2 + $0xe8] sm:$0xf] }
  0x50   :  { %1438 = vmatpush.bf16.msra.mxu2 %v2735_v21  ;;  %v3036_v6 = vld [vmem:[#allocation2 + $0x390] sm:$0xf0]  ;;  %v2911_v11 = vor.u32 %v3828_v2, %v2908_v4  ;;  %v3924_v13 = vld [vmem:[#allocation2 + $0x584] sm:$0xf]  ;;  %v3779_v1 = vld [vmem:[#allocation2 + $0xf4] sm:$0xf0] }
  0x51   :  { %1425 = vmatpush.bf16.msrb.mxu3 %v2591_v27  ;;  %1384 = vmatmul.bf16.vlgmr.msrb.gmra.mxu0 %v4291_v37  ;;  %v3164_v9 = vld [vmem:[#allocation2 + $0x490] sm:$0xf0]  ;;  %v3039_v12 = vor.u32 %v3860_v5, %v3036_v6  ;;  %v3824_v15 = vld [vmem:[#allocation2 + $0x264] sm:$0xf]  ;;  %v2834_v2 = vld [vmem:[#allocation2 + $0x1e8] sm:$0xf] }
  0x52   :  { %1446 = vmatpush.bf16.msra.mxu0 %v2959_v31  ;;  %1398 = vmatmul.bf16.vlgmr.msrb.gmra.mxu1 %v4293_v42  ;;  %v3292_v14 = vld [vmem:[#allocation2 + $0x590] sm:$0xf0]  ;;  %v3167_v16 = vor.u32 %v3892_v7, %v3164_v9  ;;  %v3856_v18 = vld [vmem:[#allocation2 + $0x364] sm:$0xf]  ;;  %v3811_v4 = vld [vmem:[#allocation2 + $0x1f4] sm:$0xf0] }
  0x53   :  { %1460 = vmatpush.bf16.msra.mxu1 %v3087_v32  ;;  %v2892_v17 = vld [vmem:[#allocation2 + $0x270] sm:$0xf0]  ;;  %v3888_v20 = vld [vmem:[#allocation2 + $0x464] sm:$0xf]  ;;  %v3295_v22 = vor.u32 %v3924_v13, %v3292_v14  ;;  %v2707_v13 = vor.u32 %v3779_v1, %v2706_v0  ;;  %v2962_v14 = vld [vmem:[#allocation2 + $0x2e8] sm:$0xf] }
  0x54   :  { %1439 = vmatpush.bf16.msra.mxu2 %v2719_v41  ;;  %1426 = vmatmul.bf16.vlgmr.msrb.gmra.mxu3 %v4253_v55  ;;  %v3020_v19 = vld [vmem:[#allocation2 + $0x370] sm:$0xf0]  ;;  %v2895_v23 = vor.u32 %v3824_v15, %v2892_v17  ;;  %v3920_v25 = vld [vmem:[#allocation2 + $0x564] sm:$0xf]  ;;  %v3843_v15 = vld [vmem:[#allocation2 + $0x2f4] sm:$0xf0]  ;;  %v2835_v17 = vor.u32 %v3811_v4, %v2834_v2 }
  0x55   :  { %1474 = vmatpush.bf16.msra.mxu3 %v3215_v36  ;;  %v3148_v21 = vld [vmem:[#allocation2 + $0x470] sm:$0xf0]  ;;  %v3023_v24 = vor.u32 %v3856_v18, %v3020_v19  ;;  %v3820_v27 = vld [vmem:[#allocation2 + $0x244] sm:$0xf]  ;;  %v3875_v19 = vld [vmem:[#allocation2 + $0x3f4] sm:$0xf0] }
  0x56   :  { %1447 = vmatpush.bf16.msra.mxu0 %v2943_v46  ;;  %v3276_v26 = vld [vmem:[#allocation2 + $0x570] sm:$0xf0]  ;;  %v3151_v28 = vor.u32 %v3888_v20, %v3148_v21  ;;  %v3852_v30 = vld [vmem:[#allocation2 + $0x344] sm:$0xf]  ;;  %v2690_v20 = vld [vmem:[#allocation2 + $0xc8] sm:$0xf] }
  0x57   :  { %1461 = vmatpush.bf16.msra.mxu1 %v3071_v47  ;;  %1440 = vmatmul.bf16.vlgmr.msra.gmra.mxu2 %v4265_v8  ;;  %v2876_v29 = vld [vmem:[#allocation2 + $0x250] sm:$0xf0]  ;;  %v3884_v32 = vld [vmem:[#allocation2 + $0x444] sm:$0xf]  ;;  %v3279_v34 = vor.u32 %v3920_v25, %v3276_v26  ;;  %v3775_v21 = vld [vmem:[#allocation2 + $0xd4] sm:$0xf0]  ;;  %v2963_v25 = vor.u32 %v3843_v15, %v2962_v14 }
  0x58   :  { %1488 = vmatpush.bf16.msrb.mxu2 %v3343_v45  ;;  %v3004_v31 = vld [vmem:[#allocation2 + $0x350] sm:$0xf0]  ;;  %v2879_v35 = vor.u32 %v3820_v27, %v2876_v29  ;;  %v3916_v38 = vld [vmem:[#allocation2 + $0x544] sm:$0xf]  ;;  %v2691_v27 = vor.u32 %v3775_v21, %v2690_v20  ;;  %v3839_v29 = vld [vmem:[#allocation2 + $0x2d4] sm:$0xf0] }
  0x59   :  { %1475 = vmatpush.bf16.msra.mxu3 %v3199_v52  ;;  %v3132_v33 = vld [vmem:[#allocation2 + $0x450] sm:$0xf0]  ;;  %v3007_v36 = vor.u32 %v3852_v30, %v3004_v31  ;;  %v3816_v40 = vld [vmem:[#allocation2 + $0x224] sm:$0xf]  ;;  %v3074_v30 = vld [vmem:[#allocation2 + $0x3c8] sm:$0xf] }
  0x5a   :  { %1448 = vmatpush.bf16.msra.mxu0 %v2927_v62  ;;  %v3260_v39 = vld [vmem:[#allocation2 + $0x550] sm:$0xf0]  ;;  %v3135_v41 = vor.u32 %v3884_v32, %v3132_v33  ;;  %v3848_v44 = vld [vmem:[#allocation2 + $0x324] sm:$0xf]  ;;  %v3871_v32 = vld [vmem:[#allocation2 + $0x3d4] sm:$0xf0] }
  0x5b   :  { %1462 = vmatpush.bf16.msra.mxu1 %v3055_v63  ;;  %v2860_v43 = vld [vmem:[#allocation2 + $0x230] sm:$0xf0]  ;;  %v3880_v46 = vld [vmem:[#allocation2 + $0x424] sm:$0xf]  ;;  %v3263_v48 = vor.u32 %v3916_v38, %v3260_v39  ;;  %v2674_v33 = vld [vmem:[#allocation2 + $0xa8] sm:$0xf]  ;;  %v3075_v39 = vor.u32 %v3871_v32, %v3074_v30 }
  0x5c   :  { %1489 = vmatpush.bf16.msrb.mxu2 %v3327_v61  ;;  %v2988_v45 = vld [vmem:[#allocation2 + $0x330] sm:$0xf0]  ;;  %v3912_v49 = vld [vmem:[#allocation2 + $0x524] sm:$0xf]  ;;  %v2863_v52 = vor.u32 %v3816_v40, %v2860_v43  ;;  %v3835_v43 = vld [vmem:[#allocation2 + $0x2b4] sm:$0xf0] }
  0x5d   :  { %1476 = vmatpush.bf16.msra.mxu3 %v3183_v3  ;;  %v3116_v47 = vld [vmem:[#allocation2 + $0x430] sm:$0xf0]  ;;  %v2991_v53 = vor.u32 %v3848_v44, %v2988_v45  ;;  %v3812_v56 = vld [vmem:[#allocation2 + $0x204] sm:$0xf]  ;;  %v3058_v44 = vld [vmem:[#allocation2 + $0x3a8] sm:$0xf] }
  0x5e   :  { %1449 = vmatpush.bf16.msra.mxu0 %v2911_v11  ;;  %v3244_v51 = vld [vmem:[#allocation2 + $0x530] sm:$0xf0]  ;;  %v3844_v58 = vld [vmem:[#allocation2 + $0x304] sm:$0xf]  ;;  %v3119_v59 = vor.u32 %v3880_v46, %v3116_v47  ;;  %v3867_v46 = vld [vmem:[#allocation2 + $0x3b4] sm:$0xf0] }
  0x5f   :  { %1463 = vmatpush.bf16.msra.mxu1 %v3039_v12  ;;  %v2844_v57 = vld [vmem:[#allocation2 + $0x210] sm:$0xf0]  ;;  %v3876_v62 = vld [vmem:[#allocation2 + $0x404] sm:$0xf]  ;;  %v3247_v3 = vor.u32 %v3912_v49, %v3244_v51  ;;  %v2658_v47 = vld [vmem:[#allocation2 + $0x88] sm:$0xf] }
  0x60   :  { %1490 = vmatpush.bf16.msrb.mxu2 %v3311_v10  ;;  %v2972_v61 = vld [vmem:[#allocation2 + $0x310] sm:$0xf0]  ;;  %v3940_v5 = vld [vmem:[#allocation2 + $0x604] sm:$0xf]  ;;  %v2847_v7 = vor.u32 %v3812_v56, %v2844_v57  ;;  %v2786_v49 = vld [vmem:[#allocation2 + $0x188] sm:$0xf]  ;;  %v3059_v56 = vor.u32 %v3867_v46, %v3058_v44 }
  0x61   :  { %1477 = vmatpush.bf16.msra.mxu3 %v3167_v16  ;;  %v3100_v63 = vld [vmem:[#allocation2 + $0x410] sm:$0xf0]  ;;  %v2975_v9 = vor.u32 %v3844_v58, %v2972_v61  ;;  %v3908_v10 = vld [vmem:[#allocation2 + $0x504] sm:$0xf]  ;;  %v3090_v16 = vld [vmem:[#allocation2 + $0x3e8] sm:$0xf] }
  0x62   :  { %1450 = vmatpush.bf16.msra.mxu0 %v2895_v23  ;;  %v3356_v6 = vld [vmem:[#allocation2 + $0x610] sm:$0xf0]  ;;  %v3103_v12 = vor.u32 %v3876_v62, %v3100_v63  ;;  %v2818_v23 = vld [vmem:[#allocation2 + $0x1c8] sm:$0xf]  ;;  %v3091_v26 = vor.u32 %v3875_v19, %v3090_v16  ;;  %v3799_v51 = vld [vmem:[#allocation2 + $0x194] sm:$0xf0] }
  0x63   :  { %1464 = vmatpush.bf16.msra.mxu1 %v3023_v24  ;;  %v3228_v11 = vld [vmem:[#allocation2 + $0x510] sm:$0xf0]  ;;  %v3359_v18 = vor.u32 %v3940_v5, %v3356_v6  ;;  %v3807_v24 = vld [vmem:[#allocation2 + $0x1d4] sm:$0xf0]  ;;  %v2787_v62 = vor.u32 %v3799_v51, %v2786_v49  ;;  %v2642_v63 = vld [vmem:[#allocation2 + $0x68] sm:$0xf] }
  0x64   :  { %1491 = vmatpush.bf16.msrb.mxu2 %v3295_v22  ;;  %v3231_v22 = vor.u32 %v3908_v10, %v3228_v11  ;;  %v2819_v31 = vor.u32 %v3807_v24, %v2818_v23  ;;  %v3831_v58 = vld [vmem:[#allocation2 + $0x294] sm:$0xf0]  ;;  %v2770_v1 = vld [vmem:[#allocation2 + $0x168] sm:$0xf] }
  0x65   :  { %1478 = vmatpush.bf16.msra.mxu3 %v3151_v28  ;;  %v2946_v28 = vld [vmem:[#allocation2 + $0x2c8] sm:$0xf]  ;;  %v3863_v61 = vld [vmem:[#allocation2 + $0x394] sm:$0xf0] }
  0x66   :  { %1451 = vmatpush.bf16.msra.mxu0 %v2879_v35  ;;  %v2802_v35 = vld [vmem:[#allocation2 + $0x1a8] sm:$0xf]  ;;  %v2947_v38 = vor.u32 %v3839_v29, %v2946_v28  ;;  %v3763_v0 = vld [vmem:[#allocation2 + $0x74] sm:$0xf0] }
  0x67   :  { %1465 = vmatpush.bf16.msra.mxu1 %v3007_v36  ;;  %v3803_v36 = vld [vmem:[#allocation2 + $0x1b4] sm:$0xf0]  ;;  %v2898_v4 = vld [vmem:[#allocation2 + $0x268] sm:$0xf]  ;;  %v2643_v6 = vor.u32 %v3763_v0, %v2642_v63 }
  0x68   :  { %1492 = vmatpush.bf16.msrb.mxu2 %v3279_v34  ;;  %v3771_v34 = vld [vmem:[#allocation2 + $0xb4] sm:$0xf0]  ;;  %v2803_v45 = vor.u32 %v3803_v36, %v2802_v35  ;;  %v2754_v14 = vld [vmem:[#allocation2 + $0x148] sm:$0xf] }
  0x69   :  { %1479 = vmatpush.bf16.msra.mxu3 %v3135_v41  ;;  %v2675_v40 = vor.u32 %v3771_v34, %v2674_v33  ;;  %v2930_v41 = vld [vmem:[#allocation2 + $0x2a8] sm:$0xf]  ;;  %v3795_v2 = vld [vmem:[#allocation2 + $0x174] sm:$0xf0] }
  0x6a   :  { %1452 = vmatpush.bf16.msra.mxu0 %v2863_v52  ;;  %v2931_v52 = vor.u32 %v3835_v43, %v2930_v41  ;;  %v2771_v10 = vor.u32 %v3795_v2, %v2770_v1  ;;  %v3859_v11 = vld [vmem:[#allocation2 + $0x374] sm:$0xf0]  ;;  %v2882_v19 = vld [vmem:[#allocation2 + $0x248] sm:$0xf] }
  0x6b   :  { %1466 = vmatpush.bf16.msra.mxu1 %v2991_v53  ;;  %v2914_v53 = vld [vmem:[#allocation2 + $0x288] sm:$0xf]  ;;  %v3791_v15 = vld [vmem:[#allocation2 + $0x154] sm:$0xf0] }
  0x6c   :  { %1493 = vmatpush.bf16.msrb.mxu2 %v3263_v48  ;;  %v3767_v48 = vld [vmem:[#allocation2 + $0x94] sm:$0xf0]  ;;  %v3010_v21 = vld [vmem:[#allocation2 + $0x348] sm:$0xf] }
  0x6d   :  { %1480 = vmatpush.bf16.msra.mxu3 %v3119_v59  ;;  %v2659_v57 = vor.u32 %v3767_v48, %v2658_v47  ;;  %v3042_v59 = vld [vmem:[#allocation2 + $0x388] sm:$0xf]  ;;  %v3823_v20 = vld [vmem:[#allocation2 + $0x254] sm:$0xf0] }
  0x6e   :  { %1453 = vmatpush.bf16.msra.mxu0 %v2847_v7  ;;  %v3043_v5 = vor.u32 %v3863_v61, %v3042_v59  ;;  %v3827_v7 = vld [vmem:[#allocation2 + $0x274] sm:$0xf0]  ;;  %v2610_v24 = vld [vmem:[#allocation2 + $0x28] sm:$0xf]  ;;  %v2883_v28 = vor.u32 %v3823_v20, %v2882_v19  ;;  %v2708_v59 = vld [vmem:[#allocation2 + $0xf8] sm:$0xf0] }
  0x6f   :  { %1467 = vmatpush.bf16.msra.mxu1 %v2975_v9  ;;  %v3026_v9 = vld [vmem:[#allocation2 + $0x368] sm:$0xf]  ;;  %v2899_v16 = vor.u32 %v3827_v7, %v2898_v4  ;;  %v3855_v23 = vld [vmem:[#allocation2 + $0x354] sm:$0xf0] }
  0x70   :  { %1494 = vmatpush.bf16.msrb.mxu2 %v3247_v3  ;;  %v2915_v3 = vor.u32 %v3831_v58, %v2914_v53  ;;  %v2866_v29 = vld [vmem:[#allocation2 + $0x228] sm:$0xf]  ;;  %v3011_v30 = vor.u32 %v3855_v23, %v3010_v21  ;;  %v3819_v32 = vld [vmem:[#allocation2 + $0x234] sm:$0xf0]  ;;  %v3777_v58 = vld [vmem:[#allocation2 + $0xec] sm:$0xf] }
  0x71   :  { %1481 = vmatpush.bf16.msra.mxu3 %v3103_v12  ;;  %1454 = vmatmul.bf16.vlgmr.msra.gmra.mxu0 %v4251_v54  ;;  %v2626_v12 = vld [vmem:[#allocation2 + $0x48] sm:$0xf]  ;;  %v3851_v34 = vld [vmem:[#allocation2 + $0x334] sm:$0xf0]  ;;  %v2867_v44 = vor.u32 %v3819_v32, %v2866_v29  ;;  %v2820_v23 = vld [vmem:[#allocation2 + $0x1d8] sm:$0xf0] }
  0x72   :  { %1509 = vmatpush.bf16.msrb.mxu0 %v3359_v18  ;;  %1468 = vmatmul.bf16.vlgmr.msra.gmra.mxu1 %v4255_v60  ;;  %v2994_v33 = vld [vmem:[#allocation2 + $0x328] sm:$0xf]  ;;  %v3907_v43 = vld [vmem:[#allocation2 + $0x4f4] sm:$0xf0] }
  0x73   :  { %1516 = vmatpush.bf16.msrb.mxu1 %v2707_v13  ;;  %v3759_v13 = vld [vmem:[#allocation2 + $0x54] sm:$0xf0]  ;;  %v2594_v36 = vld [vmem:[#allocation2 + $0x8] sm:$0xf]  ;;  %v2995_v47 = vor.u32 %v3851_v34, %v2994_v33  ;;  %v3801_v34 = vld [vmem:[#allocation2 + $0x1ac] sm:$0xf] }
  0x74   :  { %1495 = vmatpush.bf16.msrb.mxu2 %v3231_v22  ;;  %1482 = vmatmul.bf16.vlgmr.msra.gmra.mxu3 %v4291_v37  ;;  %v2627_v18 = vor.u32 %v3759_v13, %v2626_v12  ;;  %v2755_v22 = vor.u32 %v3791_v15, %v2754_v14  ;;  %v3218_v41 = vld [vmem:[#allocation2 + $0x4e8] sm:$0xf]  ;;  %v3939_v46 = vld [vmem:[#allocation2 + $0x5f4] sm:$0xf0]  ;;  %v2692_v14 = vld [vmem:[#allocation2 + $0xd8] sm:$0xf0] }
  0x75   :  { %1530 = vmatpush.bf16.msrb.mxu3 %v2835_v17  ;;  %v3027_v17 = vor.u32 %v3859_v11, %v3026_v9  ;;  %v2850_v49 = vld [vmem:[#allocation2 + $0x208] sm:$0xf]  ;;  %v3815_v51 = vld [vmem:[#allocation2 + $0x214] sm:$0xf0]  ;;  %v3809_v9 = vld [vmem:[#allocation2 + $0x1ec] sm:$0xf] }
  0x76   :  { %1544 = vmatpush.bf16.msra.mxu0 %v2963_v25  ;;  %v3755_v25 = vld [vmem:[#allocation2 + $0x34] sm:$0xf0]  ;;  %v3330_v0 = vld [vmem:[#allocation2 + $0x5c8] sm:$0xf]  ;;  %v2851_v1 = vor.u32 %v3815_v51, %v2850_v49  ;;  %v3773_v11 = vld [vmem:[#allocation2 + $0xcc] sm:$0xf] }
  0x77   :  { %1517 = vmatpush.bf16.msrb.mxu1 %v2691_v27  ;;  %1496 = vmatmul.bf16.vlgmr.msrb.gmra.mxu2 %v4293_v42  ;;  %v3787_v27 = vld [vmem:[#allocation2 + $0x134] sm:$0xf0]  ;;  %v3186_v15 = vld [vmem:[#allocation2 + $0x4a8] sm:$0xf]  ;;  %v2695_v20 = vor.u32 %v3773_v11, %v2692_v14  ;;  %v2788_v49 = vld [vmem:[#allocation2 + $0x198] sm:$0xf0] }
  0x78   :  { %1558 = vmatpush.bf16.msra.mxu2 %v3091_v26  ;;  %v2738_v26 = vld [vmem:[#allocation2 + $0x128] sm:$0xf]  ;;  %v3903_v63 = vld [vmem:[#allocation2 + $0x4d4] sm:$0xf0]  ;;  %v3761_v51 = vld [vmem:[#allocation2 + $0x6c] sm:$0xf] }
  0x79   :  { %1531 = vmatpush.bf16.msrb.mxu3 %v2819_v31  ;;  %v2611_v31 = vor.u32 %v3755_v25, %v2610_v24  ;;  %v2739_v35 = vor.u32 %v3787_v27, %v2738_v26  ;;  %v3935_v2 = vld [vmem:[#allocation2 + $0x5d4] sm:$0xf0]  ;;  %v3769_v24 = vld [vmem:[#allocation2 + $0xac] sm:$0xf]  ;;  %v2676_v26 = vld [vmem:[#allocation2 + $0xb8] sm:$0xf0] }
  0x7a   :  { %1545 = vmatpush.bf16.msra.mxu0 %v2947_v38  ;;  %v3751_v38 = vld [vmem:[#allocation2 + $0x14] sm:$0xf0]  ;;  %v3331_v12 = vor.u32 %v3935_v2, %v3330_v0  ;;  %v3170_v27 = vld [vmem:[#allocation2 + $0x488] sm:$0xf]  ;;  %v2679_v32 = vor.u32 %v3769_v24, %v2676_v26  ;;  %v3793_v0 = vld [vmem:[#allocation2 + $0x16c] sm:$0xf] }
  0x7b   :  { %1518 = vmatpush.bf16.msrb.mxu1 %v2675_v40  ;;  %v3783_v40 = vld [vmem:[#allocation2 + $0x114] sm:$0xf0]  ;;  %v2595_v48 = vor.u32 %v3751_v38, %v2594_v36  ;;  %v3298_v29 = vld [vmem:[#allocation2 + $0x588] sm:$0xf]  ;;  %v3765_v36 = vld [vmem:[#allocation2 + $0x8c] sm:$0xf] }
  0x7c   :  { %1559 = vmatpush.bf16.msra.mxu2 %v3075_v39  ;;  %v2722_v39 = vld [vmem:[#allocation2 + $0x108] sm:$0xf]  ;;  %v3943_v4 = vld [vmem:[#allocation2 + $0x614] sm:$0xf0]  ;;  %v3757_v2 = vld [vmem:[#allocation2 + $0x4c] sm:$0xf] }
  0x7d   :  { %1532 = vmatpush.bf16.msrb.mxu3 %v2803_v45  ;;  %v3346_v45 = vld [vmem:[#allocation2 + $0x5e8] sm:$0xf]  ;;  %v2723_v53 = vor.u32 %v3783_v40, %v2722_v39  ;;  %v2660_v39 = vld [vmem:[#allocation2 + $0x98] sm:$0xf0]  ;;  %v3789_v11 = vld [vmem:[#allocation2 + $0x14c] sm:$0xf] }
  0x7e   :  { %1546 = vmatpush.bf16.msra.mxu0 %v2931_v52  ;;  %v2978_v52 = vld [vmem:[#allocation2 + $0x308] sm:$0xf]  ;;  %v3347_v61 = vor.u32 %v3939_v46, %v3346_v45  ;;  %v2663_v46 = vor.u32 %v3765_v36, %v2660_v39  ;;  %v2756_v14 = vld [vmem:[#allocation2 + $0x158] sm:$0xf0]  ;;  %v3837_v39 = vld [vmem:[#allocation2 + $0x2cc] sm:$0xf] }
  0x7f   :  { %1519 = vmatpush.bf16.msrb.mxu1 %v2659_v57  ;;  %v3847_v57 = vld [vmem:[#allocation2 + $0x314] sm:$0xf0]  ;;  %v3154_v40 = vld [vmem:[#allocation2 + $0x468] sm:$0xf]  ;;  %v2759_v24 = vor.u32 %v3789_v11, %v2756_v14  ;;  %v3092_v26 = vld [vmem:[#allocation2 + $0x3f8] sm:$0xf0] }
  0x80   :  { %1560 = vmatpush.bf16.msra.mxu2 %v3059_v56  ;;  %v3219_v56 = vor.u32 %v3907_v43, %v3218_v41  ;;  %v3891_v41 = vld [vmem:[#allocation2 + $0x474] sm:$0xf0]  ;;  %v3282_v43 = vld [vmem:[#allocation2 + $0x568] sm:$0xf]  ;;  %v3861_v11 = vld [vmem:[#allocation2 + $0x38c] sm:$0xf] }
  0x81   :  { %1533 = vmatpush.bf16.msrb.mxu3 %v2787_v62  ;;  %3369 = vmatmul.msk.bf16.vlgmr.msrb.gmra.mxu0 %vm1316_vm0, %v4275_v50  ;;  %v3202_v62 = vld [vmem:[#allocation2 + $0x4c8] sm:$0xf] }
  0x82   :  { %1547 = vmatpush.bf16.msra.mxu0 %v2915_v3  ;;  %v3362_v3 = vld [vmem:[#allocation2 + $0x608] sm:$0xf]  ;;  %v3203_v7 = vor.u32 %v3903_v63, %v3202_v62 }
  0x83   :  { %1520 = vmatpush.bf16.msrb.mxu1 %v2643_v6  ;;  %v2711_v6 = vor.u32 %v3777_v58, %v2708_v59  ;;  %v3363_v13 = vor.u32 %v3943_v4, %v3362_v3  ;;  %v3266_v58 = vld [vmem:[#allocation2 + $0x548] sm:$0xf]  ;;  %v3919_v59 = vld [vmem:[#allocation2 + $0x554] sm:$0xf0]  ;;  %v2628_v4 = vld [vmem:[#allocation2 + $0x58] sm:$0xf0] }
  0x84   :  { %1561 = vmatpush.bf16.msra.mxu2 %v3043_v5  ;;  %v2979_v5 = vor.u32 %v3847_v57, %v2978_v52  ;;  %v3887_v57 = vld [vmem:[#allocation2 + $0x454] sm:$0xf0]  ;;  %v3267_v3 = vor.u32 %v3919_v59, %v3266_v58  ;;  %v3833_v58 = vld [vmem:[#allocation2 + $0x2ac] sm:$0xf]  ;;  %v2932_v59 = vld [vmem:[#allocation2 + $0x2b8] sm:$0xf0] }
  0x85   :  { %1534 = vmatpush.bf16.msrb.mxu3 %v2771_v10  ;;  %v2836_v10 = vld [vmem:[#allocation2 + $0x1f8] sm:$0xf0] }
  0x86   :  { %1548 = vmatpush.bf16.msra.mxu0 %v2899_v16  ;;  %v3899_v16 = vld [vmem:[#allocation2 + $0x4b4] sm:$0xf0]  ;;  %v2839_v19 = vor.u32 %v3809_v9, %v2836_v10 }
  0x87   :  { %1521 = vmatpush.bf16.msrb.mxu1 %v2627_v18  ;;  %v3931_v18 = vld [vmem:[#allocation2 + $0x5b4] sm:$0xf0]  ;;  %v3187_v21 = vor.u32 %v3899_v16, %v3186_v15  ;;  %v3753_v15 = vld [vmem:[#allocation2 + $0x2c] sm:$0xf]  ;;  %v2612_v16 = vld [vmem:[#allocation2 + $0x38] sm:$0xf0] }
  0x88   :  { %1562 = vmatpush.bf16.msra.mxu2 %v3027_v17  ;;  %v3314_v17 = vld [vmem:[#allocation2 + $0x5a8] sm:$0xf]  ;;  %v3915_v9 = vld [vmem:[#allocation2 + $0x534] sm:$0xf0] }
  0x89   :  { %1535 = vmatpush.bf16.msrb.mxu3 %v2755_v22  ;;  %v3805_v22 = vld [vmem:[#allocation2 + $0x1cc] sm:$0xf]  ;;  %v3315_v25 = vor.u32 %v3931_v18, %v3314_v17  ;;  %v3106_v18 = vld [vmem:[#allocation2 + $0x408] sm:$0xf] }
  0x8a   :  { %1549 = vmatpush.bf16.msra.mxu0 %v2883_v28  ;;  %v3895_v28 = vld [vmem:[#allocation2 + $0x494] sm:$0xf0] }
  0x8b   :  { %1522 = vmatpush.bf16.msrb.mxu1 %v2611_v31  ;;  %v2823_v31 = vor.u32 %v3805_v22, %v2820_v23  ;;  %v3171_v33 = vor.u32 %v3895_v28, %v3170_v27  ;;  %v3841_v22 = vld [vmem:[#allocation2 + $0x2ec] sm:$0xf]  ;;  %v2964_v23 = vld [vmem:[#allocation2 + $0x2f8] sm:$0xf0]  ;;  %v2615_v27 = vor.u32 %v3753_v15, %v2612_v16 }
  0x8c   :  { %1563 = vmatpush.bf16.msra.mxu2 %v3011_v30  ;;  %v3927_v30 = vld [vmem:[#allocation2 + $0x594] sm:$0xf0]  ;;  %v3929_v16 = vld [vmem:[#allocation2 + $0x5ac] sm:$0xf] }
  0x8d   :  { %1536 = vmatpush.bf16.msrb.mxu3 %v2739_v35  ;;  %v2804_v35 = vld [vmem:[#allocation2 + $0x1b8] sm:$0xf0]  ;;  %v3299_v38 = vor.u32 %v3927_v30, %v3298_v29  ;;  %v3785_v29 = vld [vmem:[#allocation2 + $0x12c] sm:$0xf] }
  0x8e   :  { %1550 = vmatpush.bf16.msra.mxu0 %v2867_v44  ;;  %v3923_v44 = vld [vmem:[#allocation2 + $0x574] sm:$0xf0]  ;;  %v2807_v45 = vor.u32 %v3801_v34, %v2804_v35  ;;  %v2740_v30 = vld [vmem:[#allocation2 + $0x138] sm:$0xf0]  ;;  %v3905_v35 = vld [vmem:[#allocation2 + $0x4ec] sm:$0xf] }
  0x8f   :  { %1523 = vmatpush.bf16.msrb.mxu1 %v2595_v48  ;;  %v3797_v48 = vld [vmem:[#allocation2 + $0x18c] sm:$0xf]  ;;  %v3283_v52 = vor.u32 %v3923_v44, %v3282_v43  ;;  %v2596_v34 = vld [vmem:[#allocation2 + $0x18] sm:$0xf0] }
  0x90   :  { %1564 = vmatpush.bf16.msra.mxu2 %v2995_v47  ;;  %v3155_v47 = vor.u32 %v3891_v41, %v3154_v40  ;;  %v2948_v40 = vld [vmem:[#allocation2 + $0x2d8] sm:$0xf0]  ;;  %v2743_v41 = vor.u32 %v3785_v29, %v2740_v30  ;;  %v3869_v43 = vld [vmem:[#allocation2 + $0x3cc] sm:$0xf] }
  0x91   :  { %1537 = vmatpush.bf16.msrb.mxu3 %v2723_v53  ;;  %v2644_v53 = vld [vmem:[#allocation2 + $0x78] sm:$0xf0]  ;;  %v3889_v29 = vld [vmem:[#allocation2 + $0x46c] sm:$0xf] }
  0x92   :  { %1551 = vmatpush.bf16.msra.mxu0 %v2851_v1  ;;  %1524 = vmatmul.bf16.vlgmr.msrb.gmra.mxu1 %v4253_v55  ;;  %v2647_v62 = vor.u32 %v3761_v51, %v2644_v53  ;;  %v2772_v1 = vld [vmem:[#allocation2 + $0x178] sm:$0xf0]  ;;  %v3937_v51 = vld [vmem:[#allocation2 + $0x5ec] sm:$0xf] }
  0x93   :  { %1572 = vmatpush.bf16.msra.mxu1 %v3219_v56  ;;  %v3138_v56 = vld [vmem:[#allocation2 + $0x448] sm:$0xf]  ;;  %v2775_v10 = vor.u32 %v3793_v0, %v2772_v1  ;;  %v3076_v44 = vld [vmem:[#allocation2 + $0x3d8] sm:$0xf0]  ;;  %v3901_v53 = vld [vmem:[#allocation2 + $0x4cc] sm:$0xf] }
  0x94   :  { %1538 = vmatmul.bf16.vlgmr.msrb.gmra.mxu3 %v4265_v8  ;;  %1565 = vmatpush.bf16.msra.mxu2 %v2979_v5  ;;  %v3139_v63 = vor.u32 %v3887_v57, %v3138_v56  ;;  %v3122_v5 = vld [vmem:[#allocation2 + $0x428] sm:$0xf]  ;;  %v3079_v56 = vor.u32 %v3869_v43, %v3076_v44  ;;  %v3204_v57 = vld [vmem:[#allocation2 + $0x4d8] sm:$0xf0] }
  0x95   :  { %1586 = vmatpush.bf16.msra.mxu3 %v3347_v61  ;;  %1552 = vmatmul.bf16.vlgmr.msra.gmra.mxu0 %v4251_v54  ;;  %v2791_v61 = vor.u32 %v3797_v48, %v2788_v49  ;;  %v2951_v49 = vor.u32 %v3837_v39, %v2948_v40  ;;  %v3207_v1 = vor.u32 %v3901_v53, %v3204_v57  ;;  %v3921_v39 = vld [vmem:[#allocation2 + $0x56c] sm:$0xf]  ;;  %v3284_v40 = vld [vmem:[#allocation2 + $0x578] sm:$0xf0] }
  0x96   :  { %1607 = vmatpush.bf16.msrb.mxu0 %v3363_v13  ;;  %v3140_v44 = vld [vmem:[#allocation2 + $0x458] sm:$0xf0] }
  0x97   :  { %1573 = vmatpush.bf16.msra.mxu1 %v3203_v7  ;;  %1566 = vmatmul.bf16.vlgmr.msra.gmra.mxu2 %v4255_v60  ;;  %v3250_v7 = vld [vmem:[#allocation2 + $0x528] sm:$0xf]  ;;  %v3268_v57 = vld [vmem:[#allocation2 + $0x558] sm:$0xf0] }
  0x98   :  { %1614 = vmatpush.bf16.msrb.mxu2 %v2711_v6  ;;  %v3883_v6 = vld [vmem:[#allocation2 + $0x434] sm:$0xf0]  ;;  %v3251_v17 = vor.u32 %v3915_v9, %v3250_v7  ;;  %v3188_v7 = vld [vmem:[#allocation2 + $0x4b8] sm:$0xf0]  ;;  %v3829_v9 = vld [vmem:[#allocation2 + $0x28c] sm:$0xf] }
  0x99   :  { %1587 = vmatpush.bf16.msra.mxu3 %v3331_v12  ;;  %v2631_v12 = vor.u32 %v3757_v2, %v2628_v4  ;;  %v3123_v13 = vor.u32 %v3883_v6, %v3122_v5  ;;  %v2935_v2 = vor.u32 %v3833_v58, %v2932_v59  ;;  %v3332_v4 = vld [vmem:[#allocation2 + $0x5d8] sm:$0xf0]  ;;  %v3897_v5 = vld [vmem:[#allocation2 + $0x4ac] sm:$0xf] }
  0x9a   :  { %1628 = vmatpush.bf16.msra.mxu0 %v2839_v19  ;;  %v3879_v19 = vld [vmem:[#allocation2 + $0x414] sm:$0xf0]  ;;  %v3191_v14 = vor.u32 %v3897_v5, %v3188_v7  ;;  %v3881_v58 = vld [vmem:[#allocation2 + $0x42c] sm:$0xf]  ;;  %v3124_v59 = vld [vmem:[#allocation2 + $0x438] sm:$0xf0] }
  0x9b   :  { %1574 = vmatpush.bf16.msra.mxu1 %v3187_v21  ;;  %v3911_v21 = vld [vmem:[#allocation2 + $0x514] sm:$0xf0]  ;;  %v3107_v28 = vor.u32 %v3879_v19, %v3106_v18  ;;  %v3893_v18 = vld [vmem:[#allocation2 + $0x48c] sm:$0xf]  ;;  %v3364_v5 = vld [vmem:[#allocation2 + $0x618] sm:$0xf0] }
  0x9c   :  { %1615 = vmatpush.bf16.msrb.mxu2 %v2695_v20  ;;  %v3234_v20 = vld [vmem:[#allocation2 + $0x508] sm:$0xf] }
  0x9d   :  { %1588 = vmatpush.bf16.msra.mxu3 %v3315_v25  ;;  %v3873_v25 = vld [vmem:[#allocation2 + $0x3ec] sm:$0xf] }
  0x9e   :  { %1629 = vmatpush.bf16.msra.mxu0 %v2823_v31  ;;  %v3235_v31 = vor.u32 %v3911_v21, %v3234_v20  ;;  %v3095_v36 = vor.u32 %v3873_v25, %v3092_v26  ;;  %v3172_v20 = vld [vmem:[#allocation2 + $0x498] sm:$0xf0]  ;;  %v3825_v21 = vld [vmem:[#allocation2 + $0x26c] sm:$0xf] }
  0x9f   :  { %1575 = vmatpush.bf16.msra.mxu1 %v3171_v33  ;;  %v3749_v33 = vld [vmem:[#allocation2 + $0xc] sm:$0xf]  ;;  %v3175_v25 = vor.u32 %v3893_v18, %v3172_v20  ;;  %v3108_v18 = vld [vmem:[#allocation2 + $0x418] sm:$0xf0] }
  0xa0   :  { %1616 = vmatpush.bf16.msrb.mxu2 %v2679_v32  ;;  %v2967_v32 = vor.u32 %v3841_v22, %v2964_v23  ;;  %v2900_v22 = vld [vmem:[#allocation2 + $0x278] sm:$0xf0]  ;;  %v3857_v23 = vld [vmem:[#allocation2 + $0x36c] sm:$0xf] }
  0xa1   :  { %1589 = vmatpush.bf16.msra.mxu3 %v3299_v38  ;;  %v3220_v38 = vld [vmem:[#allocation2 + $0x4f8] sm:$0xf0]  ;;  %v2903_v26 = vor.u32 %v3825_v21, %v2900_v22  ;;  %v3494_v21 = vld [vmem:[#allocation5 + $0xf0] sm:$0xf]  ;;  %v3975_v22 = vld [vmem:[#allocation5 + $0xf4] sm:$0xf0] }
  0xa2   :  { %1630 = vmatpush.bf16.msra.mxu0 %v2807_v45  ;;  %v2599_v45 = vor.u32 %v3749_v33, %v2596_v34  ;;  %v3223_v48 = vor.u32 %v3905_v35, %v3220_v38  ;;  %v2884_v33 = vld [vmem:[#allocation2 + $0x258] sm:$0xf0]  ;;  %v3853_v34 = vld [vmem:[#allocation2 + $0x34c] sm:$0xf] }
  0xa3   :  { %1576 = vmatpush.bf16.msra.mxu1 %v3155_v47  ;;  %v2724_v47 = vld [vmem:[#allocation2 + $0x118] sm:$0xf0] }
  0xa4   :  { %1617 = vmatpush.bf16.msrb.mxu2 %v2663_v46  ;;  %v3781_v46 = vld [vmem:[#allocation2 + $0x10c] sm:$0xf]  ;;  %v3012_v35 = vld [vmem:[#allocation2 + $0x358] sm:$0xf0] }
  0xa5   :  { %1590 = vmatpush.bf16.msra.mxu3 %v3283_v52  ;;  %3370 = vmatmul.msk.bf16.vlgmr.msrb.gmra.mxu0 %vm1316_vm0, %v4275_v50  ;;  %v3348_v52 = vld [vmem:[#allocation2 + $0x5f8] sm:$0xf0]  ;;  %v3015_v43 = vor.u32 %v3853_v34, %v3012_v35  ;;  %v3414_v35 = vld [vmem:[#allocation5 + $0x50] sm:$0xf] }
  0xa6   :  { %1631 = vmatpush.bf16.msra.mxu0 %v2791_v61  ;;  %v2727_v61 = vor.u32 %v3781_v46, %v2724_v47  ;;  %v3351_v0 = vor.u32 %v3937_v51, %v3348_v52  ;;  %v2868_v46 = vld [vmem:[#allocation2 + $0x238] sm:$0xf0]  ;;  %v3849_v47 = vld [vmem:[#allocation2 + $0x32c] sm:$0xf]  ;;  %v4318_v52 = vld [vmem:[%s4390_s2] sm:$0xf] }
  0xa7   :  { %1577 = vmatpush.bf16.msra.mxu1 %v3139_v63  ;;  %v3060_v63 = vld [vmem:[#allocation2 + $0x3b8] sm:$0xf0]  ;;  %v3917_v51 = vld [vmem:[#allocation2 + $0x54c] sm:$0xf] }
  0xa8   :  { %1618 = vmatpush.bf16.msrb.mxu2 %v2647_v62  ;;  %v3865_v62 = vld [vmem:[#allocation2 + $0x3ac] sm:$0xf]  ;;  %v3271_v7 = vor.u32 %v3917_v51, %v3268_v57 }
  0xa9   :  { %1591 = vmatpush.bf16.msra.mxu3 %v3267_v3  ;;  %v3933_v3 = vld [vmem:[#allocation2 + $0x5cc] sm:$0xf]  ;;  %v3063_v6 = vor.u32 %v3865_v62, %v3060_v63 }
  0xaa   :  { %1632 = vmatpush.bf16.msra.mxu0 %v2775_v10  ;;  %v2916_v10 = vld [vmem:[#allocation2 + $0x298] sm:$0xf0]  ;;  %v3813_v63 = vld [vmem:[#allocation2 + $0x20c] sm:$0xf] }
  0xab   :  { %1578 = vmatpush.bf16.msra.mxu1 %v3123_v13  ;;  %v3335_v13 = vor.u32 %v3933_v3, %v3332_v4  ;;  %v2919_v15 = vor.u32 %v3829_v9, %v2916_v10  ;;  %v2980_v3 = vld [vmem:[#allocation2 + $0x318] sm:$0xf0]  ;;  %v3941_v4 = vld [vmem:[#allocation2 + $0x60c] sm:$0xf]  ;;  %v3430_v9 = vld [vmem:[#allocation5 + $0x70] sm:$0xf] }
  0xac   :  { %1619 = vmatpush.bf16.msrb.mxu2 %v2631_v12  ;;  %v3044_v12 = vld [vmem:[#allocation2 + $0x398] sm:$0xf0]  ;;  %v3959_v10 = vld [vmem:[#allocation5 + $0x74] sm:$0xf0] }
  0xad   :  { %1592 = vmatpush.bf16.msra.mxu3 %v3251_v17  ;;  %v3316_v17 = vld [vmem:[#allocation2 + $0x5b8] sm:$0xf0]  ;;  %v3047_v19 = vor.u32 %v3861_v11, %v3044_v12  ;;  %v3127_v11 = vor.u32 %v3881_v58, %v3124_v59  ;;  %v3431_v20 = vor.u32 %v3959_v10, %v3430_v9  ;;  %v3398_v58 = vld [vmem:[#allocation5 + $0x30] sm:$0xf]  ;;  %v3951_v59 = vld [vmem:[#allocation5 + $0x34] sm:$0xf0] }
  0xae   :  { %1633 = vmatpush.bf16.msra.mxu0 %v2759_v24  ;;  %v3028_v24 = vld [vmem:[#allocation2 + $0x378] sm:$0xf0] }
  0xaf   :  { %1579 = vmatpush.bf16.msra.mxu1 %v3107_v28  ;;  %v3300_v28 = vld [vmem:[#allocation2 + $0x598] sm:$0xf0]  ;;  %v3031_v30 = vor.u32 %v3857_v23, %v3028_v24  ;;  %v3422_v24 = vld [vmem:[#allocation5 + $0x60] sm:$0xf] }
  0xb0   :  { %1620 = vmatpush.bf16.msrb.mxu2 %v2615_v27  ;;  %v3925_v27 = vld [vmem:[#allocation2 + $0x58c] sm:$0xf] }
  0xb1   :  { %1593 = vmatpush.bf16.msra.mxu3 %v3235_v31  ;;  %v3156_v31 = vld [vmem:[#allocation2 + $0x478] sm:$0xf0] }
  0xb2   :  { %1634 = vmatpush.bf16.msra.mxu0 %v2743_v41  ;;  %1580 = vmatmul.bf16.vlgmr.msra.gmra.mxu1 %v4291_v37  ;;  %v3885_v41 = vld [vmem:[#allocation2 + $0x44c] sm:$0xf] }
  0xb3   :  { %1642 = vmatpush.bf16.msrb.mxu1 %v2967_v32  ;;  %v3821_v32 = vld [vmem:[#allocation2 + $0x24c] sm:$0xf]  ;;  %v3143_v53 = vor.u32 %v3885_v41, %v3140_v44 }
  0xb4   :  { %1594 = vmatmul.bf16.vlgmr.msra.gmra.mxu3 %v4293_v42  ;;  %1621 = vmatpush.bf16.msrb.mxu2 %v2599_v45  ;;  %v2887_v38 = vor.u32 %v3821_v32, %v2884_v33  ;;  %v3817_v45 = vld [vmem:[#allocation2 + $0x22c] sm:$0xf]  ;;  %v3973_v32 = vld [vmem:[#allocation5 + $0xe4] sm:$0xf0] }
  0xb5   :  { %1656 = vmatpush.bf16.msrb.mxu3 %v3095_v36  ;;  %v3159_v36 = vor.u32 %v3889_v29, %v3156_v31  ;;  %v3495_v29 = vor.u32 %v3975_v22, %v3494_v21  ;;  %v3486_v31 = vld [vmem:[#allocation5 + $0xe0] sm:$0xf]  ;;  %v3446_v22 = vld [vmem:[#allocation5 + $0x90] sm:$0xf] }
  0xb6   :  { %1635 = vmatpush.bf16.msra.mxu0 %v2727_v61  ;;  %v1329_v61 = vpop.f32.mrf.mxu0  ;;  %v3487_v41 = vor.u32 %v3973_v32, %v3486_v31  ;;  %v3438_v32 = vld [vmem:[#allocation5 + $0x80] sm:$0xf] }
  0xb7   :  { %1643 = vmatpush.bf16.msrb.mxu1 %v2951_v49  ;;  %1622 = vmatmul.bf16.vlgmr.msrb.gmra.mxu2 %v4253_v55  ;;  %v3319_v55 = vor.u32 %v3929_v16, %v3316_v17  ;;  %v3287_v49 = vor.u32 %v3921_v39, %v3284_v40  ;;  %v3877_v17 = vld [vmem:[#allocation2 + $0x40c] sm:$0xf]  ;;  %v1371_v39 = vpop.f32.mrf.mxu3 }
  0xb8   :  { %1670 = vmatpush.bf16.msra.mxu2 %v3223_v48  ;;  %v2996_v48 = vld [vmem:[#allocation2 + $0x338] sm:$0xf0] }
  0xb9   :  { %1657 = vmatpush.bf16.msrb.mxu3 %v3079_v56  ;;  %1636 = vmatmul.bf16.vlgmr.msra.gmra.mxu0 %v4265_v8  ;;  %v3303_v8 = vor.u32 %v3925_v27, %v3300_v28  ;;  %v2871_v56 = vor.u32 %v3817_v45, %v2868_v46  ;;  %v2999_v62 = vor.u32 %v3849_v47, %v2996_v48  ;;  %v3236_v27 = vld [vmem:[#allocation2 + $0x518] sm:$0xf0]  ;;  %v3478_v45 = vld [vmem:[#allocation5 + $0xd0] sm:$0xf]  ;;  %v3971_v46 = vld [vmem:[#allocation5 + $0xd4] sm:$0xf0] }
  0xba   :  { %1684 = vmatpush.bf16.msrb.mxu0 %v3351_v0  ;;  %v2852_v0 = vld [vmem:[#allocation2 + $0x218] sm:$0xf0]  ;;  %v3953_v47 = vld [vmem:[#allocation5 + $0x44] sm:$0xf0] }
  0xbb   :  { %1644 = vmatpush.bf16.msrb.mxu1 %v2935_v2  ;;  %v1343_v2 = vpop.f32.mrf.mxu1  ;;  %v2855_v12 = vor.u32 %v3813_v63, %v2852_v0 }
  0xbc   :  { %1671 = vmatpush.bf16.msra.mxu2 %v3207_v1  ;;  %v3845_v1 = vld [vmem:[#allocation2 + $0x30c] sm:$0xf] }
  0xbd   :  { %1658 = vmatpush.bf16.msrb.mxu3 %v3063_v6  ;;  %v1357_v6 = vpop.f32.mrf.mxu2  ;;  %v2983_v16 = vor.u32 %v3845_v1, %v2980_v3  ;;  %v3399_v1 = vor.u32 %v3951_v59, %v3398_v58  ;;  %v3967_v3 = vld [vmem:[#allocation5 + $0xb4] sm:$0xf0]  ;;  %v3952_v58 = vld [vmem:[#allocation5 + $0x44] sm:$0xf]  ;;  %v3408_v59 = vld [vmem:[#allocation5 + $0x48] sm:$0xf0] }
  0xbe   :  { %1685 = vmatpush.bf16.msrb.mxu0 %v3335_v13  ;;  %v3913_v13 = vld [vmem:[#allocation2 + $0x52c] sm:$0xf]  ;;  %v1331_v33 = vpop.f32.mrf.mxu0 }
  0xbf   :  { %1645 = vmatpush.bf16.msrb.mxu1 %v2919_v15  ;;  %v293_v15 = vperm.slane %v4318_v52, 0 }
  0xc0   :  { %1672 = vmatpush.bf16.msra.mxu2 %v3191_v14  ;;  %v3252_v14 = vld [vmem:[#allocation2 + $0x538] sm:$0xf0] }
  0xc1   :  { %1659 = vmatpush.bf16.msrb.mxu3 %v3047_v19  ;;  %v3367_v19 = vor.u32 %v3941_v4, %v3364_v5  ;;  %v3255_v23 = vor.u32 %v3913_v13, %v3252_v14  ;;  %v1330_v28 = vadd.f32 %v1329_v61, %v293_v15  ;;  %v1373_v4 = vpop.f32.mrf.mxu3 }
  0xc2   :  { %1686 = vmatpush.bf16.msrb.mxu0 %v3319_v55  ;;  %v3957_v55 = vld [vmem:[#allocation5 + $0x64] sm:$0xf0] }
  0xc3   :  { %1646 = vmatpush.bf16.msrb.mxu1 %v2903_v26  ;;  %v3909_v26 = vld [vmem:[#allocation2 + $0x50c] sm:$0xf] }
  0xc4   :  { %1673 = vmatpush.bf16.msra.mxu2 %v3175_v25  ;;  %v3111_v25 = vor.u32 %v3877_v17, %v3108_v18  ;;  %v3239_v34 = vor.u32 %v3909_v26, %v3236_v27  ;;  %v3945_v26 = vld [vmem:[#allocation5 + $0x4] sm:$0xf0] }
  0xc5   :  { %1660 = vmatpush.bf16.msrb.mxu3 %v3031_v30  ;;  %v3423_v30 = vor.u32 %v3957_v55, %v3422_v24  ;;  %v1359_v40 = vpop.f32.mrf.mxu2 }
  0xc6   :  { %1687 = vmatpush.bf16.msrb.mxu0 %v3303_v8  ;;  %v3955_v8 = vld [vmem:[#allocation5 + $0x54] sm:$0xf0] }
  0xc7   :  { %1647 = vmatpush.bf16.msrb.mxu1 %v2887_v38  ;;  %v1344_v38 = vadd.f32 %v1343_v2, %v1330_v28  ;;  %v3415_v44 = vor.u32 %v3955_v8, %v3414_v35  ;;  %v3462_v2 = vld [vmem:[#allocation5 + $0xb0] sm:$0xf]  ;;  %v3958_v28 = vld [vmem:[#allocation5 + $0x74] sm:$0xf] }
  0xc8   :  { %1674 = vmatpush.bf16.msra.mxu2 %v3159_v36  ;;  %v1345_v36 = vpop.f32.mrf.mxu1  ;;  %v3974_v8 = vld [vmem:[#allocation5 + $0xf4] sm:$0xf] }
  0xc9   :  { %1661 = vmatpush.bf16.msrb.mxu3 %v3015_v43  ;;  %v1332_v43 = vadd.f32 %v1331_v33, %v293_v15  ;;  %v1358_v48 = vadd.f32 %v1357_v6, %v1344_v38  ;;  %v3949_v6 = vld [vmem:[#allocation5 + $0x24] sm:$0xf0]  ;;  %v3382_v15 = vld [vmem:[#allocation5 + $0x10] sm:$0xf] }
  0xca   :  { %1688 = vmatpush.bf16.msrb.mxu0 %v3287_v49  ;;  %v3479_v49 = vor.u32 %v3971_v46, %v3478_v45  ;;  %v3961_v33 = vld [vmem:[#allocation5 + $0x84] sm:$0xf0] }
  0xcb   :  { %1648 = vmatpush.bf16.msrb.mxu1 %v2871_v56  ;;  %v3969_v56 = vld [vmem:[#allocation5 + $0xc4] sm:$0xf0] }
  0xcc   :  { %1675 = vmatpush.bf16.msra.mxu2 %v3143_v53  ;;  %v3470_v53 = vld [vmem:[#allocation5 + $0xc0] sm:$0xf] }
  0xcd   :  { %1662 = vmatpush.bf16.msrb.mxu3 %v2999_v62  ;;  %v1372_v62 = vadd.f32 %v1371_v39, %v1358_v48  ;;  %v1413_v63 = vpop.f32.mrf.mxu2  ;;  %v3956_v39 = vld [vmem:[#allocation5 + $0x64] sm:$0xf]  ;;  %v3954_v48 = vld [vmem:[#allocation5 + $0x54] sm:$0xf] }
  0xce   :  { %1689 = vmatpush.bf16.msrb.mxu0 %v3271_v7  ;;  %v1385_v57 = vpop.f32.mrf.mxu0  ;;  %v3463_v7 = vor.u32 %v3967_v3, %v3462_v2  ;;  %v3950_v2 = vld [vmem:[#allocation5 + $0x34] sm:$0xf]  ;;  %v3400_v3 = vld [vmem:[#allocation5 + $0x38] sm:$0xf0] }
  0xcf   :  { %1649 = vmatpush.bf16.msrb.mxu1 %v2855_v12  ;;  %v1386_v5 = vadd.f32 %v1385_v57, %v1372_v62  ;;  %v3965_v12 = vld [vmem:[#allocation5 + $0xa4] sm:$0xf0]  ;;  %v294_v57 = vperm.slane %v4318_v52, 1 }
  0xd0   :  { %1676 = vmatpush.bf16.msra.mxu2 %v3127_v11  ;;  %v1399_v61 = vpop.f32.mrf.mxu1  ;;  %v3454_v11 = vld [vmem:[#allocation5 + $0xa0] sm:$0xf] }
  0xd1   :  { %1663 = vmatpush.bf16.msrb.mxu3 %v2983_v16  ;;  %v1400_v13 = vadd.f32 %v1399_v61, %v1386_v5  ;;  %v3947_v16 = vld [vmem:[#allocation5 + $0x14] sm:$0xf0] }
  0xd2   :  { %1690 = vmatpush.bf16.msrb.mxu0 %v3255_v23  ;;  %1650 = vmatmul.bf16.vlgmr.msrb.gmra.mxu1 %v4251_v54  ;;  %v3406_v54 = vld [vmem:[#allocation5 + $0x40] sm:$0xf]  ;;  %v3383_v21 = vor.u32 %v3947_v16, %v3382_v15  ;;  %v3963_v23 = vld [vmem:[#allocation5 + $0x94] sm:$0xf0]  ;;  %v3558_v15 = vld [vmem:[#allocation5 + $0x170] sm:$0xf] }
  0xd3   :  { %1705 = vmatpush.bf16.msra.mxu1 %v3367_v19  ;;  %v3407_v51 = vor.u32 %v3953_v47, %v3406_v54  ;;  %v3455_v19 = vor.u32 %v3965_v12, %v3454_v11  ;;  %v1414_v24 = vadd.f32 %v1413_v63, %v1400_v13  ;;  %v3972_v54 = vld [vmem:[#allocation5 + $0xe4] sm:$0xf]  ;;  %v3488_v47 = vld [vmem:[#allocation5 + $0xe8] sm:$0xf0]  ;;  %v3411_v63 = vor.u32 %v3952_v58, %v3408_v59  ;;  %v3991_v16 = vld [vmem:[#allocation5 + $0x174] sm:$0xf0] }
  0xd4   :  { %1664 = vmatmul.bf16.vlgmr.msrb.gmra.mxu3 %v4255_v60  ;;  %1677 = vmatpush.bf16.msra.mxu2 %v3111_v25  ;;  %v1346_v60 = vadd.f32 %v1345_v36, %v1332_v43  ;;  %v3374_v25 = vld [vmem:[#allocation5] sm:$0xf]  ;;  %v3496_v36 = vld [vmem:[#allocation5 + $0xf8] sm:$0xf0]  ;;  %v3439_v43 = vor.u32 %v3961_v33, %v3438_v32  ;;  %v3944_v32 = vld [vmem:[#allocation5 + $0x4] sm:$0xf] }
  0xd5   :  { %2114 = vmatpush.bf16.msra.mxu3 %v3431_v20  ;;  %v1415_v55 = vpop.f32.mrf.mxu2  ;;  %v3375_v31 = vor.u32 %v3945_v26, %v3374_v25  ;;  %v3384_v25 = vld [vmem:[#allocation5 + $0x18] sm:$0xf0]  ;;  %v3550_v26 = vld [vmem:[#allocation5 + $0x160] sm:$0xf]  ;;  %v3962_v33 = vld [vmem:[#allocation5 + $0x94] sm:$0xf] }
  0xd6   :  { %1691 = vmatpush.bf16.msrb.mxu0 %v3239_v34  ;;  %v1360_v0 = vadd.f32 %v1359_v40, %v1346_v60  ;;  %v1387_v14 = vpop.f32.mrf.mxu0  ;;  %v1712_v34 = vmax.f32 %v1414_v24, 0.0  ;;  %v3424_v40 = vld [vmem:[#allocation5 + $0x68] sm:$0xf0]  ;;  %v3491_v60 = vor.u32 %v3972_v54, %v3488_v47  ;;  %v3526_v58 = vld [vmem:[#allocation5 + $0x130] sm:$0xf] }
  0xd7   :  { %2128 = vmatpush.bf16.msrb.mxu1 %v3495_v29  ;;  %1678 = vmatmul.bf16.vlgmr.msra.gmra.mxu2 %v4291_v37  ;;  %v3471_v37 = vor.u32 %v3969_v56, %v3470_v53  ;;  %v3432_v29 = vld [vmem:[#allocation5 + $0x78] sm:$0xf0]  ;;  %v1427_v38 = vpop.f32.mrf.mxu3  ;;  %v3427_v46 = vor.u32 %v3956_v39, %v3424_v40  ;;  %v3970_v53 = vld [vmem:[#allocation5 + $0xd4] sm:$0xf]  ;;  %v3987_v39 = vld [vmem:[#allocation5 + $0x154] sm:$0xf0] }
  0xd8   :  { %v1374_v9 = vadd.f32 %v1373_v4, %v1360_v0  ;;  %v1401_v18 = vpop.f32.mrf.mxu1  ;;  %v3435_v35 = vor.u32 %v3958_v28, %v3432_v29  ;;  %v3480_v56 = vld [vmem:[#allocation5 + $0xd8] sm:$0xf0]  ;;  %v3472_v0 = vld [vmem:[#allocation5 + $0xc8] sm:$0xf0]  ;;  %v3983_v59 = vld [vmem:[#allocation5 + $0x134] sm:$0xf0] }
  0xd9   :  { %2115 = vmatpush.bf16.msra.mxu3 %v3423_v30  ;;  %1692 = vmatmul.bf16.vlgmr.msrb.gmra.mxu0 %v4293_v42  ;;  %v3390_v42 = vld [vmem:[#allocation5 + $0x20] sm:$0xf]  ;;  %v3483_v62 = vor.u32 %v3970_v53, %v3480_v56  ;;  %v3440_v54 = vld [vmem:[#allocation5 + $0x88] sm:$0xf0] }
  0xda   :  { %v3391_v10 = vor.u32 %v3949_v6, %v3390_v42  ;;  %v1388_v17 = vadd.f32 %v1387_v14, %v1374_v9  ;;  %v3403_v6 = vor.u32 %v3950_v2, %v3400_v3  ;;  %v3966_v9 = vld [vmem:[#allocation5 + $0xb4] sm:$0xf]  ;;  %v3392_v14 = vld [vmem:[#allocation5 + $0x28] sm:$0xf0] }
  0xdb   :  { %2129 = vmatpush.bf16.msrb.mxu1 %v3487_v41 }
  0xdc   :  { %v1402_v20 = vadd.f32 %v1401_v18, %v1388_v17  ;;  %v3559_v17 = vor.u32 %v3991_v16, %v3558_v15  ;;  %v3560_v16 = vld [vmem:[#allocation5 + $0x178] sm:$0xf0] }
  0xdd   :  { %2116 = vmatpush.bf16.msra.mxu3 %v3415_v44  ;;  %v3499_v44 = vor.u32 %v3974_v8, %v3496_v36  ;;  %v1441_v45 = vpop.f32.mrf.mxu2  ;;  %v3376_v36 = vld [vmem:[#allocation5 + $0x8] sm:$0xf0] }
  0xde   :  { %v1416_v27 = vadd.f32 %v1415_v55, %v1402_v20  ;;  %v3946_v20 = vld [vmem:[#allocation5 + $0x14] sm:$0xf]  ;;  %2142 = vmatpush.bf16.msrb.mxu2 %v3559_v17 }
  0xdf   :  { %2130 = vmatpush.bf16.msrb.mxu1 %v3479_v49  ;;  %v3416_v49 = vld [vmem:[#allocation5 + $0x58] sm:$0xf0]  ;;  %v1429_v61 = vpop.f32.mrf.mxu3 }
  0xe0   :  { %v1716_v30 = vmax.f32 %v1416_v27, 0.0  ;;  %v1430_v12 = vadd.f32 %v1429_v61, %v294_v57  ;;  %v3989_v27 = vld [vmem:[#allocation5 + $0x164] sm:$0xf0]  ;;  %v3527_v61 = vor.u32 %v3983_v59, %v3526_v58 }
  0xe1   :  { %2117 = vmatpush.bf16.msra.mxu3 %v3407_v51  ;;  %v3419_v51 = vor.u32 %v3954_v48, %v3416_v49  ;;  %v3551_v29 = vor.u32 %v3989_v27, %v3550_v26  ;;  %v3534_v49 = vld [vmem:[#allocation5 + $0x140] sm:$0xf]  ;;  %v3544_v26 = vld [vmem:[#allocation5 + $0x158] sm:$0xf0] }
  0xe2   :  { %3371 = vmatmul.msk.bf16.vlgmr.msra.gmra.mxu1 %vm1316_vm0, %v4275_v50  ;;  %v3447_v50 = vor.u32 %v3963_v23, %v3446_v22  ;;  %v4327_v41 = vpack.c.bf16 %v1716_v30, %v1712_v34  ;;  %v3456_v22 = vld [vmem:[#allocation5 + $0xa8] sm:$0xf0]  ;;  %v3448_v34 = vld [vmem:[#allocation5 + $0x98] sm:$0xf0] }
  0xe3   :  { %2131 = vmatpush.bf16.msrb.mxu1 %v3471_v37  ;;  %v3968_v37 = vld [vmem:[#allocation5 + $0xc4] sm:$0xf]  ;;  %2143 = vmatpush.bf16.msrb.mxu2 %v3551_v29  ;;  %v4005_v29 = vld [vmem:[#allocation5 + $0x1e4] sm:$0xf0] }
  0xe4   :  { %v3475_v42 = vor.u32 %v3968_v37, %v3472_v0  ;;  %v3518_v37 = vld [vmem:[#allocation5 + $0x120] sm:$0xf]  ;;  %v3981_v0 = vld [vmem:[#allocation5 + $0x124] sm:$0xf0] }
  0xe5   :  { %2118 = vmatpush.bf16.msra.mxu3 %v3399_v1  ;;  %v1428_v1 = vadd.f32 %v1427_v38, %v294_v57  ;;  %v1443_v5 = vpop.f32.mrf.mxu2  ;;  %v3542_v38 = vld [vmem:[#allocation5 + $0x150] sm:$0xf]  ;;  %v3519_v2 = vor.u32 %v3981_v0, %v3518_v37 }
  0xe6   :  { %v1444_v24 = vadd.f32 %v1443_v5, %v1430_v12 }
  0xe7   :  { %2132 = vmatpush.bf16.msrb.mxu1 %v3463_v7  ;;  %v3948_v7 = vld [vmem:[#allocation5 + $0x24] sm:$0xf]  ;;  %v1442_v11 = vadd.f32 %v1441_v45, %v1428_v1  ;;  %v3379_v45 = vor.u32 %v3944_v32, %v3376_v36 }
  0xe9   :  { %2119 = vmatpush.bf16.msra.mxu3 %v3391_v10  ;;  %v3464_v10 = vld [vmem:[#allocation5 + $0xb8] sm:$0xf0] }
  0xea   :  { %v3467_v18 = vor.u32 %v3966_v9, %v3464_v10  ;;  %v3510_v9 = vld [vmem:[#allocation5 + $0x110] sm:$0xf]  ;;  %v3979_v10 = vld [vmem:[#allocation5 + $0x114] sm:$0xf0] }
  0xeb   :  { %2133 = vmatpush.bf16.msrb.mxu1 %v3455_v19  ;;  %v3395_v19 = vor.u32 %v3948_v7, %v3392_v14  ;;  %v3977_v14 = vld [vmem:[#allocation5 + $0x104] sm:$0xf0] }
  0xed   :  { %2120 = vmatpush.bf16.msra.mxu3 %v3383_v21  ;;  %v3964_v21 = vld [vmem:[#allocation5 + $0xa4] sm:$0xf] }
  0xee   :  { %v1455_v4 = vpop.f32.mrf.mxu0 }
  0xef   :  { %2134 = vmatpush.bf16.msrb.mxu1 %v3447_v50  ;;  %v1469_v13 = vpop.f32.mrf.mxu1  ;;  %v1456_v23 = vadd.f32 %v1455_v4, %v1442_v11  ;;  %v3459_v50 = vor.u32 %v3964_v21, %v3456_v22  ;;  %v3511_v11 = vor.u32 %v3979_v10, %v3510_v9  ;;  %v3622_v21 = vld [vmem:[#allocation5 + $0x1f0] sm:$0xf]  ;;  %v4007_v22 = vld [vmem:[#allocation5 + $0x1f4] sm:$0xf0] }
  0xf0   :  { %v3574_v10 = vld [vmem:[#allocation5 + $0x190] sm:$0xf] }
  0xf1   :  { %2121 = vmatpush.bf16.msra.mxu3 %v3375_v31  ;;  %v3387_v31 = vor.u32 %v3946_v20, %v3384_v25  ;;  %v3623_v25 = vor.u32 %v4007_v22, %v3622_v21  ;;  %v4006_v22 = vld [vmem:[#allocation5 + $0x1f4] sm:$0xf] }
  0xf3   :  { %2135 = vmatpush.bf16.msrb.mxu1 %v3439_v43  ;;  %v3543_v43 = vor.u32 %v3987_v39, %v3542_v38  ;;  %2156 = vmatpush.bf16.msra.mxu0 %v3623_v25  ;;  %v3982_v38 = vld [vmem:[#allocation5 + $0x134] sm:$0xf]  ;;  %v3528_v39 = vld [vmem:[#allocation5 + $0x138] sm:$0xf0] }
  0xf4   :  { %2122 = vmatmul.bf16.vlgmr.msra.gmra.mxu3 %v4327_v41 }
  0xf5   :  { %2170 = vmatpush.bf16.msrb.mxu3 %v3435_v35  ;;  %v1470_v35 = vadd.f32 %v1469_v13, %v1456_v23  ;;  %2144 = vmatpush.bf16.msrb.mxu2 %v3543_v43  ;;  %v3502_v13 = vld [vmem:[#allocation5 + $0x100] sm:$0xf]  ;;  %v3986_v23 = vld [vmem:[#allocation5 + $0x154] sm:$0xf] }
  0xf6   :  { %v1457_v28 = vpop.f32.mrf.mxu0  ;;  %v3503_v15 = vor.u32 %v3977_v14, %v3502_v13  ;;  %v3547_v27 = vor.u32 %v3986_v23, %v3544_v26  ;;  %v3598_v43 = vld [vmem:[#allocation5 + $0x1c0] sm:$0xf]  ;;  %v3624_v23 = vld [vmem:[#allocation5 + $0x1f8] sm:$0xf0] }
  0xf7   :  { %2184 = vmatpush.bf16.msra.mxu1 %v3499_v44  ;;  %v1483_v55 = vpop.f32.mrf.mxu3  ;;  %v1458_v8 = vadd.f32 %v1457_v28, %v1444_v24  ;;  %v1471_v40 = vpop.f32.mrf.mxu1  ;;  %v3451_v44 = vor.u32 %v3962_v33, %v3448_v34  ;;  %v3614_v28 = vld [vmem:[#allocation5 + $0x1e0] sm:$0xf]  ;;  %v3606_v34 = vld [vmem:[#allocation5 + $0x1d0] sm:$0xf]  ;;  %v3627_v25 = vor.u32 %v4006_v22, %v3624_v23 }
  0xf8   :  { %v1484_v47 = vadd.f32 %v1483_v55, %v1470_v35  ;;  %v4003_v35 = vld [vmem:[#allocation5 + $0x1d4] sm:$0xf0] }
  0xf9   :  { %2171 = vmatpush.bf16.msrb.mxu3 %v3427_v46  ;;  %v3960_v46 = vld [vmem:[#allocation5 + $0x84] sm:$0xf]  ;;  %v1472_v48 = vadd.f32 %v1471_v40, %v1458_v8  ;;  %v295_v8 = vperm.slane %v4318_v52, 2  ;;  %v3607_v36 = vor.u32 %v4003_v35, %v3606_v34  ;;  %v3531_v40 = vor.u32 %v3982_v38, %v3528_v39  ;;  %v3608_v34 = vld [vmem:[#allocation5 + $0x1d8] sm:$0xf0] }
  0xfa   :  { %v1497_v30 = vpop.f32.mrf.mxu2  ;;  %v3443_v57 = vor.u32 %v3960_v46, %v3440_v54 }
  0xfb   :  { %2185 = vmatpush.bf16.msra.mxu1 %v3491_v60  ;;  %v3985_v60 = vld [vmem:[#allocation5 + $0x144] sm:$0xf0] }
  0xfc   :  { %v3535_v56 = vor.u32 %v3985_v60, %v3534_v49 }
  0xfd   :  { %2172 = vmatpush.bf16.msrb.mxu3 %v3419_v51 }
  0xfe   :  { %v1511_v53 = vpop.f32.mrf.mxu0  ;;  %2145 = vmatpush.bf16.msrb.mxu2 %v3535_v56  ;;  %v3978_v56 = vld [vmem:[#allocation5 + $0x114] sm:$0xf] }
  0xff   :  { %2186 = vmatpush.bf16.msra.mxu1 %v3483_v62  ;;  %v1485_v51 = vpop.f32.mrf.mxu3  ;;  %v1498_v62 = vadd.f32 %v1497_v30, %v1484_v47  ;;  %v3615_v30 = vor.u32 %v4005_v29, %v3614_v28  ;;  %v4004_v28 = vld [vmem:[#allocation5 + $0x1e4] sm:$0xf]  ;;  %v3616_v29 = vld [vmem:[#allocation5 + $0x1e8] sm:$0xf0] }
 0x101   :  { %2173 = vmatpush.bf16.msrb.mxu3 %v3411_v63  ;;  %v1486_v63 = vadd.f32 %v1485_v51, %v1472_v48  ;;  %v1512_v3 = vadd.f32 %v1511_v53, %v1498_v62  ;;  %2157 = vmatpush.bf16.msra.mxu0 %v3615_v30  ;;  %v3520_v48 = vld [vmem:[#allocation5 + $0x128] sm:$0xf0]  ;;  %v3590_v51 = vld [vmem:[#allocation5 + $0x1b0] sm:$0xf]  ;;  %v3999_v53 = vld [vmem:[#allocation5 + $0x1b4] sm:$0xf0] }
 0x102   :  { %v1499_v1 = vpop.f32.mrf.mxu2  ;;  %2146 = vmatpush.bf16.msrb.mxu2 %v3527_v61  ;;  %v3591_v59 = vor.u32 %v3999_v53, %v3590_v51  ;;  %v3512_v61 = vld [vmem:[#allocation5 + $0x118] sm:$0xf0]  ;;  %v3996_v53 = vld [vmem:[#allocation5 + $0x1a4] sm:$0xf] }
 0x103   :  { %2187 = vmatpush.bf16.msra.mxu1 %v3475_v42  ;;  %v1500_v4 = vadd.f32 %v1499_v1, %v1486_v63  ;;  %v3515_v37 = vor.u32 %v3978_v56, %v3512_v61  ;;  %v3584_v56 = vld [vmem:[#allocation5 + $0x1a8] sm:$0xf0]  ;;  %v3576_v61 = vld [vmem:[#allocation5 + $0x198] sm:$0xf0] }
 0x105   :  { %2174 = vmatpush.bf16.msrb.mxu3 %v3403_v6  ;;  %v1713_v6 = vmax.f32 %v1512_v3, 0.0  ;;  %2158 = vmatpush.bf16.msra.mxu0 %v3607_v36  ;;  %v3997_v3 = vld [vmem:[#allocation5 + $0x1a4] sm:$0xf0] }
 0x106   :  { %v1513_v5 = vpop.f32.mrf.mxu0  ;;  %2147 = vmatpush.bf16.msrb.mxu2 %v3519_v2  ;;  %v3582_v2 = vld [vmem:[#allocation5 + $0x1a0] sm:$0xf] }
 0x107   :  { %2188 = vmatpush.bf16.msra.mxu1 %v3467_v18  ;;  %v1514_v42 = vadd.f32 %v1513_v5, %v1500_v4  ;;  %v3988_v18 = vld [vmem:[#allocation5 + $0x164] sm:$0xf]  ;;  %v3583_v5 = vor.u32 %v3997_v3, %v3582_v2  ;;  %v3568_v3 = vld [vmem:[#allocation5 + $0x188] sm:$0xf0] }
 0x108   :  { %v3976_v4 = vld [vmem:[#allocation5 + $0x104] sm:$0xf] }
 0x109   :  { %2175 = vmatpush.bf16.msrb.mxu3 %v3395_v19  ;;  %v1717_v7 = vmax.f32 %v1514_v42, 0.0  ;;  %v3552_v19 = vld [vmem:[#allocation5 + $0x168] sm:$0xf0] }
 0x10a   :  { %2148 = vmatpush.bf16.msrb.mxu2 %v3511_v11  ;;  %v3555_v20 = vor.u32 %v3988_v18, %v3552_v19  ;;  %v3504_v42 = vld [vmem:[#allocation5 + $0x108] sm:$0xf0]  ;;  %v3995_v11 = vld [vmem:[#allocation5 + $0x194] sm:$0xf0]  ;;  %v3993_v18 = vld [vmem:[#allocation5 + $0x184] sm:$0xf0] }
 0x10b   :  { %2189 = vmatpush.bf16.msra.mxu1 %v3459_v50  ;;  %v1721_v12 = vpack.c.bf16 %v1717_v7, %v1713_v6  ;;  %v3984_v50 = vld [vmem:[#allocation5 + $0x144] sm:$0xf]  ;;  %v3507_v9 = vor.u32 %v3976_v4, %v3504_v42  ;;  %v3575_v13 = vor.u32 %v3995_v11, %v3574_v10 }
 0x10d   :  { %2176 = vmatpush.bf16.msrb.mxu3 %v3387_v31  ;;  %2136 = vmatmul.bf16.vlgmr.msrb.gmra.mxu1 %v1721_v12  ;;  %v3536_v31 = vld [vmem:[#allocation5 + $0x148] sm:$0xf0] }
 0x10e   :  { %2149 = vmatpush.bf16.msrb.mxu2 %v3503_v15  ;;  %v3539_v32 = vor.u32 %v3984_v50, %v3536_v31  ;;  %v3619_v31 = vor.u32 %v4004_v28, %v3616_v29  ;;  %v4023_v28 = vld [vmem:[#allocation7 + $0x78] sm:$0xff]  ;;  %v4010_v29 = vld [vmem:[#allocation7 + $0x10] sm:$0xff] }
 0x10f   :  { %2190 = vmatpush.bf16.msra.mxu1 %v3451_v44  ;;  %v1525_v24 = vpop.f32.mrf.mxu1  ;;  %v4001_v44 = vld [vmem:[#allocation5 + $0x1c4] sm:$0xf0] }
 0x110   :  { %v3599_v47 = vor.u32 %v4001_v44, %v3598_v43  ;;  %v1526_v60 = vadd.f32 %v1525_v24, %v295_v8  ;;  %v4000_v43 = vld [vmem:[#allocation5 + $0x1c4] sm:$0xf]  ;;  %v3600_v44 = vld [vmem:[#allocation5 + $0x1c8] sm:$0xf0] }
 0x111   :  { %2177 = vmatpush.bf16.msrb.mxu3 %v3379_v45  ;;  %v3980_v45 = vld [vmem:[#allocation5 + $0x124] sm:$0xf] }
 0x112   :  { %v1553_v55 = vpop.f32.mrf.mxu0  ;;  %v3523_v49 = vor.u32 %v3980_v45, %v3520_v48  ;;  %2159 = vmatpush.bf16.msra.mxu0 %v3599_v47  ;;  %v3603_v45 = vor.u32 %v4000_v43, %v3600_v44  ;;  %v296_v47 = vperm.slane %v4318_v52, 3  ;;  %v3992_v52 = vld [vmem:[#allocation5 + $0x184] sm:$0xf] }
 0x113   :  { %2191 = vmatpush.bf16.msra.mxu1 %v3443_v57  ;;  %v4016_v43 = vld [vmem:[#allocation7 + $0x40] sm:$0xff] }
 0x114   :  { %2178 = vmatmul.bf16.vlgmr.msrb.gmra.mxu3 %v4327_v41  ;;  %v3990_v41 = vld [vmem:[#allocation5 + $0x174] sm:$0xf] }
 0x115   :  { %v3563_v17 = vor.u32 %v3990_v41, %v3560_v16 }
 0x116   :  { %2160 = vmatpush.bf16.msra.mxu0 %v3591_v59  ;;  %v3994_v59 = vld [vmem:[#allocation5 + $0x194] sm:$0xf] }
 0x117   :  { %2198 = vmatpush.bf16.msra.mxu2 %v3563_v17  ;;  %v1539_v33 = vpop.f32.mrf.mxu3  ;;  %v1527_v46 = vpop.f32.mrf.mxu1  ;;  %v3566_v17 = vld [vmem:[#allocation5 + $0x180] sm:$0xf]  ;;  %2378 = vmatpush.bf16.msrb.mxu1 %v4023_v28 }
 0x118   :  { %v1540_v62 = vadd.f32 %v1539_v33, %v1526_v60  ;;  %v1528_v63 = vadd.f32 %v1527_v46, %v295_v8  ;;  %v3567_v21 = vor.u32 %v3993_v18, %v3566_v17  ;;  %v4002_v33 = vld [vmem:[#allocation5 + $0x1d4] sm:$0xf] }
 0x119   :  { %v3611_v36 = vor.u32 %v4002_v33, %v3608_v34  ;;  %v3998_v46 = vld [vmem:[#allocation5 + $0x1b4] sm:$0xf]  ;;  %v4020_v33 = vld [vmem:[#allocation7 + $0x60] sm:$0xff]  ;;  %v4019_v34 = vld [vmem:[#allocation7 + $0x58] sm:$0xff] }
 0x11a   :  { %v1555_v54 = vpop.f32.mrf.mxu0  ;;  %v1567_v57 = vpop.f32.mrf.mxu2  ;;  %v1554_v6 = vadd.f32 %v1553_v55, %v1540_v62  ;;  %2161 = vmatpush.bf16.msra.mxu0 %v3583_v5  ;;  %v3579_v62 = vor.u32 %v3994_v59, %v3576_v61  ;;  %v3571_v5 = vor.u32 %v3992_v52, %v3568_v3 }
 0x11b   :  { %2199 = vmatpush.bf16.msra.mxu2 %v3555_v20 }
 0x11c   :  { %v1568_v14 = vadd.f32 %v1567_v57, %v1554_v6 }
 0x11d   :  { %2192 = vmatmul.bf16.vlgmr.msra.gmra.mxu1 %v1721_v12 }
 0x11e   :  { %2162 = vmatpush.bf16.msra.mxu0 %v3575_v13 }
 0x11f   :  { %2200 = vmatpush.bf16.msra.mxu2 %v3547_v27  ;;  %v1541_v58 = vpop.f32.mrf.mxu3 }
 0x120   :  { %v1542_v7 = vadd.f32 %v1541_v58, %v1528_v63  ;;  %v3587_v58 = vor.u32 %v3996_v53, %v3584_v56 }
 0x122   :  { %v1609_v1 = vpop.f32.mrf.mxu0  ;;  %v1556_v15 = vadd.f32 %v1555_v54, %v1542_v7  ;;  %v1569_v41 = vpop.f32.mrf.mxu2  ;;  %2163 = vmatpush.bf16.msra.mxu0 %v3567_v21  ;;  %v3592_v54 = vld [vmem:[#allocation5 + $0x1b8] sm:$0xf0] }
 0x123   :  { %2201 = vmatpush.bf16.msra.mxu2 %v3539_v32  ;;  %v3595_v48 = vor.u32 %v3998_v46, %v3592_v54  ;;  %v4031_v54 = vld [vmem:[%s4395_s7 + $0x38] sm:$0xff] }
 0x124   :  { %v1570_v24 = vadd.f32 %v1569_v41, %v1556_v15 }
 0x126   :  { %2212 = vmatpush.bf16.msrb.mxu0 %v3627_v25  ;;  %v4013_v25 = vld [vmem:[#allocation7 + $0x28] sm:$0xff] }
 0x127   :  { %2202 = vmatpush.bf16.msra.mxu2 %v3531_v40 }
 0x12a   :  { %v1611_v20 = vpop.f32.mrf.mxu0  ;;  %2213 = vmatpush.bf16.msrb.mxu0 %v3619_v31  ;;  %v4021_v31 = vld [vmem:[#allocation7 + $0x68] sm:$0xff] }
 0x12b   :  { %2203 = vmatpush.bf16.msra.mxu2 %v3523_v49 }
 0x12e   :  { %2214 = vmatpush.bf16.msrb.mxu0 %v3611_v36 }
 0x12f   :  { %v1581_v0 = vpop.f32.mrf.mxu1  ;;  %2204 = vmatpush.bf16.msra.mxu2 %v3515_v37 }
 0x130   :  { %v1582_v16 = vadd.f32 %v1581_v0, %v1568_v14 }
 0x132   :  { %2215 = vmatpush.bf16.msrb.mxu0 %v3603_v45 }
 0x133   :  { %2205 = vmatpush.bf16.msra.mxu2 %v3507_v9 }
 0x136   :  { %v1637_v39 = vpop.f32.mrf.mxu0  ;;  %2216 = vmatpush.bf16.msrb.mxu0 %v3595_v48 }
 0x137   :  { %v1595_v12 = vpop.f32.mrf.mxu3  ;;  %v1583_v19 = vpop.f32.mrf.mxu1 }
 0x138   :  { %v1596_v55 = vadd.f32 %v1595_v12, %v1582_v16  ;;  %v1584_v26 = vadd.f32 %v1583_v19, %v1570_v24  ;;  %v4015_v24 = vld [vmem:[#allocation7 + $0x38] sm:$0xff] }
 0x139   :  { %2364 = vmatpush.bf16.msra.mxu3 %v4015_v24  ;;  %v4024_v24 = vld [vmem:[%s4395_s7] sm:$0xff] }
 0x13a   :  { %v1610_v50 = vadd.f32 %v1609_v1, %v1596_v55  ;;  %v1623_v38 = vpop.f32.mrf.mxu2  ;;  %2217 = vmatpush.bf16.msrb.mxu0 %v3587_v58  ;;  %v4014_v55 = vld [vmem:[#allocation7 + $0x30] sm:$0xff] }
 0x13b   :  { %v1624_v57 = vadd.f32 %v1623_v38, %v296_v47 }
 0x13c   :  { %v1714_v35 = vmax.f32 %v1610_v50, 0.0  ;;  %v4022_v50 = vld [vmem:[#allocation7 + $0x70] sm:$0xff] }
 0x13d   :  { %v1638_v63 = vadd.f32 %v1637_v39, %v1624_v57  ;;  %2365 = vmatpush.bf16.msra.mxu3 %v4014_v55  ;;  %2379 = vmatpush.bf16.msrb.mxu1 %v4022_v50  ;;  %v4017_v39 = vld [vmem:[#allocation7 + $0x48] sm:$0xff]  ;;  %v4035_v55 = vld [vmem:[%s4397_s9 + $0x18] sm:$0xff] }
 0x13e   :  { %v1639_v51 = vpop.f32.mrf.mxu0  ;;  %2218 = vmatpush.bf16.msrb.mxu0 %v3579_v62 }
 0x13f   :  { %v1597_v27 = vpop.f32.mrf.mxu3 }
 0x140   :  { %v1598_v30 = vadd.f32 %v1597_v27, %v1584_v26  ;;  %v4012_v26 = vld [vmem:[#allocation7 + $0x20] sm:$0xff]  ;;  %v4011_v27 = vld [vmem:[#allocation7 + $0x18] sm:$0xff] }
 0x141   :  { %2366 = vmatpush.bf16.msra.mxu3 %v4013_v25  ;;  %2380 = vmatpush.bf16.msrb.mxu1 %v4021_v31 }
 0x142   :  { %v1612_v32 = vadd.f32 %v1611_v20, %v1598_v30  ;;  %v1625_v60 = vpop.f32.mrf.mxu2  ;;  %2219 = vmatpush.bf16.msrb.mxu0 %v3571_v5  ;;  %v4009_v30 = vld [vmem:[#allocation7 + $0x8] sm:$0xff] }
 0x143   :  { %v1626_v0 = vadd.f32 %v1625_v60, %v296_v47  ;;  %v4030_v60 = vld [vmem:[%s4395_s7 + $0x30] sm:$0xff] }
 0x144   :  { %v1718_v8 = vmax.f32 %v1612_v32, 0.0  ;;  %v4008_v32 = vld [vmem:[#allocation7] sm:$0xff] }
 0x145   :  { %v1640_v42 = vadd.f32 %v1639_v51, %v1626_v0  ;;  %2367 = vmatpush.bf16.msra.mxu3 %v4012_v26  ;;  %2381 = vmatpush.bf16.msrb.mxu1 %v4020_v33 }
 0x146   :  { %v1722_v40 = vpack.c.bf16 %v1718_v8, %v1714_v35  ;;  %v4018_v35 = vld [vmem:[#allocation7 + $0x50] sm:$0xff] }
 0x148   :  { %2150 = vmatmul.bf16.vlgmr.msrb.gmra.mxu2 %v1722_v40 }
 0x149   :  { %2368 = vmatpush.bf16.msra.mxu3 %v4011_v27  ;;  %2382 = vmatpush.bf16.msrb.mxu1 %v4019_v34  ;;  %v4046_v27 = vld [vmem:[%s4394_s6] ss:$0 sm:$0xff] }
 0x14a   :  { %2463 = vmatpush.bf16.msrb.mxu2 %v4031_v54 }
 0x14d   :  { %2369 = vmatpush.bf16.msra.mxu3 %v4010_v29  ;;  %2383 = vmatpush.bf16.msrb.mxu1 %v4018_v35 }
 0x14e   :  { %2464 = vmatpush.bf16.msrb.mxu2 %v4030_v60 }
 0x14f   :  { %v1651_v49 = vpop.f32.mrf.mxu1 }
 0x150   :  { %v1652_v4 = vadd.f32 %v1651_v49, %v1638_v63 }
 0x151   :  { %2370 = vmatpush.bf16.msra.mxu3 %v4009_v30  ;;  %2384 = vmatpush.bf16.msrb.mxu1 %v4017_v39 }
 0x155   :  { %2371 = vmatpush.bf16.msra.mxu3 %v4008_v32  ;;  %2385 = vmatpush.bf16.msrb.mxu1 %v4016_v43 }
 0x156   :  { %v1693_v6 = vpop.f32.mrf.mxu0 }
 0x157   :  { %v1665_v37 = vpop.f32.mrf.mxu3  ;;  %v1653_v1 = vpop.f32.mrf.mxu1 }
 0x158   :  { %2206 = vmatmul.bf16.vlgmr.msra.gmra.mxu2 %v1722_v40  ;;  %v1666_v7 = vadd.f32 %v1665_v37, %v1652_v4  ;;  %v1654_v9 = vadd.f32 %v1653_v1, %v1640_v42  ;;  %v1788_v40 = vld [vmem:[%s4392_s4] sm:$0x3] }
 0x159   :  { %v1790_v44 = vperm.slane %v1788_v40, 0  ;;  %v1791_v52 = vperm.slane %v1788_v40, 1  ;;  %v4047_v40 = vld [vmem:[%s4396_s8] ss:$0 sm:$0xff]  ;;  %s2542_s8 = sshll.u32 %s4399_s11, 4  ;;  %s2543_s8 = int_to_ptr.hbm [resolvable:$true] %s2542_s8 }
 0x15a   :  { %v1679_v2 = vpop.f32.mrf.mxu2 }
 0x15b   :  { %v1680_v13 = vadd.f32 %v1679_v2, %v1666_v7 }
 0x15d   :  { %v1694_v41 = vadd.f32 %v1693_v6, %v1680_v13 }
 0x15e   :  { %v1695_v16 = vpop.f32.mrf.mxu0 }
 0x15f   :  { %v1667_v10 = vpop.f32.mrf.mxu3  ;;  %v1707_v12 = vpop.f32.mrf.mxu1 }
 0x160   :  { %v1668_v11 = vadd.f32 %v1667_v10, %v1654_v9  ;;  %v1708_v17 = vadd.f32 %v1707_v12, %v1694_v41 }
 0x162   :  { %v1681_v14 = vpop.f32.mrf.mxu2  ;;  %v1715_v21 = vmax.f32 %v1708_v17, 0.0 }
 0x163   :  { %v1682_v15 = vadd.f32 %v1681_v14, %v1668_v11 }
 0x165   :  { %v1696_v18 = vadd.f32 %v1695_v16, %v1682_v15 }
 0x167   :  { %v1709_v19 = vpop.f32.mrf.mxu1 }
 0x168   :  { %v1710_v20 = vadd.f32 %v1709_v19, %v1696_v18  ;;  %v4029_v19 = vld [vmem:[%s4395_s7 + $0x28] sm:$0xff] }
 0x169   :  { %2465 = vmatpush.bf16.msrb.mxu2 %v4029_v19 }
 0x16a   :  { %v1719_v22 = vmax.f32 %v1710_v20, 0.0  ;;  %v4028_v20 = vld [vmem:[%s4395_s7 + $0x20] sm:$0xff] }
 0x16c   :  { %v1723_v23 = vpack.c.bf16 %v1719_v22, %v1715_v21  ;;  %v4027_v21 = vld [vmem:[%s4395_s7 + $0x18] sm:$0xff]  ;;  %v4026_v22 = vld [vmem:[%s4395_s7 + $0x10] sm:$0xff] }
 0x16d   :  { %2466 = vmatpush.bf16.msrb.mxu2 %v4028_v20 }
 0x16e   :  { %2164 = vmatmul.bf16.vlgmr.msra.gmra.mxu0 %v1723_v23 }
 0x16f   :  { %2524 = vmatpush.bf16.msra.mxu0 %v4035_v55 }
 0x171   :  { %2467 = vmatpush.bf16.msrb.mxu2 %v4027_v21 }
 0x175   :  { %2468 = vmatpush.bf16.msrb.mxu2 %v4026_v22 }
 0x177   :  { %v2123_v8 = vpop.f32.mrf.mxu3 }
 0x178   :  { %v2124_v49 = vadd.f32 %v2123_v8, %v1790_v44  ;;  %v4034_v8 = vld [vmem:[%s4397_s9 + $0x10] sm:$0xff] }
 0x179   :  { %2525 = vmatpush.bf16.msra.mxu0 %v4034_v8 }
 0x17e   :  { %2220 = vmatmul.bf16.vlgmr.msrb.gmra.mxu0 %v1723_v23  ;;  %v4025_v23 = vld [vmem:[%s4395_s7 + $0x8] sm:$0xff] }
 0x17f   :  { %v2125_v45 = vpop.f32.mrf.mxu3  ;;  %2469 = vmatpush.bf16.msrb.mxu2 %v4025_v23 }
 0x180   :  { %v2126_v51 = vadd.f32 %v2125_v45, %v1790_v44 }
 0x183   :  { %2470 = vmatpush.bf16.msrb.mxu2 %v4024_v24 }
 0x18a   :  { %v2137_v36 = vpop.f32.mrf.mxu1 }
 0x18b   :  { %v2138_v53 = vadd.f32 %v2137_v36, %v2124_v49  ;;  %v4033_v36 = vld [vmem:[%s4397_s9 + $0x8] sm:$0xff] }
 0x18c   :  { %2526 = vmatpush.bf16.msra.mxu0 %v4033_v36 }
 0x192   :  { %v2139_v46 = vpop.f32.mrf.mxu1 }
 0x193   :  { %v2140_v56 = vadd.f32 %v2139_v46, %v2126_v51 }
 0x197   :  { %v2179_v58 = vpop.f32.mrf.mxu3 }
 0x198   :  { %v2180_v42 = vadd.f32 %v2179_v58, %v1791_v52 }
 0x19a   :  { %v2193_v62 = vpop.f32.mrf.mxu1 }
 0x19b   :  { %v2194_v9 = vadd.f32 %v2193_v62, %v2180_v42 }
 0x19f   :  { %v2181_v4 = vpop.f32.mrf.mxu3 }
 0x1a0   :  { %v2182_v7 = vadd.f32 %v2181_v4, %v1791_v52 }
 0x1a2   :  { %v2195_v6 = vpop.f32.mrf.mxu1 }
 0x1a3   :  { %v2196_v11 = vadd.f32 %v2195_v6, %v2182_v7 }
 0x1cb   :  { %v2151_v38 = vpop.f32.mrf.mxu2 }
 0x1cc   :  { %v2152_v57 = vadd.f32 %v2151_v38, %v2138_v53  ;;  %v4032_v38 = vld [vmem:[%s4397_s9] sm:$0xff]  ;;  %s4160_s9 = smov [#allocation8]  }
 0x1cd   :  { %2527 = vmatpush.bf16.msra.mxu0 %v4032_v38  ;;  %s2540_s12 = sshll.u32 %s4160_s9, 4  ;;  %s2541_s12 = int_to_ptr.vmem [resolvable:$true] %s2540_s12 }
 0x1d3   :  { %v2153_v47 = vpop.f32.mrf.mxu2 }
 0x1d4   :  { %v2154_v59 = vadd.f32 %v2153_v47, %v2140_v56 }
 0x1db   :  { %v2207_v0 = vpop.f32.mrf.mxu2 }
 0x1dc   :  { %v2208_v12 = vadd.f32 %v2207_v0, %v2194_v9 }
 0x1e3   :  { %v2209_v10 = vpop.f32.mrf.mxu2 }
 0x1e4   :  { %v2210_v13 = vadd.f32 %v2209_v10, %v2196_v11 }
 0x1eb   :  { %v2165_v48 = vpop.f32.mrf.mxu0 }
 0x1ec   :  { %v2166_v61 = vadd.f32 %v2165_v48, %v2152_v57  ;;  %v4048_v48 = vld [vmem:[%s4398_s10] ss:$0 sm:$0xff] }
 0x1ee   :  { %v2226_v1 = vmax.f32 %v2166_v61, 0.0 }
 0x1f3   :  { %v2167_v63 = vpop.f32.mrf.mxu0 }
 0x1f4   :  { %v2168_v37 = vadd.f32 %v2167_v63, %v2154_v59 }
 0x1f6   :  { %v2228_v2 = vmax.f32 %v2168_v37, 0.0 }
 0x1f8   :  { %v2230_v3 = vpack.c.bf16 %v2228_v2, %v2226_v1 }
 0x1fa   :  { %2372 = vmatmul.bf16.vlgmr.msra.gmra.mxu3 %v2230_v3 }
 0x1fb   :  { %v2221_v5 = vpop.f32.mrf.mxu0 }
 0x1fc   :  { %v2222_v14 = vadd.f32 %v2221_v5, %v2208_v12 }
 0x1fe   :  { %v2227_v16 = vmax.f32 %v2222_v14, 0.0 }
 0x203   :  { %v2223_v15 = vpop.f32.mrf.mxu0 }
 0x204   :  { %v2224_v41 = vadd.f32 %v2223_v15, %v2210_v13 }
 0x206   :  { %v2229_v17 = vmax.f32 %v2224_v41, 0.0 }
 0x208   :  { %v2231_v18 = vpack.c.bf16 %v2229_v17, %v2227_v16 }
 0x20a   :  { %2386 = vmatmul.bf16.vlgmr.msrb.gmra.mxu1 %v2231_v18 }
 0x27d   :  { %v2373_v25 = vpop.f32.mrf.mxu3 }
 0x27e   :  { %v2374_v29 = vadd.f32 %v4046_v27, %v2373_v25 }
 0x285   :  { %v2375_v28 = vpop.f32.mrf.mxu3 }
 0x286   :  { %v2376_v50 = vadd.f32 %v4046_v27, %v2375_v28 }
 0x287   :  { %v2387_v26 = vpop.f32.mrf.mxu1 }
 0x288   :  { %v2388_v30 = vadd.f32 %v2387_v26, %v2374_v29 }
 0x28a   :  { %v2392_v33 = vmax.f32 %v2388_v30, 0.0 }
 0x28f   :  { %v2389_v31 = vpop.f32.mrf.mxu1 }
 0x290   :  { %v2390_v32 = vadd.f32 %v2389_v31, %v2376_v50 }
 0x292   :  { %v2393_v34 = vmax.f32 %v2390_v32, 0.0 }
 0x294   :  { %v2394_v35 = vpack.c.bf16 %v2393_v34, %v2392_v33 }
 0x296   :  { %2471 = vmatmul.bf16.vlgmr.msrb.gmra.mxu2 %v2394_v35 }
 0x319   :  { %v2472_v39 = vpop.f32.mrf.mxu2 }
 0x31a   :  { %v2473_v43 = vadd.f32 %v4047_v40, %v2472_v39 }
 0x31c   :  { %v2477_v46 = vmax.f32 %v2473_v43, 0.0 }
 0x321   :  { %v2474_v44 = vpop.f32.mrf.mxu2 }
 0x322   :  { %v2475_v45 = vadd.f32 %v4047_v40, %v2474_v44 }
 0x324   :  { %v2478_v54 = vmax.f32 %v2475_v45, 0.0 }
 0x326   :  { %v2479_v47 = vpack.c.bf16 %v2478_v54, %v2477_v46 }
 0x328   :  { %3740 = vmatmul.msk.bf16.vlgmr.msra.gmra.mxu0 %vm2516_vm1, %v2479_v47 }
 0x3a5   :  { %v2529_v49 = vpop.f32.mrf.mxu0 }
 0x3a6   :  { %v2530_v60 = vadd.f32 %v4048_v48, %v2529_v49 }
 0x3a8   :  { %2534 = vst [vmem:[#allocation8] sm:$0xff] %v2530_v60 }
 0x3ad   :  { %v2531_v51 = vpop.f32.mrf.mxu0 }
 0x3ae   :  { %v2532_v53 = vadd.f32 %v4048_v48, %v2531_v51 }
 0x3b0   :  { %2535 = vst [vmem:[#allocation8 + $0x8] sm:$0xff] %v2532_v53 }
 0x3b1   :  { %2548 = dma.vmem_to_hbm [thread:$0]  %s2541_s12, 256, %s2543_s8, [#allocation4], %s4152_s25, %s4152_s25, %s4153_s26  }
 0x3b2   :  { %4149 = dma.done.wait [#allocation4], 256  }
 0x3b3   :  { %4150 = vsyncadd [#allocation4], 4294967040 }
 0x3b4   :  { %2553 = vsyncpa [#allocation3], 1 }
 0x3b5   :  { %2554 = vsyncpa [#allocation6], 1 }
 0x3b6   :  { %2555 = vsyncpa [#allocation4], 1 }

</bundles_post_ra>
